<compile_context>
chip_gen: v7x
topology: tpu7x:2x2x1
jax: 0.10.0
libtpu: 0.0.40
codegen_flags: <defaults>
</compile_context>

<pallas_src>
import functools

import jax
import jax.numpy as jnp
from jax.experimental import pallas as pl
from jax.experimental.pallas import tpu as pltpu

EPS = 1e-5
NUM_HEADS = 4
NEG_INF = -1e9


# ----------------------------- fused kernel --------------------------------

def _encoder_layer_kernel(
    x_ref, t_struct_ref, s_struct_ref, t_key_ref, s_key_ref,
    n1g_ref, n1b_ref, t_w_ref, t_b_ref, t_pw_ref, t_pb_ref,
    n2g_ref, n2b_ref, s_w_ref, s_b_ref, s_pw_ref, s_pb_ref,
    n3g_ref, n3b_ref, f_w1_ref, f_b1_ref, f_w2_ref, f_b2_ref,
    o_ref, *, num_heads):
  x = x_ref[0].astype(jnp.float32)                        # (L, C), L = T*N
  L, C = x.shape

  def layer_norm(h, g_ref, b_ref):                        # f32 VPU path
    mu = jnp.mean(h, axis=-1, keepdims=True)
    var = jnp.mean((h - mu) ** 2, axis=-1, keepdims=True)
    return (h - mu) * jax.lax.rsqrt(var + EPS) * g_ref[...] + b_ref[...]

  def attention(h, bias, w_ref, b_ref, pw_ref, pb_ref):
    # bias: (L, L) additive mask (0 / -1e9 / -2e9), already per-batch.
    h_bf = h.astype(jnp.bfloat16)
    heads = []
    for hd in range(num_heads):
      # Per-head Q/K/V via full-C contractions on head-major weights: no
      # narrow unaligned lane slices.  Softmax scale folded into w/b[0].
      q = (jnp.dot(h_bf, w_ref[0, hd], preferred_element_type=jnp.float32)
           + b_ref[0, hd]).astype(jnp.bfloat16)
      k = (jnp.dot(h_bf, w_ref[1, hd], preferred_element_type=jnp.float32)
           + b_ref[1, hd]).astype(jnp.bfloat16)
      v = (jnp.dot(h_bf, w_ref[2, hd], preferred_element_type=jnp.float32)
           + b_ref[2, hd]).astype(jnp.bfloat16)
      s = jax.lax.dot_general(q, k, (((1,), (1,)), ((), ())),
                              preferred_element_type=jnp.float32)     # (L, L)
      s = s + bias
      m = jnp.max(s, axis=-1, keepdims=True)
      p = jnp.exp(s - m)                                              # f32 EUP
      p = p * pl.reciprocal(jnp.sum(p, axis=-1, keepdims=True))       # exact
      heads.append(jnp.dot(p.astype(jnp.bfloat16), v,
                           preferred_element_type=jnp.float32))       # (L, Dh)
    # Single C-contraction output projection (head-concat un-fused from it).
    o_all = jnp.concatenate(heads, axis=-1).astype(jnp.bfloat16)      # (L, C)
    return jnp.dot(o_all, pw_ref[...],
                   preferred_element_type=jnp.float32) + pb_ref[...]

  # Additive masks assembled in-kernel (no (B, L, L) HBM streams).
  t_bias = t_struct_ref[...] + t_key_ref[0]
  s_bias = s_struct_ref[...] + s_key_ref[0]

  # --- temporal attention branch (pre-norm, residual) ---
  h = layer_norm(x, n1g_ref, n1b_ref)
  x = x + attention(h, t_bias, t_w_ref, t_b_ref, t_pw_ref, t_pb_ref)
  # --- spatial attention branch ---
  h = layer_norm(x, n2g_ref, n2b_ref)
  x = x + attention(h, s_bias, s_w_ref, s_b_ref, s_pw_ref, s_pb_ref)
  # --- FFN branch ---
  h = layer_norm(x, n3g_ref, n3b_ref)
  f = jnp.dot(h.astype(jnp.bfloat16), f_w1_ref[...],
              preferred_element_type=jnp.float32) + f_b1_ref[...]
  f = jnp.maximum(f, 0.0)
  f = jnp.dot(f.astype(jnp.bfloat16), f_w2_ref[...],
              preferred_element_type=jnp.float32) + f_b2_ref[...]
  x = x + f

  o_ref[0] = x.astype(o_ref.dtype)


# ----------------------------- wrapper --------------------------------------

def _prep_attention_params(att, num_heads, scale):
  """qkv_w (C,3C)/qkv_b (3C,) -> head-major bf16 (3,H,C,Dh) with scale folded."""
  C = att['proj_w'].shape[0]
  Dh = C // num_heads
  w = att['qkv_w'].reshape(C, 3, num_heads, Dh).transpose(1, 2, 0, 3)  # (3,H,C,Dh)
  b = att['qkv_b'].reshape(3, num_heads, 1, Dh)                        # (3,H,1,Dh)
  w = w.at[0].multiply(scale)            # fold softmax scale into Q
  b = b.at[0].multiply(scale)
  return (w.astype(jnp.bfloat16), b.astype(jnp.float32),
          att['proj_w'].astype(jnp.bfloat16),
          att['proj_b'].reshape(1, C).astype(jnp.float32))


def encoder_layer_forward(x, t_mask, s_mask, adjm, params):
  B, T, N, C = x.shape
  H = NUM_HEADS
  assert C % H == 0
  Dh = C // H
  L = T * N
  F = params['ffn_w1'].shape[1]

  x2 = x.reshape(B, L, C)

  # Mask prep: only batch-independent (L, L) structure + per-batch (1, L)
  # key-padding rows leave HBM; the (L, L) per-batch biases are built
  # in-kernel by a broadcast add.
  idx = jnp.arange(L)
  node = idx % N                       # node index of flattened row t*N + n
  tim = idx // N                       # time index of flattened row
  same_node = node[:, None] == node[None, :]
  same_time = tim[:, None] == tim[None, :]
  adj_ok = adjm[node][:, node] > 0                          # (L, L)
  t_struct = jnp.where(same_node, 0.0, NEG_INF).astype(jnp.float32)
  s_struct = jnp.where(same_time & adj_ok, 0.0, NEG_INF).astype(jnp.float32)
  t_key = jnp.where(t_mask[:, tim] > 0, 0.0, NEG_INF
                    ).astype(jnp.float32).reshape(B, 1, L)
  s_key = jnp.where(s_mask[:, node] > 0, 0.0, NEG_INF
                    ).astype(jnp.float32).reshape(B, 1, L)

  scale = Dh ** -0.5
  t_w, t_b, t_pw, t_pb = _prep_attention_params(params['tmae'], H, scale)
  s_w, s_b, s_pw, s_pb = _prep_attention_params(params['smae'], H, scale)

  def rep(shape):          # replicated operand (constant block index)
    return pl.BlockSpec(shape, lambda *_: (0,) * len(shape))

  def batched(shape):      # one batch element per grid step
    return pl.BlockSpec(shape, lambda b: (b,) + (0,) * (len(shape) - 1))

  kernel = functools.partial(_encoder_layer_kernel, num_heads=H)

  out = pl.pallas_call(
      kernel,
      out_shape=jax.ShapeDtypeStruct((B, L, C), x.dtype),
      grid=(B,),
      in_specs=[
          batched((1, L, C)),
          rep((L, L)), rep((L, L)), batched((1, 1, L)), batched((1, 1, L)),
          rep((1, C)), rep((1, C)),
          rep((3, H, C, Dh)), rep((3, H, 1, Dh)), rep((C, C)), rep((1, C)),
          rep((1, C)), rep((1, C)),
          rep((3, H, C, Dh)), rep((3, H, 1, Dh)), rep((C, C)), rep((1, C)),
          rep((1, C)), rep((1, C)),
          rep((C, F)), rep((1, F)), rep((F, C)), rep((1, C)),
      ],
      out_specs=batched((1, L, C)),
      compiler_params=pltpu.CompilerParams(
          dimension_semantics=("parallel",),    # v7x: one batch per TensorCore
          # Explicit scoped-VMEM budget (per review); actual per-step footprint
          # at these shapes is well under 1 MiB, so this is pure headroom.
          vmem_limit_bytes=32 * 1024 * 1024,
      ),
  )(
      x2, t_struct, s_struct, t_key, s_key,
      params['norm1_g'].reshape(1, C), params['norm1_b'].reshape(1, C),
      t_w, t_b, t_pw, t_pb,
      params['norm2_g'].reshape(1, C), params['norm2_b'].reshape(1, C),
      s_w, s_b, s_pw, s_pb,
      params['norm3_g'].reshape(1, C), params['norm3_b'].reshape(1, C),
      params['ffn_w1'].astype(jnp.bfloat16), params['ffn_b1'].reshape(1, F),
      params['ffn_w2'].astype(jnp.bfloat16), params['ffn_b2'].reshape(1, C),
  )
  return out.reshape(B, T, N, C)


# ----------------------------- params / demo --------------------------------

def init_params(key, C, ffn_ratio=4):
  ks = jax.random.split(key, 6)

  def w(k, shape):
    return 0.02 * jax.random.normal(k, shape, jnp.float32)

  return {
      'norm1_g': jnp.ones((C,), jnp.float32), 'norm1_b': jnp.zeros((C,), jnp.float32),
      'norm2_g': jnp.ones((C,), jnp.float32), 'norm2_b': jnp.zeros((C,), jnp.float32),
      'norm3_g': jnp.ones((C,), jnp.float32), 'norm3_b': jnp.zeros((C,), jnp.float32),
      'tmae': {'qkv_w': w(ks[0], (C, 3 * C)), 'qkv_b': jnp.zeros((3 * C,), jnp.float32),
               'proj_w': w(ks[1], (C, C)), 'proj_b': jnp.zeros((C,), jnp.float32)},
      'smae': {'qkv_w': w(ks[2], (C, 3 * C)), 'qkv_b': jnp.zeros((3 * C,), jnp.float32),
               'proj_w': w(ks[3], (C, C)), 'proj_b': jnp.zeros((C,), jnp.float32)},
      'ffn_w1': w(ks[4], (C, ffn_ratio * C)), 'ffn_b1': jnp.zeros((ffn_ratio * C,), jnp.float32),
      'ffn_w2': w(ks[5], (ffn_ratio * C, C)), 'ffn_b2': jnp.zeros((C,), jnp.float32),
  }


if __name__ == "__main__":
  B, T, N, C = 2, 8, 4, 32
  key = jax.random.PRNGKey(0)
  kx, kp = jax.random.split(key)

  params = init_params(kp, C)
  x = jax.random.normal(kx, (B, T, N, C), jnp.float32)
  # temporal mask: last 2 time-steps are padding
  t_mask = jnp.ones((B, T), jnp.float32).at[:, -2:].set(0.0)
  # spatial mask: all nodes valid
  s_mask = jnp.ones((B, N), jnp.float32)
  # ring-graph adjacency (self + neighbors)
  eye = jnp.eye(N, dtype=jnp.float32)
  adjm = jnp.clip(eye + jnp.roll(eye, 1, axis=0) + jnp.roll(eye, -1, axis=0), 0.0, 1.0)

  fwd = jax.jit(encoder_layer_forward)
  out = fwd(x, t_mask, s_mask, adjm, params)
  jax.block_until_ready(out)
  assert out.shape == (B, T, N, C)
  assert bool(jnp.all(jnp.isfinite(out)))
  print("KERNEL_OK")
</pallas_src>

<mosaic_0001>
module attributes {stable_mosaic.version = 11 : i64} {
  func.func @_encoder_layer_kernel(%arg0: i32, %arg1: memref<1x32x32xf32, #tpu.memory_space<vmem>>, %arg2: memref<32x32xf32, #tpu.memory_space<vmem>>, %arg3: memref<32x32xf32, #tpu.memory_space<vmem>>, %arg4: memref<1x1x32xf32, #tpu.memory_space<vmem>>, %arg5: memref<1x1x32xf32, #tpu.memory_space<vmem>>, %arg6: memref<1x32xf32, #tpu.memory_space<vmem>>, %arg7: memref<1x32xf32, #tpu.memory_space<vmem>>, %arg8: memref<3x4x32x8xbf16, #tpu.memory_space<vmem>>, %arg9: memref<3x4x1x8xf32, #tpu.memory_space<vmem>>, %arg10: memref<32x32xbf16, #tpu.memory_space<vmem>>, %arg11: memref<1x32xf32, #tpu.memory_space<vmem>>, %arg12: memref<1x32xf32, #tpu.memory_space<vmem>>, %arg13: memref<1x32xf32, #tpu.memory_space<vmem>>, %arg14: memref<3x4x32x8xbf16, #tpu.memory_space<vmem>>, %arg15: memref<3x4x1x8xf32, #tpu.memory_space<vmem>>, %arg16: memref<32x32xbf16, #tpu.memory_space<vmem>>, %arg17: memref<1x32xf32, #tpu.memory_space<vmem>>, %arg18: memref<1x32xf32, #tpu.memory_space<vmem>>, %arg19: memref<1x32xf32, #tpu.memory_space<vmem>>, %arg20: memref<32x128xbf16, #tpu.memory_space<vmem>>, %arg21: memref<1x128xf32, #tpu.memory_space<vmem>>, %arg22: memref<128x32xbf16, #tpu.memory_space<vmem>>, %arg23: memref<1x32xf32, #tpu.memory_space<vmem>>, %arg24: memref<1x32x32xf32, #tpu.memory_space<vmem>>) attributes {dimension_semantics = [#tpu.dimension_semantics<parallel>], iteration_bounds = array<i64: 2>, scalar_prefetch = 0 : i64, scratch_operands = 0 : i64, tpu.core_type = #tpu.core_type<tc>, window_params = [{transform_indices = @transform_0, window_bounds = array<i64: 1, 32, 32>}, {pipeline_mode = #tpu.pipeline_mode<synchronous>, transform_indices = @transform_1, window_bounds = array<i64: 32, 32>}, {pipeline_mode = #tpu.pipeline_mode<synchronous>, transform_indices = @transform_2, window_bounds = array<i64: 32, 32>}, {transform_indices = @transform_3, window_bounds = array<i64: 1, 1, 32>}, {transform_indices = @transform_4, window_bounds = array<i64: 1, 1, 32>}, {pipeline_mode = #tpu.pipeline_mode<synchronous>, transform_indices = @transform_5, window_bounds = array<i64: 1, 32>}, {pipeline_mode = #tpu.pipeline_mode<synchronous>, transform_indices = @transform_6, window_bounds = array<i64: 1, 32>}, {pipeline_mode = #tpu.pipeline_mode<synchronous>, transform_indices = @transform_7, window_bounds = array<i64: 3, 4, 32, 8>}, {pipeline_mode = #tpu.pipeline_mode<synchronous>, transform_indices = @transform_8, window_bounds = array<i64: 3, 4, 1, 8>}, {pipeline_mode = #tpu.pipeline_mode<synchronous>, transform_indices = @transform_9, window_bounds = array<i64: 32, 32>}, {pipeline_mode = #tpu.pipeline_mode<synchronous>, transform_indices = @transform_10, window_bounds = array<i64: 1, 32>}, {pipeline_mode = #tpu.pipeline_mode<synchronous>, transform_indices = @transform_11, window_bounds = array<i64: 1, 32>}, {pipeline_mode = #tpu.pipeline_mode<synchronous>, transform_indices = @transform_12, window_bounds = array<i64: 1, 32>}, {pipeline_mode = #tpu.pipeline_mode<synchronous>, transform_indices = @transform_13, window_bounds = array<i64: 3, 4, 32, 8>}, {pipeline_mode = #tpu.pipeline_mode<synchronous>, transform_indices = @transform_14, window_bounds = array<i64: 3, 4, 1, 8>}, {pipeline_mode = #tpu.pipeline_mode<synchronous>, transform_indices = @transform_15, window_bounds = array<i64: 32, 32>}, {pipeline_mode = #tpu.pipeline_mode<synchronous>, transform_indices = @transform_16, window_bounds = array<i64: 1, 32>}, {pipeline_mode = #tpu.pipeline_mode<synchronous>, transform_indices = @transform_17, window_bounds = array<i64: 1, 32>}, {pipeline_mode = #tpu.pipeline_mode<synchronous>, transform_indices = @transform_18, window_bounds = array<i64: 1, 32>}, {pipeline_mode = #tpu.pipeline_mode<synchronous>, transform_indices = @transform_19, window_bounds = array<i64: 32, 128>}, {pipeline_mode = #tpu.pipeline_mode<synchronous>, transform_indices = @transform_20, window_bounds = array<i64: 1, 128>}, {pipeline_mode = #tpu.pipeline_mode<synchronous>, transform_indices = @transform_21, window_bounds = array<i64: 128, 32>}, {pipeline_mode = #tpu.pipeline_mode<synchronous>, transform_indices = @transform_22, window_bounds = array<i64: 1, 32>}, {transform_indices = @transform_23, window_bounds = array<i64: 1, 32, 32>}]} {
    %c0 = arith.constant 0 : index
    %c0_0 = arith.constant 0 : index
    %c0_1 = arith.constant 0 : index
    %0 = vector.load %arg1[%c0, %c0_0, %c0_1] : memref<1x32x32xf32, #tpu.memory_space<vmem>>, vector<1x32x32xf32>
    %1 = vector.shape_cast %0 : vector<1x32x32xf32> to vector<32x32xf32>
    %c0_2 = arith.constant 0 : index
    %c0_3 = arith.constant 0 : index
    %2 = vector.load %arg2[%c0_2, %c0_3] : memref<32x32xf32, #tpu.memory_space<vmem>>, vector<32x32xf32>
    %c0_4 = arith.constant 0 : index
    %c0_5 = arith.constant 0 : index
    %c0_6 = arith.constant 0 : index
    %3 = vector.load %arg4[%c0_4, %c0_5, %c0_6] : memref<1x1x32xf32, #tpu.memory_space<vmem>>, vector<1x1x32xf32>
    %4 = vector.shape_cast %3 : vector<1x1x32xf32> to vector<1x32xf32>
    %5 = vector.broadcast %4 : vector<1x32xf32> to vector<32x32xf32>
    %6 = arith.addf %2, %5 : vector<32x32xf32>
    %c0_7 = arith.constant 0 : index
    %c0_8 = arith.constant 0 : index
    %7 = vector.load %arg3[%c0_7, %c0_8] : memref<32x32xf32, #tpu.memory_space<vmem>>, vector<32x32xf32>
    %c0_9 = arith.constant 0 : index
    %c0_10 = arith.constant 0 : index
    %c0_11 = arith.constant 0 : index
    %8 = vector.load %arg5[%c0_9, %c0_10, %c0_11] : memref<1x1x32xf32, #tpu.memory_space<vmem>>, vector<1x1x32xf32>
    %9 = vector.shape_cast %8 : vector<1x1x32xf32> to vector<1x32xf32>
    %10 = vector.broadcast %9 : vector<1x32xf32> to vector<32x32xf32>
    %11 = arith.addf %7, %10 : vector<32x32xf32>
    %cst = arith.constant dense<0.000000e+00> : vector<32xf32>
    %12 = vector.multi_reduction <add>, %1, %cst [1] : vector<32x32xf32> to vector<32xf32>
    %13 = vector.shape_cast %12 : vector<32xf32> to vector<32x1xf32>
    %cst_12 = arith.constant 3.200000e+01 : f32
    %14 = vector.broadcast %cst_12 : f32 to vector<32x1xf32>
    %15 = arith.divf %13, %14 : vector<32x1xf32>
    %16 = vector.broadcast %15 : vector<32x1xf32> to vector<32x32xf32>
    %17 = arith.subf %1, %16 : vector<32x32xf32>
    %18 = arith.mulf %17, %17 : vector<32x32xf32>
    %cst_13 = arith.constant dense<0.000000e+00> : vector<32xf32>
    %19 = vector.multi_reduction <add>, %18, %cst_13 [1] : vector<32x32xf32> to vector<32xf32>
    %20 = vector.shape_cast %19 : vector<32xf32> to vector<32x1xf32>
    %cst_14 = arith.constant 3.200000e+01 : f32
    %21 = vector.broadcast %cst_14 : f32 to vector<32x1xf32>
    %22 = arith.divf %20, %21 : vector<32x1xf32>
    %23 = vector.broadcast %15 : vector<32x1xf32> to vector<32x32xf32>
    %24 = arith.subf %1, %23 : vector<32x32xf32>
    %cst_15 = arith.constant 9.99999974E-6 : f32
    %25 = vector.broadcast %cst_15 : f32 to vector<32x1xf32>
    %26 = arith.addf %22, %25 : vector<32x1xf32>
    %27 = math.rsqrt %26 : vector<32x1xf32>
    %28 = vector.broadcast %27 : vector<32x1xf32> to vector<32x32xf32>
    %29 = arith.mulf %24, %28 : vector<32x32xf32>
    %c0_16 = arith.constant 0 : index
    %c0_17 = arith.constant 0 : index
    %30 = vector.load %arg6[%c0_16, %c0_17] : memref<1x32xf32, #tpu.memory_space<vmem>>, vector<1x32xf32>
    %31 = vector.broadcast %30 : vector<1x32xf32> to vector<32x32xf32>
    %32 = arith.mulf %29, %31 : vector<32x32xf32>
    %c0_18 = arith.constant 0 : index
    %c0_19 = arith.constant 0 : index
    %33 = vector.load %arg7[%c0_18, %c0_19] : memref<1x32xf32, #tpu.memory_space<vmem>>, vector<1x32xf32>
    %34 = vector.broadcast %33 : vector<1x32xf32> to vector<32x32xf32>
    %35 = arith.addf %32, %34 : vector<32x32xf32>
    %36 = arith.truncf %35 : vector<32x32xf32> to vector<32x32xbf16>
    %c0_20 = arith.constant 0 : index
    %c0_21 = arith.constant 0 : index
    %c0_22 = arith.constant 0 : index
    %c0_23 = arith.constant 0 : index
    %37 = vector.load %arg8[%c0_20, %c0_21, %c0_22, %c0_23] : memref<3x4x32x8xbf16, #tpu.memory_space<vmem>>, vector<1x1x32x8xbf16>
    %38 = vector.shape_cast %37 : vector<1x1x32x8xbf16> to vector<32x8xbf16>
    %cst_24 = arith.constant dense<0.000000e+00> : vector<32x8xf32>
    %39 = tpu.matmul %36, %38, %cst_24 {dimension_numbers = #tpu.dot_dimension_numbers<[1], [0], [0], [1], [0, 0, 1, 1], [], []>} : vector<32x32xbf16>, vector<32x8xbf16>, vector<32x8xf32> -> vector<32x8xf32>
    %c0_25 = arith.constant 0 : index
    %c0_26 = arith.constant 0 : index
    %c0_27 = arith.constant 0 : index
    %c0_28 = arith.constant 0 : index
    %40 = vector.load %arg9[%c0_25, %c0_26, %c0_27, %c0_28] : memref<3x4x1x8xf32, #tpu.memory_space<vmem>>, vector<1x1x1x8xf32>
    %41 = vector.shape_cast %40 : vector<1x1x1x8xf32> to vector<1x8xf32>
    %42 = vector.broadcast %41 : vector<1x8xf32> to vector<32x8xf32>
    %43 = arith.addf %39, %42 : vector<32x8xf32>
    %44 = arith.truncf %43 : vector<32x8xf32> to vector<32x8xbf16>
    %c1 = arith.constant 1 : index
    %c0_29 = arith.constant 0 : index
    %c0_30 = arith.constant 0 : index
    %c0_31 = arith.constant 0 : index
    %45 = vector.load %arg8[%c1, %c0_29, %c0_30, %c0_31] : memref<3x4x32x8xbf16, #tpu.memory_space<vmem>>, vector<1x1x32x8xbf16>
    %46 = vector.shape_cast %45 : vector<1x1x32x8xbf16> to vector<32x8xbf16>
    %cst_32 = arith.constant dense<0.000000e+00> : vector<32x8xf32>
    %47 = tpu.matmul %36, %46, %cst_32 {dimension_numbers = #tpu.dot_dimension_numbers<[1], [0], [0], [1], [0, 0, 1, 1], [], []>} : vector<32x32xbf16>, vector<32x8xbf16>, vector<32x8xf32> -> vector<32x8xf32>
    %c1_33 = arith.constant 1 : index
    %c0_34 = arith.constant 0 : index
    %c0_35 = arith.constant 0 : index
    %c0_36 = arith.constant 0 : index
    %48 = vector.load %arg9[%c1_33, %c0_34, %c0_35, %c0_36] : memref<3x4x1x8xf32, #tpu.memory_space<vmem>>, vector<1x1x1x8xf32>
    %49 = vector.shape_cast %48 : vector<1x1x1x8xf32> to vector<1x8xf32>
    %50 = vector.broadcast %49 : vector<1x8xf32> to vector<32x8xf32>
    %51 = arith.addf %47, %50 : vector<32x8xf32>
    %52 = arith.truncf %51 : vector<32x8xf32> to vector<32x8xbf16>
    %c2 = arith.constant 2 : index
    %c0_37 = arith.constant 0 : index
    %c0_38 = arith.constant 0 : index
    %c0_39 = arith.constant 0 : index
    %53 = vector.load %arg8[%c2, %c0_37, %c0_38, %c0_39] : memref<3x4x32x8xbf16, #tpu.memory_space<vmem>>, vector<1x1x32x8xbf16>
    %54 = vector.shape_cast %53 : vector<1x1x32x8xbf16> to vector<32x8xbf16>
    %cst_40 = arith.constant dense<0.000000e+00> : vector<32x8xf32>
    %55 = tpu.matmul %36, %54, %cst_40 {dimension_numbers = #tpu.dot_dimension_numbers<[1], [0], [0], [1], [0, 0, 1, 1], [], []>} : vector<32x32xbf16>, vector<32x8xbf16>, vector<32x8xf32> -> vector<32x8xf32>
    %c2_41 = arith.constant 2 : index
    %c0_42 = arith.constant 0 : index
    %c0_43 = arith.constant 0 : index
    %c0_44 = arith.constant 0 : index
    %56 = vector.load %arg9[%c2_41, %c0_42, %c0_43, %c0_44] : memref<3x4x1x8xf32, #tpu.memory_space<vmem>>, vector<1x1x1x8xf32>
    %57 = vector.shape_cast %56 : vector<1x1x1x8xf32> to vector<1x8xf32>
    %58 = vector.broadcast %57 : vector<1x8xf32> to vector<32x8xf32>
    %59 = arith.addf %55, %58 : vector<32x8xf32>
    %60 = arith.truncf %59 : vector<32x8xf32> to vector<32x8xbf16>
    %cst_45 = arith.constant dense<0.000000e+00> : vector<32x32xf32>
    %61 = tpu.matmul %44, %52, %cst_45 {dimension_numbers = #tpu.dot_dimension_numbers<[1], [1], [0], [0], [0, 0, 1, 0], [], []>} : vector<32x8xbf16>, vector<32x8xbf16>, vector<32x32xf32> -> vector<32x32xf32>
    %62 = arith.addf %61, %6 : vector<32x32xf32>
    %cst_46 = arith.constant dense<0xFF800000> : vector<32xf32>
    %63 = vector.multi_reduction <maximumf>, %62, %cst_46 [1] : vector<32x32xf32> to vector<32xf32>
    %64 = vector.shape_cast %63 : vector<32xf32> to vector<32x1xf32>
    %65 = vector.broadcast %64 : vector<32x1xf32> to vector<32x32xf32>
    %66 = arith.subf %62, %65 : vector<32x32xf32>
    %67 = math.exp %66 : vector<32x32xf32>
    %cst_47 = arith.constant dense<0.000000e+00> : vector<32xf32>
    %68 = vector.multi_reduction <add>, %67, %cst_47 [1] : vector<32x32xf32> to vector<32xf32>
    %69 = vector.shape_cast %68 : vector<32xf32> to vector<32x1xf32>
    %70 = tpu.reciprocal %69 : vector<32x1xf32> -> vector<32x1xf32>
    %71 = vector.broadcast %70 : vector<32x1xf32> to vector<32x32xf32>
    %72 = arith.mulf %67, %71 : vector<32x32xf32>
    %73 = arith.truncf %72 : vector<32x32xf32> to vector<32x32xbf16>
    %cst_48 = arith.constant dense<0.000000e+00> : vector<32x8xf32>
    %74 = tpu.matmul %73, %60, %cst_48 {dimension_numbers = #tpu.dot_dimension_numbers<[1], [0], [0], [1], [0, 0, 1, 1], [], []>} : vector<32x32xbf16>, vector<32x8xbf16>, vector<32x8xf32> -> vector<32x8xf32>
    %c0_49 = arith.constant 0 : index
    %c1_50 = arith.constant 1 : index
    %c0_51 = arith.constant 0 : index
    %c0_52 = arith.constant 0 : index
    %75 = vector.load %arg8[%c0_49, %c1_50, %c0_51, %c0_52] : memref<3x4x32x8xbf16, #tpu.memory_space<vmem>>, vector<1x1x32x8xbf16>
    %76 = vector.shape_cast %75 : vector<1x1x32x8xbf16> to vector<32x8xbf16>
    %cst_53 = arith.constant dense<0.000000e+00> : vector<32x8xf32>
    %77 = tpu.matmul %36, %76, %cst_53 {dimension_numbers = #tpu.dot_dimension_numbers<[1], [0], [0], [1], [0, 0, 1, 1], [], []>} : vector<32x32xbf16>, vector<32x8xbf16>, vector<32x8xf32> -> vector<32x8xf32>
    %c0_54 = arith.constant 0 : index
    %c1_55 = arith.constant 1 : index
    %c0_56 = arith.constant 0 : index
    %c0_57 = arith.constant 0 : index
    %78 = vector.load %arg9[%c0_54, %c1_55, %c0_56, %c0_57] : memref<3x4x1x8xf32, #tpu.memory_space<vmem>>, vector<1x1x1x8xf32>
    %79 = vector.shape_cast %78 : vector<1x1x1x8xf32> to vector<1x8xf32>
    %80 = vector.broadcast %79 : vector<1x8xf32> to vector<32x8xf32>
    %81 = arith.addf %77, %80 : vector<32x8xf32>
    %82 = arith.truncf %81 : vector<32x8xf32> to vector<32x8xbf16>
    %c1_58 = arith.constant 1 : index
    %c1_59 = arith.constant 1 : index
    %c0_60 = arith.constant 0 : index
    %c0_61 = arith.constant 0 : index
    %83 = vector.load %arg8[%c1_58, %c1_59, %c0_60, %c0_61] : memref<3x4x32x8xbf16, #tpu.memory_space<vmem>>, vector<1x1x32x8xbf16>
    %84 = vector.shape_cast %83 : vector<1x1x32x8xbf16> to vector<32x8xbf16>
    %cst_62 = arith.constant dense<0.000000e+00> : vector<32x8xf32>
    %85 = tpu.matmul %36, %84, %cst_62 {dimension_numbers = #tpu.dot_dimension_numbers<[1], [0], [0], [1], [0, 0, 1, 1], [], []>} : vector<32x32xbf16>, vector<32x8xbf16>, vector<32x8xf32> -> vector<32x8xf32>
    %c1_63 = arith.constant 1 : index
    %c1_64 = arith.constant 1 : index
    %c0_65 = arith.constant 0 : index
    %c0_66 = arith.constant 0 : index
    %86 = vector.load %arg9[%c1_63, %c1_64, %c0_65, %c0_66] : memref<3x4x1x8xf32, #tpu.memory_space<vmem>>, vector<1x1x1x8xf32>
    %87 = vector.shape_cast %86 : vector<1x1x1x8xf32> to vector<1x8xf32>
    %88 = vector.broadcast %87 : vector<1x8xf32> to vector<32x8xf32>
    %89 = arith.addf %85, %88 : vector<32x8xf32>
    %90 = arith.truncf %89 : vector<32x8xf32> to vector<32x8xbf16>
    %c2_67 = arith.constant 2 : index
    %c1_68 = arith.constant 1 : index
    %c0_69 = arith.constant 0 : index
    %c0_70 = arith.constant 0 : index
    %91 = vector.load %arg8[%c2_67, %c1_68, %c0_69, %c0_70] : memref<3x4x32x8xbf16, #tpu.memory_space<vmem>>, vector<1x1x32x8xbf16>
    %92 = vector.shape_cast %91 : vector<1x1x32x8xbf16> to vector<32x8xbf16>
    %cst_71 = arith.constant dense<0.000000e+00> : vector<32x8xf32>
    %93 = tpu.matmul %36, %92, %cst_71 {dimension_numbers = #tpu.dot_dimension_numbers<[1], [0], [0], [1], [0, 0, 1, 1], [], []>} : vector<32x32xbf16>, vector<32x8xbf16>, vector<32x8xf32> -> vector<32x8xf32>
    %c2_72 = arith.constant 2 : index
    %c1_73 = arith.constant 1 : index
    %c0_74 = arith.constant 0 : index
    %c0_75 = arith.constant 0 : index
    %94 = vector.load %arg9[%c2_72, %c1_73, %c0_74, %c0_75] : memref<3x4x1x8xf32, #tpu.memory_space<vmem>>, vector<1x1x1x8xf32>
    %95 = vector.shape_cast %94 : vector<1x1x1x8xf32> to vector<1x8xf32>
    %96 = vector.broadcast %95 : vector<1x8xf32> to vector<32x8xf32>
    %97 = arith.addf %93, %96 : vector<32x8xf32>
    %98 = arith.truncf %97 : vector<32x8xf32> to vector<32x8xbf16>
    %cst_76 = arith.constant dense<0.000000e+00> : vector<32x32xf32>
    %99 = tpu.matmul %82, %90, %cst_76 {dimension_numbers = #tpu.dot_dimension_numbers<[1], [1], [0], [0], [0, 0, 1, 0], [], []>} : vector<32x8xbf16>, vector<32x8xbf16>, vector<32x32xf32> -> vector<32x32xf32>
    %100 = arith.addf %99, %6 : vector<32x32xf32>
    %cst_77 = arith.constant dense<0xFF800000> : vector<32xf32>
    %101 = vector.multi_reduction <maximumf>, %100, %cst_77 [1] : vector<32x32xf32> to vector<32xf32>
    %102 = vector.shape_cast %101 : vector<32xf32> to vector<32x1xf32>
    %103 = vector.broadcast %102 : vector<32x1xf32> to vector<32x32xf32>
    %104 = arith.subf %100, %103 : vector<32x32xf32>
    %105 = math.exp %104 : vector<32x32xf32>
    %cst_78 = arith.constant dense<0.000000e+00> : vector<32xf32>
    %106 = vector.multi_reduction <add>, %105, %cst_78 [1] : vector<32x32xf32> to vector<32xf32>
    %107 = vector.shape_cast %106 : vector<32xf32> to vector<32x1xf32>
    %108 = tpu.reciprocal %107 : vector<32x1xf32> -> vector<32x1xf32>
    %109 = vector.broadcast %108 : vector<32x1xf32> to vector<32x32xf32>
    %110 = arith.mulf %105, %109 : vector<32x32xf32>
    %111 = arith.truncf %110 : vector<32x32xf32> to vector<32x32xbf16>
    %cst_79 = arith.constant dense<0.000000e+00> : vector<32x8xf32>
    %112 = tpu.matmul %111, %98, %cst_79 {dimension_numbers = #tpu.dot_dimension_numbers<[1], [0], [0], [1], [0, 0, 1, 1], [], []>} : vector<32x32xbf16>, vector<32x8xbf16>, vector<32x8xf32> -> vector<32x8xf32>
    %c0_80 = arith.constant 0 : index
    %c2_81 = arith.constant 2 : index
    %c0_82 = arith.constant 0 : index
    %c0_83 = arith.constant 0 : index
    %113 = vector.load %arg8[%c0_80, %c2_81, %c0_82, %c0_83] : memref<3x4x32x8xbf16, #tpu.memory_space<vmem>>, vector<1x1x32x8xbf16>
    %114 = vector.shape_cast %113 : vector<1x1x32x8xbf16> to vector<32x8xbf16>
    %cst_84 = arith.constant dense<0.000000e+00> : vector<32x8xf32>
    %115 = tpu.matmul %36, %114, %cst_84 {dimension_numbers = #tpu.dot_dimension_numbers<[1], [0], [0], [1], [0, 0, 1, 1], [], []>} : vector<32x32xbf16>, vector<32x8xbf16>, vector<32x8xf32> -> vector<32x8xf32>
    %c0_85 = arith.constant 0 : index
    %c2_86 = arith.constant 2 : index
    %c0_87 = arith.constant 0 : index
    %c0_88 = arith.constant 0 : index
    %116 = vector.load %arg9[%c0_85, %c2_86, %c0_87, %c0_88] : memref<3x4x1x8xf32, #tpu.memory_space<vmem>>, vector<1x1x1x8xf32>
    %117 = vector.shape_cast %116 : vector<1x1x1x8xf32> to vector<1x8xf32>
    %118 = vector.broadcast %117 : vector<1x8xf32> to vector<32x8xf32>
    %119 = arith.addf %115, %118 : vector<32x8xf32>
    %120 = arith.truncf %119 : vector<32x8xf32> to vector<32x8xbf16>
    %c1_89 = arith.constant 1 : index
    %c2_90 = arith.constant 2 : index
    %c0_91 = arith.constant 0 : index
    %c0_92 = arith.constant 0 : index
    %121 = vector.load %arg8[%c1_89, %c2_90, %c0_91, %c0_92] : memref<3x4x32x8xbf16, #tpu.memory_space<vmem>>, vector<1x1x32x8xbf16>
    %122 = vector.shape_cast %121 : vector<1x1x32x8xbf16> to vector<32x8xbf16>
    %cst_93 = arith.constant dense<0.000000e+00> : vector<32x8xf32>
    %123 = tpu.matmul %36, %122, %cst_93 {dimension_numbers = #tpu.dot_dimension_numbers<[1], [0], [0], [1], [0, 0, 1, 1], [], []>} : vector<32x32xbf16>, vector<32x8xbf16>, vector<32x8xf32> -> vector<32x8xf32>
    %c1_94 = arith.constant 1 : index
    %c2_95 = arith.constant 2 : index
    %c0_96 = arith.constant 0 : index
    %c0_97 = arith.constant 0 : index
    %124 = vector.load %arg9[%c1_94, %c2_95, %c0_96, %c0_97] : memref<3x4x1x8xf32, #tpu.memory_space<vmem>>, vector<1x1x1x8xf32>
    %125 = vector.shape_cast %124 : vector<1x1x1x8xf32> to vector<1x8xf32>
    %126 = vector.broadcast %125 : vector<1x8xf32> to vector<32x8xf32>
    %127 = arith.addf %123, %126 : vector<32x8xf32>
    %128 = arith.truncf %127 : vector<32x8xf32> to vector<32x8xbf16>
    %c2_98 = arith.constant 2 : index
    %c2_99 = arith.constant 2 : index
    %c0_100 = arith.constant 0 : index
    %c0_101 = arith.constant 0 : index
    %129 = vector.load %arg8[%c2_98, %c2_99, %c0_100, %c0_101] : memref<3x4x32x8xbf16, #tpu.memory_space<vmem>>, vector<1x1x32x8xbf16>
    %130 = vector.shape_cast %129 : vector<1x1x32x8xbf16> to vector<32x8xbf16>
    %cst_102 = arith.constant dense<0.000000e+00> : vector<32x8xf32>
    %131 = tpu.matmul %36, %130, %cst_102 {dimension_numbers = #tpu.dot_dimension_numbers<[1], [0], [0], [1], [0, 0, 1, 1], [], []>} : vector<32x32xbf16>, vector<32x8xbf16>, vector<32x8xf32> -> vector<32x8xf32>
    %c2_103 = arith.constant 2 : index
    %c2_104 = arith.constant 2 : index
    %c0_105 = arith.constant 0 : index
    %c0_106 = arith.constant 0 : index
    %132 = vector.load %arg9[%c2_103, %c2_104, %c0_105, %c0_106] : memref<3x4x1x8xf32, #tpu.memory_space<vmem>>, vector<1x1x1x8xf32>
    %133 = vector.shape_cast %132 : vector<1x1x1x8xf32> to vector<1x8xf32>
    %134 = vector.broadcast %133 : vector<1x8xf32> to vector<32x8xf32>
    %135 = arith.addf %131, %134 : vector<32x8xf32>
    %136 = arith.truncf %135 : vector<32x8xf32> to vector<32x8xbf16>
    %cst_107 = arith.constant dense<0.000000e+00> : vector<32x32xf32>
    %137 = tpu.matmul %120, %128, %cst_107 {dimension_numbers = #tpu.dot_dimension_numbers<[1], [1], [0], [0], [0, 0, 1, 0], [], []>} : vector<32x8xbf16>, vector<32x8xbf16>, vector<32x32xf32> -> vector<32x32xf32>
    %138 = arith.addf %137, %6 : vector<32x32xf32>
    %cst_108 = arith.constant dense<0xFF800000> : vector<32xf32>
    %139 = vector.multi_reduction <maximumf>, %138, %cst_108 [1] : vector<32x32xf32> to vector<32xf32>
    %140 = vector.shape_cast %139 : vector<32xf32> to vector<32x1xf32>
    %141 = vector.broadcast %140 : vector<32x1xf32> to vector<32x32xf32>
    %142 = arith.subf %138, %141 : vector<32x32xf32>
    %143 = math.exp %142 : vector<32x32xf32>
    %cst_109 = arith.constant dense<0.000000e+00> : vector<32xf32>
    %144 = vector.multi_reduction <add>, %143, %cst_109 [1] : vector<32x32xf32> to vector<32xf32>
    %145 = vector.shape_cast %144 : vector<32xf32> to vector<32x1xf32>
    %146 = tpu.reciprocal %145 : vector<32x1xf32> -> vector<32x1xf32>
    %147 = vector.broadcast %146 : vector<32x1xf32> to vector<32x32xf32>
    %148 = arith.mulf %143, %147 : vector<32x32xf32>
    %149 = arith.truncf %148 : vector<32x32xf32> to vector<32x32xbf16>
    %cst_110 = arith.constant dense<0.000000e+00> : vector<32x8xf32>
    %150 = tpu.matmul %149, %136, %cst_110 {dimension_numbers = #tpu.dot_dimension_numbers<[1], [0], [0], [1], [0, 0, 1, 1], [], []>} : vector<32x32xbf16>, vector<32x8xbf16>, vector<32x8xf32> -> vector<32x8xf32>
    %c0_111 = arith.constant 0 : index
    %c3 = arith.constant 3 : index
    %c0_112 = arith.constant 0 : index
    %c0_113 = arith.constant 0 : index
    %151 = vector.load %arg8[%c0_111, %c3, %c0_112, %c0_113] : memref<3x4x32x8xbf16, #tpu.memory_space<vmem>>, vector<1x1x32x8xbf16>
    %152 = vector.shape_cast %151 : vector<1x1x32x8xbf16> to vector<32x8xbf16>
    %cst_114 = arith.constant dense<0.000000e+00> : vector<32x8xf32>
    %153 = tpu.matmul %36, %152, %cst_114 {dimension_numbers = #tpu.dot_dimension_numbers<[1], [0], [0], [1], [0, 0, 1, 1], [], []>} : vector<32x32xbf16>, vector<32x8xbf16>, vector<32x8xf32> -> vector<32x8xf32>
    %c0_115 = arith.constant 0 : index
    %c3_116 = arith.constant 3 : index
    %c0_117 = arith.constant 0 : index
    %c0_118 = arith.constant 0 : index
    %154 = vector.load %arg9[%c0_115, %c3_116, %c0_117, %c0_118] : memref<3x4x1x8xf32, #tpu.memory_space<vmem>>, vector<1x1x1x8xf32>
    %155 = vector.shape_cast %154 : vector<1x1x1x8xf32> to vector<1x8xf32>
    %156 = vector.broadcast %155 : vector<1x8xf32> to vector<32x8xf32>
    %157 = arith.addf %153, %156 : vector<32x8xf32>
    %158 = arith.truncf %157 : vector<32x8xf32> to vector<32x8xbf16>
    %c1_119 = arith.constant 1 : index
    %c3_120 = arith.constant 3 : index
    %c0_121 = arith.constant 0 : index
    %c0_122 = arith.constant 0 : index
    %159 = vector.load %arg8[%c1_119, %c3_120, %c0_121, %c0_122] : memref<3x4x32x8xbf16, #tpu.memory_space<vmem>>, vector<1x1x32x8xbf16>
    %160 = vector.shape_cast %159 : vector<1x1x32x8xbf16> to vector<32x8xbf16>
    %cst_123 = arith.constant dense<0.000000e+00> : vector<32x8xf32>
    %161 = tpu.matmul %36, %160, %cst_123 {dimension_numbers = #tpu.dot_dimension_numbers<[1], [0], [0], [1], [0, 0, 1, 1], [], []>} : vector<32x32xbf16>, vector<32x8xbf16>, vector<32x8xf32> -> vector<32x8xf32>
    %c1_124 = arith.constant 1 : index
    %c3_125 = arith.constant 3 : index
    %c0_126 = arith.constant 0 : index
    %c0_127 = arith.constant 0 : index
    %162 = vector.load %arg9[%c1_124, %c3_125, %c0_126, %c0_127] : memref<3x4x1x8xf32, #tpu.memory_space<vmem>>, vector<1x1x1x8xf32>
    %163 = vector.shape_cast %162 : vector<1x1x1x8xf32> to vector<1x8xf32>
    %164 = vector.broadcast %163 : vector<1x8xf32> to vector<32x8xf32>
    %165 = arith.addf %161, %164 : vector<32x8xf32>
    %166 = arith.truncf %165 : vector<32x8xf32> to vector<32x8xbf16>
    %c2_128 = arith.constant 2 : index
    %c3_129 = arith.constant 3 : index
    %c0_130 = arith.constant 0 : index
    %c0_131 = arith.constant 0 : index
    %167 = vector.load %arg8[%c2_128, %c3_129, %c0_130, %c0_131] : memref<3x4x32x8xbf16, #tpu.memory_space<vmem>>, vector<1x1x32x8xbf16>
    %168 = vector.shape_cast %167 : vector<1x1x32x8xbf16> to vector<32x8xbf16>
    %cst_132 = arith.constant dense<0.000000e+00> : vector<32x8xf32>
    %169 = tpu.matmul %36, %168, %cst_132 {dimension_numbers = #tpu.dot_dimension_numbers<[1], [0], [0], [1], [0, 0, 1, 1], [], []>} : vector<32x32xbf16>, vector<32x8xbf16>, vector<32x8xf32> -> vector<32x8xf32>
    %c2_133 = arith.constant 2 : index
    %c3_134 = arith.constant 3 : index
    %c0_135 = arith.constant 0 : index
    %c0_136 = arith.constant 0 : index
    %170 = vector.load %arg9[%c2_133, %c3_134, %c0_135, %c0_136] : memref<3x4x1x8xf32, #tpu.memory_space<vmem>>, vector<1x1x1x8xf32>
    %171 = vector.shape_cast %170 : vector<1x1x1x8xf32> to vector<1x8xf32>
    %172 = vector.broadcast %171 : vector<1x8xf32> to vector<32x8xf32>
    %173 = arith.addf %169, %172 : vector<32x8xf32>
    %174 = arith.truncf %173 : vector<32x8xf32> to vector<32x8xbf16>
    %cst_137 = arith.constant dense<0.000000e+00> : vector<32x32xf32>
    %175 = tpu.matmul %158, %166, %cst_137 {dimension_numbers = #tpu.dot_dimension_numbers<[1], [1], [0], [0], [0, 0, 1, 0], [], []>} : vector<32x8xbf16>, vector<32x8xbf16>, vector<32x32xf32> -> vector<32x32xf32>
    %176 = arith.addf %175, %6 : vector<32x32xf32>
    %cst_138 = arith.constant dense<0xFF800000> : vector<32xf32>
    %177 = vector.multi_reduction <maximumf>, %176, %cst_138 [1] : vector<32x32xf32> to vector<32xf32>
    %178 = vector.shape_cast %177 : vector<32xf32> to vector<32x1xf32>
    %179 = vector.broadcast %178 : vector<32x1xf32> to vector<32x32xf32>
    %180 = arith.subf %176, %179 : vector<32x32xf32>
    %181 = math.exp %180 : vector<32x32xf32>
    %cst_139 = arith.constant dense<0.000000e+00> : vector<32xf32>
    %182 = vector.multi_reduction <add>, %181, %cst_139 [1] : vector<32x32xf32> to vector<32xf32>
    %183 = vector.shape_cast %182 : vector<32xf32> to vector<32x1xf32>
    %184 = tpu.reciprocal %183 : vector<32x1xf32> -> vector<32x1xf32>
    %185 = vector.broadcast %184 : vector<32x1xf32> to vector<32x32xf32>
    %186 = arith.mulf %181, %185 : vector<32x32xf32>
    %187 = arith.truncf %186 : vector<32x32xf32> to vector<32x32xbf16>
    %cst_140 = arith.constant dense<0.000000e+00> : vector<32x8xf32>
    %188 = tpu.matmul %187, %174, %cst_140 {dimension_numbers = #tpu.dot_dimension_numbers<[1], [0], [0], [1], [0, 0, 1, 1], [], []>} : vector<32x32xbf16>, vector<32x8xbf16>, vector<32x8xf32> -> vector<32x8xf32>
    %189 = tpu.concatenate %74, %112, %150, %188 in 1 : vector<32x8xf32>, vector<32x8xf32>, vector<32x8xf32>, vector<32x8xf32> -> vector<32x32xf32>
    %190 = arith.truncf %189 : vector<32x32xf32> to vector<32x32xbf16>
    %c0_141 = arith.constant 0 : index
    %c0_142 = arith.constant 0 : index
    %191 = vector.load %arg10[%c0_141, %c0_142] : memref<32x32xbf16, #tpu.memory_space<vmem>>, vector<32x32xbf16>
    %cst_143 = arith.constant dense<0.000000e+00> : vector<32x32xf32>
    %192 = tpu.matmul %190, %191, %cst_143 {dimension_numbers = #tpu.dot_dimension_numbers<[1], [0], [0], [1], [0, 0, 1, 1], [], []>} : vector<32x32xbf16>, vector<32x32xbf16>, vector<32x32xf32> -> vector<32x32xf32>
    %c0_144 = arith.constant 0 : index
    %c0_145 = arith.constant 0 : index
    %193 = vector.load %arg11[%c0_144, %c0_145] : memref<1x32xf32, #tpu.memory_space<vmem>>, vector<1x32xf32>
    %194 = vector.broadcast %193 : vector<1x32xf32> to vector<32x32xf32>
    %195 = arith.addf %192, %194 : vector<32x32xf32>
    %196 = arith.addf %1, %195 : vector<32x32xf32>
    %cst_146 = arith.constant dense<0.000000e+00> : vector<32xf32>
    %197 = vector.multi_reduction <add>, %196, %cst_146 [1] : vector<32x32xf32> to vector<32xf32>
    %198 = vector.shape_cast %197 : vector<32xf32> to vector<32x1xf32>
    %cst_147 = arith.constant 3.200000e+01 : f32
    %199 = vector.broadcast %cst_147 : f32 to vector<32x1xf32>
    %200 = arith.divf %198, %199 : vector<32x1xf32>
    %201 = vector.broadcast %200 : vector<32x1xf32> to vector<32x32xf32>
    %202 = arith.subf %196, %201 : vector<32x32xf32>
    %203 = arith.mulf %202, %202 : vector<32x32xf32>
    %cst_148 = arith.constant dense<0.000000e+00> : vector<32xf32>
    %204 = vector.multi_reduction <add>, %203, %cst_148 [1] : vector<32x32xf32> to vector<32xf32>
    %205 = vector.shape_cast %204 : vector<32xf32> to vector<32x1xf32>
    %cst_149 = arith.constant 3.200000e+01 : f32
    %206 = vector.broadcast %cst_149 : f32 to vector<32x1xf32>
    %207 = arith.divf %205, %206 : vector<32x1xf32>
    %208 = vector.broadcast %200 : vector<32x1xf32> to vector<32x32xf32>
    %209 = arith.subf %196, %208 : vector<32x32xf32>
    %cst_150 = arith.constant 9.99999974E-6 : f32
    %210 = vector.broadcast %cst_150 : f32 to vector<32x1xf32>
    %211 = arith.addf %207, %210 : vector<32x1xf32>
    %212 = math.rsqrt %211 : vector<32x1xf32>
    %213 = vector.broadcast %212 : vector<32x1xf32> to vector<32x32xf32>
    %214 = arith.mulf %209, %213 : vector<32x32xf32>
    %c0_151 = arith.constant 0 : index
    %c0_152 = arith.constant 0 : index
    %215 = vector.load %arg12[%c0_151, %c0_152] : memref<1x32xf32, #tpu.memory_space<vmem>>, vector<1x32xf32>
    %216 = vector.broadcast %215 : vector<1x32xf32> to vector<32x32xf32>
    %217 = arith.mulf %214, %216 : vector<32x32xf32>
    %c0_153 = arith.constant 0 : index
    %c0_154 = arith.constant 0 : index
    %218 = vector.load %arg13[%c0_153, %c0_154] : memref<1x32xf32, #tpu.memory_space<vmem>>, vector<1x32xf32>
    %219 = vector.broadcast %218 : vector<1x32xf32> to vector<32x32xf32>
    %220 = arith.addf %217, %219 : vector<32x32xf32>
    %221 = arith.truncf %220 : vector<32x32xf32> to vector<32x32xbf16>
    %c0_155 = arith.constant 0 : index
    %c0_156 = arith.constant 0 : index
    %c0_157 = arith.constant 0 : index
    %c0_158 = arith.constant 0 : index
    %222 = vector.load %arg14[%c0_155, %c0_156, %c0_157, %c0_158] : memref<3x4x32x8xbf16, #tpu.memory_space<vmem>>, vector<1x1x32x8xbf16>
    %223 = vector.shape_cast %222 : vector<1x1x32x8xbf16> to vector<32x8xbf16>
    %cst_159 = arith.constant dense<0.000000e+00> : vector<32x8xf32>
    %224 = tpu.matmul %221, %223, %cst_159 {dimension_numbers = #tpu.dot_dimension_numbers<[1], [0], [0], [1], [0, 0, 1, 1], [], []>} : vector<32x32xbf16>, vector<32x8xbf16>, vector<32x8xf32> -> vector<32x8xf32>
    %c0_160 = arith.constant 0 : index
    %c0_161 = arith.constant 0 : index
    %c0_162 = arith.constant 0 : index
    %c0_163 = arith.constant 0 : index
    %225 = vector.load %arg15[%c0_160, %c0_161, %c0_162, %c0_163] : memref<3x4x1x8xf32, #tpu.memory_space<vmem>>, vector<1x1x1x8xf32>
    %226 = vector.shape_cast %225 : vector<1x1x1x8xf32> to vector<1x8xf32>
    %227 = vector.broadcast %226 : vector<1x8xf32> to vector<32x8xf32>
    %228 = arith.addf %224, %227 : vector<32x8xf32>
    %229 = arith.truncf %228 : vector<32x8xf32> to vector<32x8xbf16>
    %c1_164 = arith.constant 1 : index
    %c0_165 = arith.constant 0 : index
    %c0_166 = arith.constant 0 : index
    %c0_167 = arith.constant 0 : index
    %230 = vector.load %arg14[%c1_164, %c0_165, %c0_166, %c0_167] : memref<3x4x32x8xbf16, #tpu.memory_space<vmem>>, vector<1x1x32x8xbf16>
    %231 = vector.shape_cast %230 : vector<1x1x32x8xbf16> to vector<32x8xbf16>
    %cst_168 = arith.constant dense<0.000000e+00> : vector<32x8xf32>
    %232 = tpu.matmul %221, %231, %cst_168 {dimension_numbers = #tpu.dot_dimension_numbers<[1], [0], [0], [1], [0, 0, 1, 1], [], []>} : vector<32x32xbf16>, vector<32x8xbf16>, vector<32x8xf32> -> vector<32x8xf32>
    %c1_169 = arith.constant 1 : index
    %c0_170 = arith.constant 0 : index
    %c0_171 = arith.constant 0 : index
    %c0_172 = arith.constant 0 : index
    %233 = vector.load %arg15[%c1_169, %c0_170, %c0_171, %c0_172] : memref<3x4x1x8xf32, #tpu.memory_space<vmem>>, vector<1x1x1x8xf32>
    %234 = vector.shape_cast %233 : vector<1x1x1x8xf32> to vector<1x8xf32>
    %235 = vector.broadcast %234 : vector<1x8xf32> to vector<32x8xf32>
    %236 = arith.addf %232, %235 : vector<32x8xf32>
    %237 = arith.truncf %236 : vector<32x8xf32> to vector<32x8xbf16>
    %c2_173 = arith.constant 2 : index
    %c0_174 = arith.constant 0 : index
    %c0_175 = arith.constant 0 : index
    %c0_176 = arith.constant 0 : index
    %238 = vector.load %arg14[%c2_173, %c0_174, %c0_175, %c0_176] : memref<3x4x32x8xbf16, #tpu.memory_space<vmem>>, vector<1x1x32x8xbf16>
    %239 = vector.shape_cast %238 : vector<1x1x32x8xbf16> to vector<32x8xbf16>
    %cst_177 = arith.constant dense<0.000000e+00> : vector<32x8xf32>
    %240 = tpu.matmul %221, %239, %cst_177 {dimension_numbers = #tpu.dot_dimension_numbers<[1], [0], [0], [1], [0, 0, 1, 1], [], []>} : vector<32x32xbf16>, vector<32x8xbf16>, vector<32x8xf32> -> vector<32x8xf32>
    %c2_178 = arith.constant 2 : index
    %c0_179 = arith.constant 0 : index
    %c0_180 = arith.constant 0 : index
    %c0_181 = arith.constant 0 : index
    %241 = vector.load %arg15[%c2_178, %c0_179, %c0_180, %c0_181] : memref<3x4x1x8xf32, #tpu.memory_space<vmem>>, vector<1x1x1x8xf32>
    %242 = vector.shape_cast %241 : vector<1x1x1x8xf32> to vector<1x8xf32>
    %243 = vector.broadcast %242 : vector<1x8xf32> to vector<32x8xf32>
    %244 = arith.addf %240, %243 : vector<32x8xf32>
    %245 = arith.truncf %244 : vector<32x8xf32> to vector<32x8xbf16>
    %cst_182 = arith.constant dense<0.000000e+00> : vector<32x32xf32>
    %246 = tpu.matmul %229, %237, %cst_182 {dimension_numbers = #tpu.dot_dimension_numbers<[1], [1], [0], [0], [0, 0, 1, 0], [], []>} : vector<32x8xbf16>, vector<32x8xbf16>, vector<32x32xf32> -> vector<32x32xf32>
    %247 = arith.addf %246, %11 : vector<32x32xf32>
    %cst_183 = arith.constant dense<0xFF800000> : vector<32xf32>
    %248 = vector.multi_reduction <maximumf>, %247, %cst_183 [1] : vector<32x32xf32> to vector<32xf32>
    %249 = vector.shape_cast %248 : vector<32xf32> to vector<32x1xf32>
    %250 = vector.broadcast %249 : vector<32x1xf32> to vector<32x32xf32>
    %251 = arith.subf %247, %250 : vector<32x32xf32>
    %252 = math.exp %251 : vector<32x32xf32>
    %cst_184 = arith.constant dense<0.000000e+00> : vector<32xf32>
    %253 = vector.multi_reduction <add>, %252, %cst_184 [1] : vector<32x32xf32> to vector<32xf32>
    %254 = vector.shape_cast %253 : vector<32xf32> to vector<32x1xf32>
    %255 = tpu.reciprocal %254 : vector<32x1xf32> -> vector<32x1xf32>
    %256 = vector.broadcast %255 : vector<32x1xf32> to vector<32x32xf32>
    %257 = arith.mulf %252, %256 : vector<32x32xf32>
    %258 = arith.truncf %257 : vector<32x32xf32> to vector<32x32xbf16>
    %cst_185 = arith.constant dense<0.000000e+00> : vector<32x8xf32>
    %259 = tpu.matmul %258, %245, %cst_185 {dimension_numbers = #tpu.dot_dimension_numbers<[1], [0], [0], [1], [0, 0, 1, 1], [], []>} : vector<32x32xbf16>, vector<32x8xbf16>, vector<32x8xf32> -> vector<32x8xf32>
    %c0_186 = arith.constant 0 : index
    %c1_187 = arith.constant 1 : index
    %c0_188 = arith.constant 0 : index
    %c0_189 = arith.constant 0 : index
    %260 = vector.load %arg14[%c0_186, %c1_187, %c0_188, %c0_189] : memref<3x4x32x8xbf16, #tpu.memory_space<vmem>>, vector<1x1x32x8xbf16>
    %261 = vector.shape_cast %260 : vector<1x1x32x8xbf16> to vector<32x8xbf16>
    %cst_190 = arith.constant dense<0.000000e+00> : vector<32x8xf32>
    %262 = tpu.matmul %221, %261, %cst_190 {dimension_numbers = #tpu.dot_dimension_numbers<[1], [0], [0], [1], [0, 0, 1, 1], [], []>} : vector<32x32xbf16>, vector<32x8xbf16>, vector<32x8xf32> -> vector<32x8xf32>
    %c0_191 = arith.constant 0 : index
    %c1_192 = arith.constant 1 : index
    %c0_193 = arith.constant 0 : index
    %c0_194 = arith.constant 0 : index
    %263 = vector.load %arg15[%c0_191, %c1_192, %c0_193, %c0_194] : memref<3x4x1x8xf32, #tpu.memory_space<vmem>>, vector<1x1x1x8xf32>
    %264 = vector.shape_cast %263 : vector<1x1x1x8xf32> to vector<1x8xf32>
    %265 = vector.broadcast %264 : vector<1x8xf32> to vector<32x8xf32>
    %266 = arith.addf %262, %265 : vector<32x8xf32>
    %267 = arith.truncf %266 : vector<32x8xf32> to vector<32x8xbf16>
    %c1_195 = arith.constant 1 : index
    %c1_196 = arith.constant 1 : index
    %c0_197 = arith.constant 0 : index
    %c0_198 = arith.constant 0 : index
    %268 = vector.load %arg14[%c1_195, %c1_196, %c0_197, %c0_198] : memref<3x4x32x8xbf16, #tpu.memory_space<vmem>>, vector<1x1x32x8xbf16>
    %269 = vector.shape_cast %268 : vector<1x1x32x8xbf16> to vector<32x8xbf16>
    %cst_199 = arith.constant dense<0.000000e+00> : vector<32x8xf32>
    %270 = tpu.matmul %221, %269, %cst_199 {dimension_numbers = #tpu.dot_dimension_numbers<[1], [0], [0], [1], [0, 0, 1, 1], [], []>} : vector<32x32xbf16>, vector<32x8xbf16>, vector<32x8xf32> -> vector<32x8xf32>
    %c1_200 = arith.constant 1 : index
    %c1_201 = arith.constant 1 : index
    %c0_202 = arith.constant 0 : index
    %c0_203 = arith.constant 0 : index
    %271 = vector.load %arg15[%c1_200, %c1_201, %c0_202, %c0_203] : memref<3x4x1x8xf32, #tpu.memory_space<vmem>>, vector<1x1x1x8xf32>
    %272 = vector.shape_cast %271 : vector<1x1x1x8xf32> to vector<1x8xf32>
    %273 = vector.broadcast %272 : vector<1x8xf32> to vector<32x8xf32>
    %274 = arith.addf %270, %273 : vector<32x8xf32>
    %275 = arith.truncf %274 : vector<32x8xf32> to vector<32x8xbf16>
    %c2_204 = arith.constant 2 : index
    %c1_205 = arith.constant 1 : index
    %c0_206 = arith.constant 0 : index
    %c0_207 = arith.constant 0 : index
    %276 = vector.load %arg14[%c2_204, %c1_205, %c0_206, %c0_207] : memref<3x4x32x8xbf16, #tpu.memory_space<vmem>>, vector<1x1x32x8xbf16>
    %277 = vector.shape_cast %276 : vector<1x1x32x8xbf16> to vector<32x8xbf16>
    %cst_208 = arith.constant dense<0.000000e+00> : vector<32x8xf32>
    %278 = tpu.matmul %221, %277, %cst_208 {dimension_numbers = #tpu.dot_dimension_numbers<[1], [0], [0], [1], [0, 0, 1, 1], [], []>} : vector<32x32xbf16>, vector<32x8xbf16>, vector<32x8xf32> -> vector<32x8xf32>
    %c2_209 = arith.constant 2 : index
    %c1_210 = arith.constant 1 : index
    %c0_211 = arith.constant 0 : index
    %c0_212 = arith.constant 0 : index
    %279 = vector.load %arg15[%c2_209, %c1_210, %c0_211, %c0_212] : memref<3x4x1x8xf32, #tpu.memory_space<vmem>>, vector<1x1x1x8xf32>
    %280 = vector.shape_cast %279 : vector<1x1x1x8xf32> to vector<1x8xf32>
    %281 = vector.broadcast %280 : vector<1x8xf32> to vector<32x8xf32>
    %282 = arith.addf %278, %281 : vector<32x8xf32>
    %283 = arith.truncf %282 : vector<32x8xf32> to vector<32x8xbf16>
    %cst_213 = arith.constant dense<0.000000e+00> : vector<32x32xf32>
    %284 = tpu.matmul %267, %275, %cst_213 {dimension_numbers = #tpu.dot_dimension_numbers<[1], [1], [0], [0], [0, 0, 1, 0], [], []>} : vector<32x8xbf16>, vector<32x8xbf16>, vector<32x32xf32> -> vector<32x32xf32>
    %285 = arith.addf %284, %11 : vector<32x32xf32>
    %cst_214 = arith.constant dense<0xFF800000> : vector<32xf32>
    %286 = vector.multi_reduction <maximumf>, %285, %cst_214 [1] : vector<32x32xf32> to vector<32xf32>
    %287 = vector.shape_cast %286 : vector<32xf32> to vector<32x1xf32>
    %288 = vector.broadcast %287 : vector<32x1xf32> to vector<32x32xf32>
    %289 = arith.subf %285, %288 : vector<32x32xf32>
    %290 = math.exp %289 : vector<32x32xf32>
    %cst_215 = arith.constant dense<0.000000e+00> : vector<32xf32>
    %291 = vector.multi_reduction <add>, %290, %cst_215 [1] : vector<32x32xf32> to vector<32xf32>
    %292 = vector.shape_cast %291 : vector<32xf32> to vector<32x1xf32>
    %293 = tpu.reciprocal %292 : vector<32x1xf32> -> vector<32x1xf32>
    %294 = vector.broadcast %293 : vector<32x1xf32> to vector<32x32xf32>
    %295 = arith.mulf %290, %294 : vector<32x32xf32>
    %296 = arith.truncf %295 : vector<32x32xf32> to vector<32x32xbf16>
    %cst_216 = arith.constant dense<0.000000e+00> : vector<32x8xf32>
    %297 = tpu.matmul %296, %283, %cst_216 {dimension_numbers = #tpu.dot_dimension_numbers<[1], [0], [0], [1], [0, 0, 1, 1], [], []>} : vector<32x32xbf16>, vector<32x8xbf16>, vector<32x8xf32> -> vector<32x8xf32>
    %c0_217 = arith.constant 0 : index
    %c2_218 = arith.constant 2 : index
    %c0_219 = arith.constant 0 : index
    %c0_220 = arith.constant 0 : index
    %298 = vector.load %arg14[%c0_217, %c2_218, %c0_219, %c0_220] : memref<3x4x32x8xbf16, #tpu.memory_space<vmem>>, vector<1x1x32x8xbf16>
    %299 = vector.shape_cast %298 : vector<1x1x32x8xbf16> to vector<32x8xbf16>
    %cst_221 = arith.constant dense<0.000000e+00> : vector<32x8xf32>
    %300 = tpu.matmul %221, %299, %cst_221 {dimension_numbers = #tpu.dot_dimension_numbers<[1], [0], [0], [1], [0, 0, 1, 1], [], []>} : vector<32x32xbf16>, vector<32x8xbf16>, vector<32x8xf32> -> vector<32x8xf32>
    %c0_222 = arith.constant 0 : index
    %c2_223 = arith.constant 2 : index
    %c0_224 = arith.constant 0 : index
    %c0_225 = arith.constant 0 : index
    %301 = vector.load %arg15[%c0_222, %c2_223, %c0_224, %c0_225] : memref<3x4x1x8xf32, #tpu.memory_space<vmem>>, vector<1x1x1x8xf32>
    %302 = vector.shape_cast %301 : vector<1x1x1x8xf32> to vector<1x8xf32>
    %303 = vector.broadcast %302 : vector<1x8xf32> to vector<32x8xf32>
    %304 = arith.addf %300, %303 : vector<32x8xf32>
    %305 = arith.truncf %304 : vector<32x8xf32> to vector<32x8xbf16>
    %c1_226 = arith.constant 1 : index
    %c2_227 = arith.constant 2 : index
    %c0_228 = arith.constant 0 : index
    %c0_229 = arith.constant 0 : index
    %306 = vector.load %arg14[%c1_226, %c2_227, %c0_228, %c0_229] : memref<3x4x32x8xbf16, #tpu.memory_space<vmem>>, vector<1x1x32x8xbf16>
    %307 = vector.shape_cast %306 : vector<1x1x32x8xbf16> to vector<32x8xbf16>
    %cst_230 = arith.constant dense<0.000000e+00> : vector<32x8xf32>
    %308 = tpu.matmul %221, %307, %cst_230 {dimension_numbers = #tpu.dot_dimension_numbers<[1], [0], [0], [1], [0, 0, 1, 1], [], []>} : vector<32x32xbf16>, vector<32x8xbf16>, vector<32x8xf32> -> vector<32x8xf32>
    %c1_231 = arith.constant 1 : index
    %c2_232 = arith.constant 2 : index
    %c0_233 = arith.constant 0 : index
    %c0_234 = arith.constant 0 : index
    %309 = vector.load %arg15[%c1_231, %c2_232, %c0_233, %c0_234] : memref<3x4x1x8xf32, #tpu.memory_space<vmem>>, vector<1x1x1x8xf32>
    %310 = vector.shape_cast %309 : vector<1x1x1x8xf32> to vector<1x8xf32>
    %311 = vector.broadcast %310 : vector<1x8xf32> to vector<32x8xf32>
    %312 = arith.addf %308, %311 : vector<32x8xf32>
    %313 = arith.truncf %312 : vector<32x8xf32> to vector<32x8xbf16>
    %c2_235 = arith.constant 2 : index
    %c2_236 = arith.constant 2 : index
    %c0_237 = arith.constant 0 : index
    %c0_238 = arith.constant 0 : index
    %314 = vector.load %arg14[%c2_235, %c2_236, %c0_237, %c0_238] : memref<3x4x32x8xbf16, #tpu.memory_space<vmem>>, vector<1x1x32x8xbf16>
    %315 = vector.shape_cast %314 : vector<1x1x32x8xbf16> to vector<32x8xbf16>
    %cst_239 = arith.constant dense<0.000000e+00> : vector<32x8xf32>
    %316 = tpu.matmul %221, %315, %cst_239 {dimension_numbers = #tpu.dot_dimension_numbers<[1], [0], [0], [1], [0, 0, 1, 1], [], []>} : vector<32x32xbf16>, vector<32x8xbf16>, vector<32x8xf32> -> vector<32x8xf32>
    %c2_240 = arith.constant 2 : index
    %c2_241 = arith.constant 2 : index
    %c0_242 = arith.constant 0 : index
    %c0_243 = arith.constant 0 : index
    %317 = vector.load %arg15[%c2_240, %c2_241, %c0_242, %c0_243] : memref<3x4x1x8xf32, #tpu.memory_space<vmem>>, vector<1x1x1x8xf32>
    %318 = vector.shape_cast %317 : vector<1x1x1x8xf32> to vector<1x8xf32>
    %319 = vector.broadcast %318 : vector<1x8xf32> to vector<32x8xf32>
    %320 = arith.addf %316, %319 : vector<32x8xf32>
    %321 = arith.truncf %320 : vector<32x8xf32> to vector<32x8xbf16>
    %cst_244 = arith.constant dense<0.000000e+00> : vector<32x32xf32>
    %322 = tpu.matmul %305, %313, %cst_244 {dimension_numbers = #tpu.dot_dimension_numbers<[1], [1], [0], [0], [0, 0, 1, 0], [], []>} : vector<32x8xbf16>, vector<32x8xbf16>, vector<32x32xf32> -> vector<32x32xf32>
    %323 = arith.addf %322, %11 : vector<32x32xf32>
    %cst_245 = arith.constant dense<0xFF800000> : vector<32xf32>
    %324 = vector.multi_reduction <maximumf>, %323, %cst_245 [1] : vector<32x32xf32> to vector<32xf32>
    %325 = vector.shape_cast %324 : vector<32xf32> to vector<32x1xf32>
    %326 = vector.broadcast %325 : vector<32x1xf32> to vector<32x32xf32>
    %327 = arith.subf %323, %326 : vector<32x32xf32>
    %328 = math.exp %327 : vector<32x32xf32>
    %cst_246 = arith.constant dense<0.000000e+00> : vector<32xf32>
    %329 = vector.multi_reduction <add>, %328, %cst_246 [1] : vector<32x32xf32> to vector<32xf32>
    %330 = vector.shape_cast %329 : vector<32xf32> to vector<32x1xf32>
    %331 = tpu.reciprocal %330 : vector<32x1xf32> -> vector<32x1xf32>
    %332 = vector.broadcast %331 : vector<32x1xf32> to vector<32x32xf32>
    %333 = arith.mulf %328, %332 : vector<32x32xf32>
    %334 = arith.truncf %333 : vector<32x32xf32> to vector<32x32xbf16>
    %cst_247 = arith.constant dense<0.000000e+00> : vector<32x8xf32>
    %335 = tpu.matmul %334, %321, %cst_247 {dimension_numbers = #tpu.dot_dimension_numbers<[1], [0], [0], [1], [0, 0, 1, 1], [], []>} : vector<32x32xbf16>, vector<32x8xbf16>, vector<32x8xf32> -> vector<32x8xf32>
    %c0_248 = arith.constant 0 : index
    %c3_249 = arith.constant 3 : index
    %c0_250 = arith.constant 0 : index
    %c0_251 = arith.constant 0 : index
    %336 = vector.load %arg14[%c0_248, %c3_249, %c0_250, %c0_251] : memref<3x4x32x8xbf16, #tpu.memory_space<vmem>>, vector<1x1x32x8xbf16>
    %337 = vector.shape_cast %336 : vector<1x1x32x8xbf16> to vector<32x8xbf16>
    %cst_252 = arith.constant dense<0.000000e+00> : vector<32x8xf32>
    %338 = tpu.matmul %221, %337, %cst_252 {dimension_numbers = #tpu.dot_dimension_numbers<[1], [0], [0], [1], [0, 0, 1, 1], [], []>} : vector<32x32xbf16>, vector<32x8xbf16>, vector<32x8xf32> -> vector<32x8xf32>
    %c0_253 = arith.constant 0 : index
    %c3_254 = arith.constant 3 : index
    %c0_255 = arith.constant 0 : index
    %c0_256 = arith.constant 0 : index
    %339 = vector.load %arg15[%c0_253, %c3_254, %c0_255, %c0_256] : memref<3x4x1x8xf32, #tpu.memory_space<vmem>>, vector<1x1x1x8xf32>
    %340 = vector.shape_cast %339 : vector<1x1x1x8xf32> to vector<1x8xf32>
    %341 = vector.broadcast %340 : vector<1x8xf32> to vector<32x8xf32>
    %342 = arith.addf %338, %341 : vector<32x8xf32>
    %343 = arith.truncf %342 : vector<32x8xf32> to vector<32x8xbf16>
    %c1_257 = arith.constant 1 : index
    %c3_258 = arith.constant 3 : index
    %c0_259 = arith.constant 0 : index
    %c0_260 = arith.constant 0 : index
    %344 = vector.load %arg14[%c1_257, %c3_258, %c0_259, %c0_260] : memref<3x4x32x8xbf16, #tpu.memory_space<vmem>>, vector<1x1x32x8xbf16>
    %345 = vector.shape_cast %344 : vector<1x1x32x8xbf16> to vector<32x8xbf16>
    %cst_261 = arith.constant dense<0.000000e+00> : vector<32x8xf32>
    %346 = tpu.matmul %221, %345, %cst_261 {dimension_numbers = #tpu.dot_dimension_numbers<[1], [0], [0], [1], [0, 0, 1, 1], [], []>} : vector<32x32xbf16>, vector<32x8xbf16>, vector<32x8xf32> -> vector<32x8xf32>
    %c1_262 = arith.constant 1 : index
    %c3_263 = arith.constant 3 : index
    %c0_264 = arith.constant 0 : index
    %c0_265 = arith.constant 0 : index
    %347 = vector.load %arg15[%c1_262, %c3_263, %c0_264, %c0_265] : memref<3x4x1x8xf32, #tpu.memory_space<vmem>>, vector<1x1x1x8xf32>
    %348 = vector.shape_cast %347 : vector<1x1x1x8xf32> to vector<1x8xf32>
    %349 = vector.broadcast %348 : vector<1x8xf32> to vector<32x8xf32>
    %350 = arith.addf %346, %349 : vector<32x8xf32>
    %351 = arith.truncf %350 : vector<32x8xf32> to vector<32x8xbf16>
    %c2_266 = arith.constant 2 : index
    %c3_267 = arith.constant 3 : index
    %c0_268 = arith.constant 0 : index
    %c0_269 = arith.constant 0 : index
    %352 = vector.load %arg14[%c2_266, %c3_267, %c0_268, %c0_269] : memref<3x4x32x8xbf16, #tpu.memory_space<vmem>>, vector<1x1x32x8xbf16>
    %353 = vector.shape_cast %352 : vector<1x1x32x8xbf16> to vector<32x8xbf16>
    %cst_270 = arith.constant dense<0.000000e+00> : vector<32x8xf32>
    %354 = tpu.matmul %221, %353, %cst_270 {dimension_numbers = #tpu.dot_dimension_numbers<[1], [0], [0], [1], [0, 0, 1, 1], [], []>} : vector<32x32xbf16>, vector<32x8xbf16>, vector<32x8xf32> -> vector<32x8xf32>
    %c2_271 = arith.constant 2 : index
    %c3_272 = arith.constant 3 : index
    %c0_273 = arith.constant 0 : index
    %c0_274 = arith.constant 0 : index
    %355 = vector.load %arg15[%c2_271, %c3_272, %c0_273, %c0_274] : memref<3x4x1x8xf32, #tpu.memory_space<vmem>>, vector<1x1x1x8xf32>
    %356 = vector.shape_cast %355 : vector<1x1x1x8xf32> to vector<1x8xf32>
    %357 = vector.broadcast %356 : vector<1x8xf32> to vector<32x8xf32>
    %358 = arith.addf %354, %357 : vector<32x8xf32>
    %359 = arith.truncf %358 : vector<32x8xf32> to vector<32x8xbf16>
    %cst_275 = arith.constant dense<0.000000e+00> : vector<32x32xf32>
    %360 = tpu.matmul %343, %351, %cst_275 {dimension_numbers = #tpu.dot_dimension_numbers<[1], [1], [0], [0], [0, 0, 1, 0], [], []>} : vector<32x8xbf16>, vector<32x8xbf16>, vector<32x32xf32> -> vector<32x32xf32>
    %361 = arith.addf %360, %11 : vector<32x32xf32>
    %cst_276 = arith.constant dense<0xFF800000> : vector<32xf32>
    %362 = vector.multi_reduction <maximumf>, %361, %cst_276 [1] : vector<32x32xf32> to vector<32xf32>
    %363 = vector.shape_cast %362 : vector<32xf32> to vector<32x1xf32>
    %364 = vector.broadcast %363 : vector<32x1xf32> to vector<32x32xf32>
    %365 = arith.subf %361, %364 : vector<32x32xf32>
    %366 = math.exp %365 : vector<32x32xf32>
    %cst_277 = arith.constant dense<0.000000e+00> : vector<32xf32>
    %367 = vector.multi_reduction <add>, %366, %cst_277 [1] : vector<32x32xf32> to vector<32xf32>
    %368 = vector.shape_cast %367 : vector<32xf32> to vector<32x1xf32>
    %369 = tpu.reciprocal %368 : vector<32x1xf32> -> vector<32x1xf32>
    %370 = vector.broadcast %369 : vector<32x1xf32> to vector<32x32xf32>
    %371 = arith.mulf %366, %370 : vector<32x32xf32>
    %372 = arith.truncf %371 : vector<32x32xf32> to vector<32x32xbf16>
    %cst_278 = arith.constant dense<0.000000e+00> : vector<32x8xf32>
    %373 = tpu.matmul %372, %359, %cst_278 {dimension_numbers = #tpu.dot_dimension_numbers<[1], [0], [0], [1], [0, 0, 1, 1], [], []>} : vector<32x32xbf16>, vector<32x8xbf16>, vector<32x8xf32> -> vector<32x8xf32>
    %374 = tpu.concatenate %259, %297, %335, %373 in 1 : vector<32x8xf32>, vector<32x8xf32>, vector<32x8xf32>, vector<32x8xf32> -> vector<32x32xf32>
    %375 = arith.truncf %374 : vector<32x32xf32> to vector<32x32xbf16>
    %c0_279 = arith.constant 0 : index
    %c0_280 = arith.constant 0 : index
    %376 = vector.load %arg16[%c0_279, %c0_280] : memref<32x32xbf16, #tpu.memory_space<vmem>>, vector<32x32xbf16>
    %cst_281 = arith.constant dense<0.000000e+00> : vector<32x32xf32>
    %377 = tpu.matmul %375, %376, %cst_281 {dimension_numbers = #tpu.dot_dimension_numbers<[1], [0], [0], [1], [0, 0, 1, 1], [], []>} : vector<32x32xbf16>, vector<32x32xbf16>, vector<32x32xf32> -> vector<32x32xf32>
    %c0_282 = arith.constant 0 : index
    %c0_283 = arith.constant 0 : index
    %378 = vector.load %arg17[%c0_282, %c0_283] : memref<1x32xf32, #tpu.memory_space<vmem>>, vector<1x32xf32>
    %379 = vector.broadcast %378 : vector<1x32xf32> to vector<32x32xf32>
    %380 = arith.addf %377, %379 : vector<32x32xf32>
    %381 = arith.addf %196, %380 : vector<32x32xf32>
    %cst_284 = arith.constant dense<0.000000e+00> : vector<32xf32>
    %382 = vector.multi_reduction <add>, %381, %cst_284 [1] : vector<32x32xf32> to vector<32xf32>
    %383 = vector.shape_cast %382 : vector<32xf32> to vector<32x1xf32>
    %cst_285 = arith.constant 3.200000e+01 : f32
    %384 = vector.broadcast %cst_285 : f32 to vector<32x1xf32>
    %385 = arith.divf %383, %384 : vector<32x1xf32>
    %386 = vector.broadcast %385 : vector<32x1xf32> to vector<32x32xf32>
    %387 = arith.subf %381, %386 : vector<32x32xf32>
    %388 = arith.mulf %387, %387 : vector<32x32xf32>
    %cst_286 = arith.constant dense<0.000000e+00> : vector<32xf32>
    %389 = vector.multi_reduction <add>, %388, %cst_286 [1] : vector<32x32xf32> to vector<32xf32>
    %390 = vector.shape_cast %389 : vector<32xf32> to vector<32x1xf32>
    %cst_287 = arith.constant 3.200000e+01 : f32
    %391 = vector.broadcast %cst_287 : f32 to vector<32x1xf32>
    %392 = arith.divf %390, %391 : vector<32x1xf32>
    %393 = vector.broadcast %385 : vector<32x1xf32> to vector<32x32xf32>
    %394 = arith.subf %381, %393 : vector<32x32xf32>
    %cst_288 = arith.constant 9.99999974E-6 : f32
    %395 = vector.broadcast %cst_288 : f32 to vector<32x1xf32>
    %396 = arith.addf %392, %395 : vector<32x1xf32>
    %397 = math.rsqrt %396 : vector<32x1xf32>
    %398 = vector.broadcast %397 : vector<32x1xf32> to vector<32x32xf32>
    %399 = arith.mulf %394, %398 : vector<32x32xf32>
    %c0_289 = arith.constant 0 : index
    %c0_290 = arith.constant 0 : index
    %400 = vector.load %arg18[%c0_289, %c0_290] : memref<1x32xf32, #tpu.memory_space<vmem>>, vector<1x32xf32>
    %401 = vector.broadcast %400 : vector<1x32xf32> to vector<32x32xf32>
    %402 = arith.mulf %399, %401 : vector<32x32xf32>
    %c0_291 = arith.constant 0 : index
    %c0_292 = arith.constant 0 : index
    %403 = vector.load %arg19[%c0_291, %c0_292] : memref<1x32xf32, #tpu.memory_space<vmem>>, vector<1x32xf32>
    %404 = vector.broadcast %403 : vector<1x32xf32> to vector<32x32xf32>
    %405 = arith.addf %402, %404 : vector<32x32xf32>
    %406 = arith.truncf %405 : vector<32x32xf32> to vector<32x32xbf16>
    %c0_293 = arith.constant 0 : index
    %c0_294 = arith.constant 0 : index
    %407 = vector.load %arg20[%c0_293, %c0_294] : memref<32x128xbf16, #tpu.memory_space<vmem>>, vector<32x128xbf16>
    %cst_295 = arith.constant dense<0.000000e+00> : vector<32x128xf32>
    %408 = tpu.matmul %406, %407, %cst_295 {dimension_numbers = #tpu.dot_dimension_numbers<[1], [0], [0], [1], [0, 0, 1, 1], [], []>} : vector<32x32xbf16>, vector<32x128xbf16>, vector<32x128xf32> -> vector<32x128xf32>
    %c0_296 = arith.constant 0 : index
    %c0_297 = arith.constant 0 : index
    %409 = vector.load %arg21[%c0_296, %c0_297] : memref<1x128xf32, #tpu.memory_space<vmem>>, vector<1x128xf32>
    %410 = vector.broadcast %409 : vector<1x128xf32> to vector<32x128xf32>
    %411 = arith.addf %408, %410 : vector<32x128xf32>
    %cst_298 = arith.constant 0.000000e+00 : f32
    %412 = vector.broadcast %cst_298 : f32 to vector<32x128xf32>
    %413 = arith.maximumf %411, %412 : vector<32x128xf32>
    %414 = arith.truncf %413 : vector<32x128xf32> to vector<32x128xbf16>
    %c0_299 = arith.constant 0 : index
    %c0_300 = arith.constant 0 : index
    %415 = vector.load %arg22[%c0_299, %c0_300] : memref<128x32xbf16, #tpu.memory_space<vmem>>, vector<128x32xbf16>
    %cst_301 = arith.constant dense<0.000000e+00> : vector<32x32xf32>
    %416 = tpu.matmul %414, %415, %cst_301 {dimension_numbers = #tpu.dot_dimension_numbers<[1], [0], [0], [1], [0, 0, 1, 1], [], []>} : vector<32x128xbf16>, vector<128x32xbf16>, vector<32x32xf32> -> vector<32x32xf32>
    %c0_302 = arith.constant 0 : index
    %c0_303 = arith.constant 0 : index
    %417 = vector.load %arg23[%c0_302, %c0_303] : memref<1x32xf32, #tpu.memory_space<vmem>>, vector<1x32xf32>
    %418 = vector.broadcast %417 : vector<1x32xf32> to vector<32x32xf32>
    %419 = arith.addf %416, %418 : vector<32x32xf32>
    %420 = arith.addf %381, %419 : vector<32x32xf32>
    %c0_304 = arith.constant 0 : index
    %c0_305 = arith.constant 0 : index
    %c0_306 = arith.constant 0 : index
    %421 = vector.load %arg24[%c0_304, %c0_305, %c0_306] : memref<1x32x32xf32, #tpu.memory_space<vmem>>, vector<1x32x32xf32>
    %422 = vector.shape_cast %421 : vector<1x32x32xf32> to vector<32x32xf32>
    %423 = vector.shape_cast %420 : vector<32x32xf32> to vector<1x32x32xf32>
    tpu.vector_store %arg24[%c0_304, %c0_305, %c0_306], %423 {strides = array<i32>} : memref<1x32x32xf32, #tpu.memory_space<vmem>>, vector<1x32x32xf32>,
    return
  }
  func.func @transform_0(%arg0: i32) -> (i32, i32, i32) {
    %c0_i32 = arith.constant 0 : i32
    %c0_i32_0 = arith.constant 0 : i32
    %c0_i32_1 = arith.constant 0 : i32
    return %arg0, %c0_i32, %c0_i32_0 : i32, i32, i32
  }
  func.func @transform_1(%arg0: i32) -> (i32, i32) {
    %c0_i32 = arith.constant 0 : i32
    %c0_i32_0 = arith.constant 0 : i32
    %c0_i32_1 = arith.constant 0 : i32
    return %c0_i32, %c0_i32_0 : i32, i32
  }
  func.func @transform_2(%arg0: i32) -> (i32, i32) {
    %c0_i32 = arith.constant 0 : i32
    %c0_i32_0 = arith.constant 0 : i32
    %c0_i32_1 = arith.constant 0 : i32
    return %c0_i32, %c0_i32_0 : i32, i32
  }
  func.func @transform_3(%arg0: i32) -> (i32, i32, i32) {
    %c0_i32 = arith.constant 0 : i32
    %c0_i32_0 = arith.constant 0 : i32
    %c0_i32_1 = arith.constant 0 : i32
    return %arg0, %c0_i32, %c0_i32_0 : i32, i32, i32
  }
  func.func @transform_4(%arg0: i32) -> (i32, i32, i32) {
    %c0_i32 = arith.constant 0 : i32
    %c0_i32_0 = arith.constant 0 : i32
    %c0_i32_1 = arith.constant 0 : i32
    return %arg0, %c0_i32, %c0_i32_0 : i32, i32, i32
  }
  func.func @transform_5(%arg0: i32) -> (i32, i32) {
    %c0_i32 = arith.constant 0 : i32
    %c0_i32_0 = arith.constant 0 : i32
    %c0_i32_1 = arith.constant 0 : i32
    return %c0_i32, %c0_i32_0 : i32, i32
  }
  func.func @transform_6(%arg0: i32) -> (i32, i32) {
    %c0_i32 = arith.constant 0 : i32
    %c0_i32_0 = arith.constant 0 : i32
    %c0_i32_1 = arith.constant 0 : i32
    return %c0_i32, %c0_i32_0 : i32, i32
  }
  func.func @transform_7(%arg0: i32) -> (i32, i32, i32, i32) {
    %c0_i32 = arith.constant 0 : i32
    %c0_i32_0 = arith.constant 0 : i32
    %c0_i32_1 = arith.constant 0 : i32
    %c0_i32_2 = arith.constant 0 : i32
    %c0_i32_3 = arith.constant 0 : i32
    return %c0_i32, %c0_i32_0, %c0_i32_1, %c0_i32_2 : i32, i32, i32, i32
  }
  func.func @transform_8(%arg0: i32) -> (i32, i32, i32, i32) {
    %c0_i32 = arith.constant 0 : i32
    %c0_i32_0 = arith.constant 0 : i32
    %c0_i32_1 = arith.constant 0 : i32
    %c0_i32_2 = arith.constant 0 : i32
    %c0_i32_3 = arith.constant 0 : i32
    return %c0_i32, %c0_i32_0, %c0_i32_1, %c0_i32_2 : i32, i32, i32, i32
  }
  func.func @transform_9(%arg0: i32) -> (i32, i32) {
    %c0_i32 = arith.constant 0 : i32
    %c0_i32_0 = arith.constant 0 : i32
    %c0_i32_1 = arith.constant 0 : i32
    return %c0_i32, %c0_i32_0 : i32, i32
  }
  func.func @transform_10(%arg0: i32) -> (i32, i32) {
    %c0_i32 = arith.constant 0 : i32
    %c0_i32_0 = arith.constant 0 : i32
    %c0_i32_1 = arith.constant 0 : i32
    return %c0_i32, %c0_i32_0 : i32, i32
  }
  func.func @transform_11(%arg0: i32) -> (i32, i32) {
    %c0_i32 = arith.constant 0 : i32
    %c0_i32_0 = arith.constant 0 : i32
    %c0_i32_1 = arith.constant 0 : i32
    return %c0_i32, %c0_i32_0 : i32, i32
  }
  func.func @transform_12(%arg0: i32) -> (i32, i32) {
    %c0_i32 = arith.constant 0 : i32
    %c0_i32_0 = arith.constant 0 : i32
    %c0_i32_1 = arith.constant 0 : i32
    return %c0_i32, %c0_i32_0 : i32, i32
  }
  func.func @transform_13(%arg0: i32) -> (i32, i32, i32, i32) {
    %c0_i32 = arith.constant 0 : i32
    %c0_i32_0 = arith.constant 0 : i32
    %c0_i32_1 = arith.constant 0 : i32
    %c0_i32_2 = arith.constant 0 : i32
    %c0_i32_3 = arith.constant 0 : i32
    return %c0_i32, %c0_i32_0, %c0_i32_1, %c0_i32_2 : i32, i32, i32, i32
  }
  func.func @transform_14(%arg0: i32) -> (i32, i32, i32, i32) {
    %c0_i32 = arith.constant 0 : i32
    %c0_i32_0 = arith.constant 0 : i32
    %c0_i32_1 = arith.constant 0 : i32
    %c0_i32_2 = arith.constant 0 : i32
    %c0_i32_3 = arith.constant 0 : i32
    return %c0_i32, %c0_i32_0, %c0_i32_1, %c0_i32_2 : i32, i32, i32, i32
  }
  func.func @transform_15(%arg0: i32) -> (i32, i32) {
    %c0_i32 = arith.constant 0 : i32
    %c0_i32_0 = arith.constant 0 : i32
    %c0_i32_1 = arith.constant 0 : i32
    return %c0_i32, %c0_i32_0 : i32, i32
  }
  func.func @transform_16(%arg0: i32) -> (i32, i32) {
    %c0_i32 = arith.constant 0 : i32
    %c0_i32_0 = arith.constant 0 : i32
    %c0_i32_1 = arith.constant 0 : i32
    return %c0_i32, %c0_i32_0 : i32, i32
  }
  func.func @transform_17(%arg0: i32) -> (i32, i32) {
    %c0_i32 = arith.constant 0 : i32
    %c0_i32_0 = arith.constant 0 : i32
    %c0_i32_1 = arith.constant 0 : i32
    return %c0_i32, %c0_i32_0 : i32, i32
  }
  func.func @transform_18(%arg0: i32) -> (i32, i32) {
    %c0_i32 = arith.constant 0 : i32
    %c0_i32_0 = arith.constant 0 : i32
    %c0_i32_1 = arith.constant 0 : i32
    return %c0_i32, %c0_i32_0 : i32, i32
  }
  func.func @transform_19(%arg0: i32) -> (i32, i32) {
    %c0_i32 = arith.constant 0 : i32
    %c0_i32_0 = arith.constant 0 : i32
    %c0_i32_1 = arith.constant 0 : i32
    return %c0_i32, %c0_i32_0 : i32, i32
  }
  func.func @transform_20(%arg0: i32) -> (i32, i32) {
    %c0_i32 = arith.constant 0 : i32
    %c0_i32_0 = arith.constant 0 : i32
    %c0_i32_1 = arith.constant 0 : i32
    return %c0_i32, %c0_i32_0 : i32, i32
  }
  func.func @transform_21(%arg0: i32) -> (i32, i32) {
    %c0_i32 = arith.constant 0 : i32
    %c0_i32_0 = arith.constant 0 : i32
    %c0_i32_1 = arith.constant 0 : i32
    return %c0_i32, %c0_i32_0 : i32, i32
  }
  func.func @transform_22(%arg0: i32) -> (i32, i32) {
    %c0_i32 = arith.constant 0 : i32
    %c0_i32_0 = arith.constant 0 : i32
    %c0_i32_1 = arith.constant 0 : i32
    return %c0_i32, %c0_i32_0 : i32, i32
  }
  func.func @transform_23(%arg0: i32) -> (i32, i32, i32) {
    %c0_i32 = arith.constant 0 : i32
    %c0_i32_0 = arith.constant 0 : i32
    %c0_i32_1 = arith.constant 0 : i32
    return %arg0, %c0_i32, %c0_i32_0 : i32, i32, i32
  }
}

</mosaic_0001>

<bundles_post_ra>
// kernel: encoder_layer_forward.1
= control target key start
LH: loop header
LB: loop body
LE: loop exit
PB: predicated region body
PF: predicated region fallthrough
CT: control target
= control target key end

     0   :  { %s7040_s0 = inlined_call_operand.vmem [shape: f32[2,32,32], index: 0, kind: input, shape index: {}]   ;;  %s7041_s1 = inlined_call_operand.vmem [shape: f32[32,32], index: 1, kind: input, shape index: {}]   ;;  %s7042_s2 = inlined_call_operand.vmem [shape: f32[32,32], index: 2, kind: input, shape index: {}]   ;;  %s7043_s3 = inlined_call_operand.vmem [shape: f32[2,1,32], index: 3, kind: input, shape index: {}]   ;;  %s7044_s4 = inlined_call_operand.vmem [shape: f32[2,1,32], index: 4, kind: input, shape index: {}]   ;;  %s7045_s5 = inlined_call_operand.vmem [shape: f32[1,32], index: 5, kind: input, shape index: {}]   ;;  %s7046_s6 = inlined_call_operand.vmem [shape: f32[1,32], index: 6, kind: input, shape index: {}]   ;;  %s7047_s7 = inlined_call_operand.vmem [shape: bf16[3,4,32,8], index: 7, kind: input, shape index: {}]   ;;  %s7048_s8 = inlined_call_operand.vmem [shape: f32[3,4,1,8], index: 8, kind: input, shape index: {}]   ;;  %s7049_s9 = inlined_call_operand.vmem [shape: bf16[32,32], index: 9, kind: input, shape index: {}]   ;;  %s7050_s10 = inlined_call_operand.vmem [shape: f32[1,32], index: 10, kind: input, shape index: {}]   ;;  %s7051_s11 = inlined_call_operand.vmem [shape: f32[1,32], index: 11, kind: input, shape index: {}]   ;;  %s7052_s12 = inlined_call_operand.vmem [shape: f32[1,32], index: 12, kind: input, shape index: {}]   ;;  %s7053_s13 = inlined_call_operand.vmem [shape: bf16[3,4,32,8], index: 13, kind: input, shape index: {}]   ;;  %s7054_s14 = inlined_call_operand.vmem [shape: f32[3,4,1,8], index: 14, kind: input, shape index: {}]   ;;  %s7055_s15 = inlined_call_operand.vmem [shape: bf16[32,32], index: 15, kind: input, shape index: {}]   ;;  %s7056_s16 = inlined_call_operand.vmem [shape: f32[1,32], index: 16, kind: input, shape index: {}]   ;;  %s7057_s17 = inlined_call_operand.vmem [shape: f32[1,32], index: 17, kind: input, shape index: {}]   ;;  %s7058_s18 = inlined_call_operand.vmem [shape: f32[1,32], index: 18, kind: input, shape index: {}]   ;;  %s7059_s19 = inlined_call_operand.vmem [shape: bf16[32,128], index: 19, kind: input, shape index: {}]   ;;  %s7060_s20 = inlined_call_operand.vmem [shape: f32[1,128], index: 20, kind: input, shape index: {}]   ;;  %s7061_s21 = inlined_call_operand.vmem [shape: bf16[128,32], index: 21, kind: input, shape index: {}]   ;;  %s7062_s22 = inlined_call_operand.vmem [shape: f32[1,32], index: 22, kind: input, shape index: {}]   ;;  %s7063_s23 = inlined_call_operand.hbm [shape: f32[2,32,32], index: 23, kind: output, shape index: {}]  }
   0x1   :  { %7084 = sst [smem:[#allocation13_spill]] %s7040_s0 }
   0x2   :  { %7085 = sst [smem:[#allocation14_spill]] %s7041_s1 }
   0x3   :  { %7086 = sst [smem:[#allocation15_spill]] %s7042_s2 }
   0x4   :  { %7087 = sst [smem:[#allocation16_spill]] %s7043_s3 }
   0x5   :  { %7088 = sst [smem:[#allocation17_spill]] %s7044_s4 }
   0x6   :  { %7089 = sst [smem:[#allocation18_spill]] %s7045_s5 }
   0x7   :  { %7090 = sst [smem:[#allocation19_spill]] %s7046_s6 }
   0x8   :  { %7091 = sst [smem:[#allocation20_spill]] %s7047_s7 }
   0x9   :  { %7092 = sst [smem:[#allocation21_spill]] %s7048_s8 }
   0xa   :  { %7093 = sst [smem:[#allocation22_spill]] %s7062_s22 }
   0xb   :  { %7094 = sst [smem:[#allocation23_spill]] %s7063_s23 }
   0xc   :  { %28 = vsyncpa [#allocation3], 0 }
   0xd   :  { %30 = vsyncpa [#allocation3 + $0x1], 0  ;;  %s6107_s4 = smov 0   ;;  %s6109_s30 = smov 0  }
   0xe   :  { %s6111_s24 = smov 0   ;;  %s6113_s25 = smov 0  }
   0xf LB: > { %7095 = sst [smem:[#allocation5_spill]] %s5968_s4  ;;  %s6128_s5 = sadd.s32 4294967295, %s5980_s25   ;;  %s5980_s25 = sphi %s6113_s25, %s7124_s25   ;;  %s5976_s24 = sphi %s6111_s24, %s7126_s24   ;;  %s5972_s30 = sphi %s6109_s30, %s7128_s30   ;;  %s5968_s4 = sphi %s6107_s4, %s7127_s4  }
  0x10   : > { %7096 = sst [smem:[#allocation6_spill]] %s5976_s24  ;;  %s4727_s1 = sadd.s32 4294967294, %s5980_s25  }
  0x11   : > { %7097 = sst [smem:[#allocation7_spill]] %s5980_s25  ;;  %s6132_s26 = sadd.s32 1, %s5980_s25  }
  0x12   : > { %7098 = sst [smem:[#allocation8_spill]] %s6128_s5  ;;  %s541_s2 = sadd.s32 1, %s5976_s24 }
  0x13   : > { %7099 = sst [smem:[#allocation9_spill]] %s6132_s26  ;;  %s538_s6 = ssub.s32 %s5980_s25, %s6132_s26 }
  0x14   : > { %p551_p0 = scmp.ne.s32.totalorder %s5976_s24, %s5972_s30  ;;  %p539_p1 = scmp.eq.s32.totalorder %s538_s6, 0 }
  0x15   : > { %p552_p2 = scmp.eq.s32.totalorder %s6128_s5, 1  ;;  %p557_p3 = scmp.ne.s32.totalorder %s5972_s30, %s5968_s4 }
  0x16   : > { %p558_p4 = scmp.eq.s32.totalorder %s4727_s1, 1  ;;  %p4730_p7 = scmp.ge.s32.totalorder %s5980_s25, 1 }
  0x17   : > { %s6143_s27 = scalar_select %p539_p1, %s5976_s24, %s541_s2  }
  0x18   : > { %p6145_p5 = por %p552_p2, %p551_p0  ;;  %p6149_p6 = por %p558_p4, %p557_p3 }
  0x19   : > { %7100 = sst [smem:[#allocation10_spill]] %s6143_s27  ;;  %p656_p8 = scmp.lt.s32.totalorder %s5980_s25, 3 }
  0x1a   : > { %s7101_s7 = scalar_select %p6145_p5, 1, 0 }
  0x1b   : > { %s7103_s28 = scalar_select %p6149_p6, 1, 0 }
  0x1c   : > { %7102 = sst [smem:[#allocation11_spill]] %s7101_s7  ;;  %p657_p9 = pnand %p4730_p7, %p656_p8 }
  0x1d   : > { %7104 = sst [smem:[#allocation12_spill]] %s7103_s28  ;;  %p726_p10 = scmp.lt.s32.totalorder (!%p657_p9), %s6128_s5, 1  ;;  %vm772_vm0 = vcmask (!%p657_p9), 261120   ;;  %vm1082_vm1 = vcmask (!%p657_p9), 64512   ;;  %vm2467_vm2 = vcmask (!%p657_p9), 130048   ;;  %vm2472_vm3 = vcmask (!%p657_p9), 195584  }
  0x1e   : > { %660 = sbr.rel (%p657_p9) target bundleno = 8719 (0x220f), region = 112  ;;  %s7105_s2 = sld [smem:[#allocation13_spill]] (!%p657_p9) }
  0x1f   : > { %s7106_s1 = sld [smem:[#allocation20_spill]] (!%p657_p9)  ;;  %s7107_s27 = sld [smem:[#allocation18_spill]] (!%p657_p9) }
  0x20   : > { %s7109_s8 = sld [smem:[#allocation21_spill]] (!%p657_p9)  ;;  %s7110_s24 = sld [smem:[#allocation16_spill]] (!%p657_p9) }
  0x21   : > { %s7081_s4 = smov (!%p657_p9), 8   ;;  %s7079_s25 = smov (!%p657_p9), 16  }
  0x22   : > { %s7113_s22 = sld [smem:[#allocation15_spill]] (!%p657_p9)  ;;  %s7115_s7 = smov (!%p657_p9), 16  }
  0x23   : > { %s7116_s28 = smov (!%p657_p9), 24   ;;  %s723_s23 = sand.u32 (!%p657_p9), 1, %s5972_s30  }
  0x25   : > { %s6157_s29 = scalar_select %p726_p10, %s6128_s5, 1  ;;  %v5700_v28 = vld [vmem:[%s7106_s1] sm:$0xff]   ;;  %v5701_v29 = vld [vmem:[%s7106_s1 + $0x8] sm:$0xff]  }
  0x26   : > { %5217 = vmatprep.subr.bf16.mxu0 %v5700_v28  ;;  %v5702_v30 = vld [vmem:[%s7106_s1 + $0x40] sm:$0xff]   ;;  %v5703_v63 = vld [vmem:[%s7106_s1 + $0x48] sm:$0xff]   ;;  %s7114_s5 = smov 8  }
  0x27   : > { %s5033_s3 = sshll.u32 %s6157_s29, 5  ;;  %5218 = vmatpush3.bf16.msra.mxu0 %v5700_v28  ;;  %v4736_v45 = vld [vmem:[%s7107_s27] ss:$0 sm:$0xff]  ;;  %s733_s26 = scalar_lea.vmem %s7110_s24, %s6157_s29 }
  0x28   : > { %s6163_s6 = scalar_lea.vmem %s7105_s2, %s5033_s3  ;;  %5219 = vmatprep.subr.bf16.mxu0 %v5701_v29  ;;  %s7108_s2 = sld [smem:[#allocation19_spill]] }
  0x29   : > { %v738_v0 = vld [vmem:[%s6163_s6] sm:$0xff]  ;;  %v740_v1 = vld [vmem:[%s6163_s6 + $0x10] sm:$0xff]  ;;  %v739_v2 = vld [vmem:[%s6163_s6 + $0x8] sm:$0xff]  ;;  %s7111_s27 = sld [smem:[#allocation14_spill]]  ;;  %s7112_s24 = sld [smem:[#allocation17_spill]] }
  0x2a   : > { %v773_v3 = vsel %vm772_vm0, %v738_v0, 0.0  ;;  %v779_v4 = vsel %vm772_vm0, %v740_v1, 0.0  ;;  %v741_v5 = vld [vmem:[%s6163_s6 + $0x18] sm:$0xff]  ;;  %v776_v6 = vsel %vm772_vm0, %v739_v2, 0.0  ;;  %s7117_s3 = sld [smem:[#allocation8_spill]] }
  0x2b   : > { %774 = vadd.xlane.f32.xlu0 %v773_v3  ;;  %780 = vadd.xlane.f32.xlu1 %v779_v4  ;;  %v782_v7 = vsel %vm772_vm0, %v741_v5, 0.0  ;;  %v4738_v3 = vld [vmem:[%s7109_s8] ss:$0 sm:$0xff] }
  0x2c   : > { %5220 = vmatpush3.bf16.msra.mxu0 %v5701_v29 }
  0x2d   : > { %5225 = vmatprep.subr.bf16.mxu0 %v5702_v30 }
  0x2e   : > { %v4737_v50 = vld [vmem:[%s7108_s2] ss:$0 sm:$0xff]  ;;  %s7077_s2 = smov 24  }
  0x2f   : > { %777 = vadd.xlane.f32.xlu0 %v776_v6  ;;  %783 = vadd.xlane.f32.xlu1 %v782_v7 }
  0xb8   : > { %v775_v8 = vpop.xlane.xlu0 %774  ;;  %v781_v9 = vpop.xlane.xlu1 %780 }
  0xb9   : > { %v786_v10 = vmul.f32 0.03125, %v775_v8  ;;  %v788_v11 = vmul.f32 0.03125, %v781_v9 }
  0xbb   : > { %v790_v12 = vsub.f32 %v738_v0, %v786_v10  ;;  %v792_v13 = vsub.f32 %v740_v1, %v788_v11  ;;  %v5704_v0 = vld [vmem:[%s7106_s1 + $0x80] sm:$0xff]   ;;  %v5705_v1 = vld [vmem:[%s7106_s1 + $0x88] sm:$0xff]  }
  0xbc   : > { %v778_v14 = vpop.xlane.xlu0 %777  ;;  %v784_v15 = vpop.xlane.xlu1 %783 }
  0xbd   : > { %v787_v16 = vmul.f32 0.03125, %v778_v14  ;;  %v789_v17 = vmul.f32 0.03125, %v784_v15  ;;  %v794_v18 = vmul.f32 %v790_v12, %v790_v12  ;;  %v796_v19 = vmul.f32 %v792_v13, %v792_v13  ;;  %v4748_v14 = vld [vmem:[%s7109_s8 + $0x4] ss:$0 sm:$0xff] }
  0xbf   : > { %v791_v20 = vsub.f32 %v739_v2, %v787_v16  ;;  %v793_v21 = vsub.f32 %v741_v5, %v789_v17  ;;  %v798_v22 = vsel %vm772_vm0, %v794_v18, 0.0  ;;  %v804_v23 = vsel %vm772_vm0, %v796_v19, 0.0 }
  0xc0   : > { %799 = vadd.xlane.f32.xlu0 %v798_v22 }
  0xc1   : > { %v795_v24 = vmul.f32 %v791_v20, %v791_v20  ;;  %v797_v25 = vmul.f32 %v793_v21, %v793_v21 }
  0xc3   : > { %v801_v26 = vsel %vm772_vm0, %v795_v24, 0.0  ;;  %v807_v27 = vsel %vm772_vm0, %v797_v25, 0.0  ;;  %v4758_v25 = vld [vmem:[%s7109_s8 + $0x8] ss:$0 sm:$0xff] }
  0xc4   : > { %805 = vadd.xlane.f32.xlu0 %v804_v23  ;;  %802 = vadd.xlane.f32.xlu1 %v801_v26 }
  0xc8   : > { %808 = vadd.xlane.f32.xlu1 %v807_v27 }
 0x14d   : > { %v800_v31 = vpop.xlane.xlu0 %799 }
 0x14e   : > { %v810_v32 = vmul.f32 0.03125, %v800_v31 }
 0x150   : > { %v814_v33 = vadd.f32 1e-05, %v810_v32 }
 0x151   : > { %v803_v34 = vpop.xlane.xlu1 %802  ;;  %v806_v35 = vpop.xlane.xlu0 %805 }
 0x152   : > { %5762 = vrsqrt.f32 %v814_v33  ;;  %v811_v36 = vmul.f32 0.03125, %v803_v34  ;;  %v812_v37 = vmul.f32 0.03125, %v806_v35 }
 0x154   : > { %v815_v38 = vadd.f32 1e-05, %v811_v36  ;;  %v816_v39 = vadd.f32 1e-05, %v812_v37  ;;  %v5706_v36 = vld [vmem:[%s7106_s1 + $0x50] sm:$0xff]  }
 0x155   : > { %v809_v40 = vpop.xlane.xlu1 %808 }
 0x156   : > { %5764 = vrsqrt.f32 %v815_v38  ;;  %v813_v41 = vmul.f32 0.03125, %v809_v40  ;;  %v5707_v38 = vld [vmem:[%s7106_s1 + $0x58] sm:$0xff]   ;;  %v742_v40 = vld [vmem:[%s7111_s27] sm:$0xff] }
 0x157   : > { %5766 = vrsqrt.f32 %v816_v39  ;;  %v4734_v39 = vld [vmem:[%s733_s26] ss:$0 sm:$0xff]  ;;  %s736_s26 = scalar_lea.vmem %s7112_s24, %s6157_s29  ;;  %s5034_s24 = sshll.u32 %s7117_s3, 9 }
 0x158   : > { %v817_v42 = vadd.f32 1e-05, %v813_v41  ;;  %v744_v41 = vld [vmem:[%s7111_s27 + $0x10] sm:$0xff]  ;;  %s6998_s29 = scalar_lea.sflag [#allocation3], %s723_s23 }
 0x15a   : > { %5768 = vrsqrt.f32 %v817_v42  ;;  %v743_v42 = vld [vmem:[%s7111_s27 + $0x8] sm:$0xff] }
 0x15c   : > { %v5763_v43 = vpop.eup %5762 }
 0x15d   : > { %v822_v44 = vmul.f32 %v5763_v43, %v790_v12  ;;  %v6255_v43 = vadd.f32 %v4734_v39, %v742_v40 }
 0x15f   : > { %v833_v48 = vmul.f32 %v4736_v45, %v822_v44  ;;  %v745_v44 = vld [vmem:[%s7111_s27 + $0x18] sm:$0xff] }
 0x160   : > { %v5765_v46 = vpop.eup %5764 }
 0x161   : > { %v5767_v47 = vpop.eup %5766  ;;  %v823_v49 = vmul.f32 %v5765_v46, %v791_v20  ;;  %v844_v54 = vadd.f32 %v4737_v50, %v833_v48 }
 0x162   : > { %v824_v51 = vmul.f32 %v5767_v47, %v792_v13  ;;  %v6262_v47 = vadd.f32 %v4734_v39, %v743_v42 }
 0x163   : > { %v834_v52 = vmul.f32 %v4736_v45, %v823_v49 }
 0x164   : > { %v5769_v53 = vpop.eup %5768  ;;  %v835_v56 = vmul.f32 %v4736_v45, %v824_v51 }
 0x165   : > { %v845_v55 = vadd.f32 %v4737_v50, %v834_v52  ;;  %v825_v57 = vmul.f32 %v5769_v53, %v793_v21 }
 0x166   : > { %v846_v60 = vadd.f32 %v4737_v50, %v835_v56 }
 0x167   : > { %v6192_v58 = vpack.c.bf16 %v845_v55, %v844_v54  ;;  %v836_v59 = vmul.f32 %v4736_v45, %v825_v57  ;;  %v6260_v45 = vadd.f32 %v4734_v39, %v744_v41 }
 0x169   : > { %v847_v61 = vadd.f32 %v4737_v50, %v836_v59  ;;  %5221 = vmatprep.mubr.msk.bf16.mxu0 %vm772_vm0, %v6192_v58  ;;  %v6265_v50 = vadd.f32 %v4734_v39, %v745_v44 }
 0x16b   : > { %v6196_v62 = vpack.c.bf16 %v847_v61, %v846_v60  ;;  %v4782_v60 = vld [vmem:[%s7109_s8 + $0x5] ss:$0 sm:$0xff] }
 0x16d   : > { %5222 = vmatmul.mubr.msk.bf16.vlgmr.msra.gmra.mrb[0].mxu0 %vm772_vm0, %v6196_v62 }
 0x16e   : > { %5226 = vmatpush3.bf16.msra.mxu0 %v5702_v30  ;;  %5229 = vmatprep.mubr.msk.bf16.mxu0 %vm772_vm0, %v6192_v58 }
 0x16f   : > { %5227 = vmatprep.subr.bf16.mxu0 %v5703_v63 }
 0x172   : > { %5228 = vmatpush3.bf16.msra.mxu0 %v5703_v63 }
 0x173   : > { %5233 = vmatprep.subr.bf16.mxu0 %v5704_v0 }
 0x175   : > { %5230 = vmatmul.mubr.msk.bf16.vlgmr.msra.gmra.mrb[4].mxu0 %vm772_vm0, %v6196_v62 }
 0x176   : > { %5234 = vmatpush3.bf16.msra.mxu0 %v5704_v0  ;;  %5237 = vmatprep.mubr.msk.bf16.mxu0 %vm772_vm0, %v6192_v58 }
 0x177   : > { %5235 = vmatprep.subr.bf16.mxu0 %v5705_v1 }
 0x17a   : > { %5236 = vmatpush3.bf16.msra.mxu0 %v5705_v1 }
 0x17d   : > { %5238 = vmatmul.mubr.msk.bf16.vlgmr.msra.gmra.mrb[8].mxu0 %vm772_vm0, %v6196_v62 }
 0x240   : > { %v5223_v2 = vpop.f32.mrb[0].mxu0 }
 0x241   : > { %v913_v4 = vpop.f32.mrb[1].mxu0  ;;  %v922_v6 = vadd.f32 %v5223_v2, %v4738_v3 }
 0x242   : > { %v5224_v5 = vpop.f32.mrb[2].mxu0  ;;  %v914_v9 = vadd.f32 %v4738_v3, %v913_v4 }
 0x243   : > { %v925_v7 = vadd.f32 %v5224_v5, %v4738_v3  ;;  %v916_v8 = vpop.f32.mrb[3].mxu0 }
 0x244   : > { %v917_v10 = vadd.f32 %v4738_v3, %v916_v8 }
 0x245   : > { %v929_v11 = vpack.c.bf16 %v925_v7, %v922_v6 }
 0x246   : > { %v928_v12 = vpack.c.bf16 %v917_v10, %v914_v9 }
 0x248   : > { %v5231_v13 = vpop.f32.mrb[4].mxu0  ;;  %5245 = vmatprep.mubr.msk.bf16.mxu1 %vm1082_vm1, %v928_v12 }
 0x249   : > { %v989_v15 = vpop.f32.mrb[5].mxu0  ;;  %v998_v17 = vadd.f32 %v5231_v13, %v4748_v14 }
 0x24a   : > { %v5232_v16 = vpop.f32.mrb[6].mxu0  ;;  %v990_v20 = vadd.f32 %v4748_v14, %v989_v15 }
 0x24b   : > { %v1001_v18 = vadd.f32 %v5232_v16, %v4748_v14  ;;  %v992_v19 = vpop.f32.mrb[7].mxu0 }
 0x24c   : > { %v993_v21 = vadd.f32 %v4748_v14, %v992_v19 }
 0x24d   : > { %v1005_v22 = vpack.c.bf16 %v1001_v18, %v998_v17 }
 0x24e   : > { %v1004_v23 = vpack.c.bf16 %v993_v21, %v990_v20 }
 0x24f   : > { %v1093_v37 = vsel %vm1082_vm1, %v1005_v22, 0 }
 0x250   : > { %v5239_v24 = vpop.f32.mrb[8].mxu0  ;;  %5581 = vmatprep.subr.msk.bf16.mxu1 %vm1082_vm1, %v1004_v23  ;;  %v1090_v26 = vsel %vm1082_vm1, %v1004_v23, 0 }
 0x251   : > { %v1065_v27 = vpop.f32.mrb[9].mxu0  ;;  %5242 = vmatpush3.bf16.xpose.msra.mxu1 %v1090_v26  ;;  %v1074_v29 = vadd.f32 %v5239_v24, %v4758_v25 }
 0x252   : > { %v5240_v28 = vpop.f32.mrb[10].mxu0  ;;  %5582 = vmatprep.subr.msk.bf16.mxu1 %vm1082_vm1, %v1005_v22  ;;  %v1066_v32 = vadd.f32 %v4758_v25, %v1065_v27 }
 0x253   : > { %v1077_v30 = vadd.f32 %v5240_v28, %v4758_v25  ;;  %v1068_v31 = vpop.f32.mrb[11].mxu0 }
 0x254   : > { %v1069_v33 = vadd.f32 %v4758_v25, %v1068_v31  ;;  %v5708_v31 = vld [vmem:[%s7106_s1 + $0x10] sm:$0xff]  }
 0x255   : > { %v1081_v34 = vpack.c.bf16 %v1077_v30, %v1074_v29 }
 0x256   : > { %v1080_v35 = vpack.c.bf16 %v1069_v33, %v1066_v32 }
 0x258   : > { %5249 = vmatprep.subr.bf16.mxu0 %v1080_v35 }
 0x259   : > { %5244 = vmatpush3.bf16.xpose.msra.mxu1 %v1093_v37  ;;  %5250 = vmatpush3.bf16.msra.mxu0 %v1080_v35 }
 0x25a   : > { %5251 = vmatprep.subr.bf16.mxu0 %v1081_v34  ;;  %5265 = vmatprep.subr.bf16.mxu1 %v5706_v36 }
 0x25d   : > { %5252 = vmatpush3.bf16.msra.mxu0 %v1081_v34 }
 0x25e   : > { %5257 = vmatprep.subr.bf16.mxu0 %v5708_v31 }
 0x260   : > { %5246 = vmatmul.mubr.msk.bf16.vlgmr.msra.gmra.mrb[0].mxu1 %vm1082_vm1, %v929_v11 }
 0x261   : > { %5266 = vmatpush3.bf16.msra.mxu1 %v5706_v36  ;;  %5269 = vmatprep.mubr.msk.bf16.mxu1 %vm772_vm0, %v6192_v58 }
 0x262   : > { %5267 = vmatprep.subr.bf16.mxu1 %v5707_v38 }
 0x265   : > { %5268 = vmatpush3.bf16.msra.mxu1 %v5707_v38 }
 0x268   : > { %5270 = vmatmul.mubr.msk.bf16.vlgmr.msra.gmra.mrb[4].mxu1 %vm772_vm0, %v6196_v62 }
 0x333   : > { %v5247_v46 = vpop.f32.mrb[0].mxu1 }
 0x334   : > { %v1129_v48 = vpop.f32.mrb[1].mxu1  ;;  %v1138_v53 = vadd.f32 %v5247_v46, %v6260_v45 }
 0x335   : > { %v1130_v49 = vadd.f32 %v1129_v48, %v6255_v43  ;;  %v5248_v51 = vpop.f32.mrb[2].mxu1 }
 0x336   : > { %v1132_v52 = vpop.f32.mrb[3].mxu1  ;;  %v1141_v56 = vadd.f32 %v5248_v51, %v6265_v50  ;;  %v1150_v61 = vsel %vm772_vm0, %v1138_v53, -inf  ;;  %v5710_v51 = vld [vmem:[%s7106_s1 + $0x90] sm:$0xff]  }
 0x337   : > { %v1133_v54 = vadd.f32 %v1132_v52, %v6262_v47  ;;  %v1144_v55 = vsel %vm772_vm0, %v1130_v49, -inf  ;;  %v5711_v52 = vld [vmem:[%s7106_s1 + $0x98] sm:$0xff]  }
 0x338   : > { %1145 = vmax.xlane.f32.xlu0 %v1144_v55  ;;  %v1153_v1 = vsel %vm772_vm0, %v1141_v56, -inf }
 0x339   : > { %v1147_v57 = vsel %vm772_vm0, %v1133_v54, -inf }
 0x33a   : > { %1148 = vmax.xlane.f32.xlu1 %v1147_v57 }
 0x33b   : > { %v5271_v59 = vpop.f32.mrb[4].mxu1 }
 0x33c   : > { %v1380_v63 = vpop.f32.mrb[5].mxu1  ;;  %1151 = vmax.xlane.f32.xlu0 %v1150_v61  ;;  %v1389_v2 = vadd.f32 %v5271_v59, %v4782_v60 }
 0x33d   : > { %v5272_v0 = vpop.f32.mrb[6].mxu1  ;;  %v1381_v5 = vadd.f32 %v4782_v60, %v1380_v63 }
 0x33e   : > { %v1392_v3 = vadd.f32 %v5272_v0, %v4782_v60  ;;  %v1383_v4 = vpop.f32.mrb[7].mxu1  ;;  %1154 = vmax.xlane.f32.xlu1 %v1153_v1 }
 0x33f   : > { %v1384_v6 = vadd.f32 %v4782_v60, %v1383_v4  ;;  %v4772_v60 = vld [vmem:[%s7109_s8 + $0x1] ss:$0 sm:$0xff] }
 0x340   : > { %v1396_v7 = vpack.c.bf16 %v1392_v3, %v1389_v2 }
 0x341   : > { %v1395_v8 = vpack.c.bf16 %v1384_v6, %v1381_v5 }
 0x342   : > { %v1483_v10 = vsel %vm1082_vm1, %v1396_v7, 0 }
 0x343   : > { %5583 = vmatprep.subr.msk.bf16.mxu1 %vm1082_vm1, %v1395_v8  ;;  %v1480_v9 = vsel %vm1082_vm1, %v1395_v8, 0 }
 0x344   : > { %5282 = vmatpush3.bf16.xpose.msra.mxu1 %v1480_v9  ;;  %v4792_v9 = vld [vmem:[%s7109_s8 + $0x9] ss:$0 sm:$0xff] }
 0x345   : > { %5584 = vmatprep.subr.msk.bf16.mxu1 %vm1082_vm1, %v1396_v7  ;;  %v5713_v7 = vld [vmem:[%s7106_s1 + $0x68] sm:$0xff]  }
 0x34c   : > { %5284 = vmatpush3.bf16.xpose.msra.mxu1 %v1483_v10 }
 0x3c5   : > { %v1146_v11 = vpop.xlane.xlu0 %1145 }
 0x3c6   : > { %v1156_v12 = vsub.f32 %v1130_v49, %v1146_v11  ;;  %v5709_v49 = vld [vmem:[%s7106_s1 + $0x18] sm:$0xff]  }
 0x3c7   : > { %v1149_v13 = vpop.xlane.xlu1 %1148 }
 0x3c8   : > { %v1160_v14 = vmul.f32 1.442695, %v1156_v12  ;;  %v1157_v15 = vsub.f32 %v1133_v54, %v1149_v13 }
 0x3c9   : > { %v1152_v16 = vpop.xlane.xlu0 %1151 }
 0x3ca   : > { %5770 = vpow2.f32 %v1160_v14  ;;  %v1162_v17 = vmul.f32 1.442695, %v1157_v15  ;;  %v1158_v18 = vsub.f32 %v1138_v53, %v1152_v16  ;;  %v5712_v53 = vld [vmem:[%s7106_s1 + $0x60] sm:$0xff]  }
 0x3cb   : > { %v1155_v19 = vpop.xlane.xlu1 %1154  ;;  %5305 = vmatprep.subr.bf16.mxu1 %v5712_v53 }
 0x3cc   : > { %5772 = vpow2.f32 %v1162_v17  ;;  %v1164_v20 = vmul.f32 1.442695, %v1158_v18  ;;  %v1159_v21 = vsub.f32 %v1141_v56, %v1155_v19 }
 0x3ce   : > { %5774 = vpow2.f32 %v1164_v20  ;;  %v1166_v22 = vmul.f32 1.442695, %v1159_v21 }
 0x3d0   : > { %5776 = vpow2.f32 %v1166_v22 }
 0x3d4   : > { %v5771_v23 = vpop.eup %5770 }
 0x3d5   : > { %v1168_v24 = vsel %vm772_vm0, %v5771_v23, 0.0 }
 0x3d6   : > { %v5773_v25 = vpop.eup %5772  ;;  %1169 = vadd.xlane.f32.xlu0 %v1168_v24 }
 0x3d7   : > { %v1171_v26 = vsel %vm772_vm0, %v5773_v25, 0.0 }
 0x3d8   : > { %v5775_v27 = vpop.eup %5774  ;;  %1172 = vadd.xlane.f32.xlu1 %v1171_v26 }
 0x3d9   : > { %v1174_v28 = vsel %vm772_vm0, %v5775_v27, 0.0 }
 0x3da   : > { %v5777_v29 = vpop.eup %5776  ;;  %1175 = vadd.xlane.f32.xlu0 %v1174_v28 }
 0x3db   : > { %v1177_v30 = vsel %vm772_vm0, %v5777_v29, 0.0 }
 0x3dc   : > { %1178 = vadd.xlane.f32.xlu1 %v1177_v30  ;;  %v4816_v30 = vld [vmem:[%s7109_s8 + $0x6] ss:$0 sm:$0xff] }
 0x463   : > { %v1170_v32 = vpop.xlane.xlu0 %1169 }
 0x464   : > { %5778 = vrcp.f32 %v1170_v32 }
 0x465   : > { %v1173_v33 = vpop.xlane.xlu1 %1172 }
 0x466   : > { %5780 = vrcp.f32 %v1173_v33 }
 0x467   : > { %v1176_v34 = vpop.xlane.xlu0 %1175 }
 0x468   : > { %5782 = vrcp.f32 %v1176_v34 }
 0x469   : > { %v1179_v35 = vpop.xlane.xlu1 %1178 }
 0x46a   : > { %5784 = vrcp.f32 %v1179_v35 }
 0x46e   : > { %v5779_v36 = vpop.eup %5778 }
 0x46f   : > { %v1184_v38 = vmul.f32 %v5779_v36, %v5771_v23 }
 0x470   : > { %v5781_v37 = vpop.eup %5780 }
 0x471   : > { %v1185_v39 = vmul.f32 %v5781_v37, %v5773_v25 }
 0x472   : > { %v5783_v40 = vpop.eup %5782 }
 0x473   : > { %v1188_v41 = vpack.c.bf16 %v1185_v39, %v1184_v38  ;;  %v1186_v44 = vmul.f32 %v5783_v40, %v5775_v27 }
 0x474   : > { %v5785_v42 = vpop.eup %5784 }
 0x475   : > { %v1187_v46 = vmul.f32 %v5785_v42, %v5777_v29  ;;  %5253 = vmatprep.mubr.msk.bf16.mxu0 %vm772_vm0, %v1188_v41 }
 0x477   : > { %v1189_v48 = vpack.c.bf16 %v1187_v46, %v1186_v44 }
 0x479   : > { %5254 = vmatmul.mubr.msk.bf16.vlgmr.msra.gmra.mrb[12].mxu0 %vm772_vm0, %v1189_v48 }
 0x47a   : > { %5258 = vmatpush3.bf16.msra.mxu0 %v5708_v31  ;;  %5261 = vmatprep.mubr.msk.bf16.mxu0 %vm772_vm0, %v6192_v58 }
 0x47b   : > { %5259 = vmatprep.subr.bf16.mxu0 %v5709_v49 }
 0x47e   : > { %5260 = vmatpush3.bf16.msra.mxu0 %v5709_v49 }
 0x47f   : > { %5273 = vmatprep.subr.bf16.mxu0 %v5710_v51 }
 0x481   : > { %5262 = vmatmul.mubr.msk.bf16.vlgmr.msra.gmra.mrb[16].mxu0 %vm772_vm0, %v6196_v62 }
 0x482   : > { %5274 = vmatpush3.bf16.msra.mxu0 %v5710_v51  ;;  %5277 = vmatprep.mubr.msk.bf16.mxu0 %vm772_vm0, %v6192_v58 }
 0x483   : > { %5275 = vmatprep.subr.bf16.mxu0 %v5711_v52 }
 0x486   : > { %5276 = vmatpush3.bf16.msra.mxu0 %v5711_v52 }
 0x489   : > { %5278 = vmatmul.mubr.msk.bf16.vlgmr.msra.gmra.mrb[20].mxu0 %vm772_vm0, %v6196_v62 }
 0x54c   : > { %v6310_v54 = vpop.f32.mrb[12].mxu0 }
 0x54d   : > { %v6312_v55 = vpop.f32.mrb[13].mxu0 }
 0x54e   : > { %v6314_v56 = vpop.f32.mrb[14].mxu0 }
 0x54f   : > { %v6316_v57 = vpop.f32.mrb[15].mxu0 }
 0x554   : > { %v5263_v59 = vpop.f32.mrb[16].mxu0 }
 0x555   : > { %v1304_v61 = vpop.f32.mrb[17].mxu0  ;;  %v1313_v0 = vadd.f32 %v5263_v59, %v4772_v60 }
 0x556   : > { %v5264_v63 = vpop.f32.mrb[18].mxu0  ;;  %v1305_v3 = vadd.f32 %v4772_v60, %v1304_v61 }
 0x557   : > { %v1316_v1 = vadd.f32 %v5264_v63, %v4772_v60  ;;  %v1307_v2 = vpop.f32.mrb[19].mxu0 }
 0x558   : > { %v1308_v4 = vadd.f32 %v4772_v60, %v1307_v2 }
 0x559   : > { %v1320_v5 = vpack.c.bf16 %v1316_v1, %v1313_v0 }
 0x55a   : > { %v1319_v6 = vpack.c.bf16 %v1308_v4, %v1305_v3 }
 0x55c   : > { %v5279_v8 = vpop.f32.mrb[20].mxu0  ;;  %5285 = vmatprep.mubr.msk.bf16.mxu1 %vm1082_vm1, %v1319_v6 }
 0x55d   : > { %v1456_v10 = vpop.f32.mrb[21].mxu0  ;;  %5286 = vmatmul.mubr.msk.bf16.vlgmr.msra.gmra.mrb[8].mxu1 %vm1082_vm1, %v1320_v5  ;;  %v1465_v12 = vadd.f32 %v5279_v8, %v4792_v9 }
 0x55e   : > { %v5280_v11 = vpop.f32.mrb[22].mxu0  ;;  %5306 = vmatpush3.bf16.msra.mxu1 %v5712_v53  ;;  %5309 = vmatprep.mubr.msk.bf16.mxu1 %vm772_vm0, %v6192_v58  ;;  %v1457_v15 = vadd.f32 %v4792_v9, %v1456_v10  ;;  %v5714_v10 = vld [vmem:[%s7106_s1 + $0x20] sm:$0xff]  }
 0x55f   : > { %v1468_v13 = vadd.f32 %v5280_v11, %v4792_v9  ;;  %v1459_v14 = vpop.f32.mrb[23].mxu0  ;;  %5307 = vmatprep.subr.bf16.mxu1 %v5713_v7 }
 0x560   : > { %v1460_v16 = vadd.f32 %v4792_v9, %v1459_v14 }
 0x561   : > { %v1472_v17 = vpack.c.bf16 %v1468_v13, %v1465_v12 }
 0x562   : > { %v1471_v18 = vpack.c.bf16 %v1460_v16, %v1457_v15  ;;  %5308 = vmatpush3.bf16.msra.mxu1 %v5713_v7 }
 0x564   : > { %5289 = vmatprep.subr.bf16.mxu0 %v1471_v18 }
 0x565   : > { %5290 = vmatpush3.bf16.msra.mxu0 %v1471_v18  ;;  %5310 = vmatmul.mubr.msk.bf16.vlgmr.msra.gmra.mrb[12].mxu1 %vm772_vm0, %v6196_v62 }
 0x566   : > { %5291 = vmatprep.subr.bf16.mxu0 %v1472_v17 }
 0x569   : > { %5292 = vmatpush3.bf16.msra.mxu0 %v1472_v17 }
 0x56a   : > { %5297 = vmatprep.subr.bf16.mxu0 %v5714_v10 }
 0x630   : > { %v5287_v19 = vpop.f32.mrb[8].mxu1 }
 0x631   : > { %v1519_v20 = vpop.f32.mrb[9].mxu1  ;;  %v1528_v24 = vadd.f32 %v5287_v19, %v6260_v45 }
 0x632   : > { %v1520_v21 = vadd.f32 %v1519_v20, %v6255_v43  ;;  %v5288_v22 = vpop.f32.mrb[10].mxu1 }
 0x633   : > { %v1522_v23 = vpop.f32.mrb[11].mxu1  ;;  %v1531_v27 = vadd.f32 %v5288_v22, %v6265_v50  ;;  %v1540_v31 = vsel %vm772_vm0, %v1528_v24, -inf }
 0x634   : > { %v1523_v25 = vadd.f32 %v1522_v23, %v6262_v47  ;;  %v1534_v26 = vsel %vm772_vm0, %v1520_v21, -inf }
 0x635   : > { %1535 = vmax.xlane.f32.xlu0 %v1534_v26  ;;  %v1543_v34 = vsel %vm772_vm0, %v1531_v27, -inf  ;;  %v5716_v26 = vld [vmem:[%s7106_s1 + $0xa0] sm:$0xff]  }
 0x636   : > { %v1537_v28 = vsel %vm772_vm0, %v1523_v25, -inf }
 0x637   : > { %1538 = vmax.xlane.f32.xlu1 %v1537_v28  ;;  %v5718_v28 = vld [vmem:[%s7106_s1 + $0x70] sm:$0xff]  }
 0x638   : > { %v5311_v29 = vpop.f32.mrb[12].mxu1 }
 0x639   : > { %v1770_v32 = vpop.f32.mrb[13].mxu1  ;;  %1541 = vmax.xlane.f32.xlu0 %v1540_v31  ;;  %v1779_v35 = vadd.f32 %v5311_v29, %v4816_v30 }
 0x63a   : > { %v5312_v33 = vpop.f32.mrb[14].mxu1  ;;  %v1771_v38 = vadd.f32 %v4816_v30, %v1770_v32 }
 0x63b   : > { %v1782_v36 = vadd.f32 %v5312_v33, %v4816_v30  ;;  %v1773_v37 = vpop.f32.mrb[15].mxu1  ;;  %1544 = vmax.xlane.f32.xlu1 %v1543_v34 }
 0x63c   : > { %v1774_v39 = vadd.f32 %v4816_v30, %v1773_v37 }
 0x63d   : > { %v1786_v40 = vpack.c.bf16 %v1782_v36, %v1779_v35  ;;  %v4806_v36 = vld [vmem:[%s7109_s8 + $0x2] ss:$0 sm:$0xff] }
 0x63e   : > { %v1785_v41 = vpack.c.bf16 %v1774_v39, %v1771_v38 }
 0x63f   : > { %v1873_v44 = vsel %vm1082_vm1, %v1786_v40, 0 }
 0x640   : > { %5585 = vmatprep.subr.msk.bf16.mxu1 %vm1082_vm1, %v1785_v41  ;;  %v1870_v42 = vsel %vm1082_vm1, %v1785_v41, 0 }
 0x641   : > { %5322 = vmatpush3.bf16.xpose.msra.mxu1 %v1870_v42 }
 0x642   : > { %5586 = vmatprep.subr.msk.bf16.mxu1 %vm1082_vm1, %v1786_v40 }
 0x649   : > { %5324 = vmatpush3.bf16.xpose.msra.mxu1 %v1873_v44 }
 0x64a   : > { %5345 = vmatprep.subr.bf16.mxu1 %v5718_v28 }
 0x6c2   : > { %v1536_v46 = vpop.xlane.xlu0 %1535 }
 0x6c3   : > { %v1546_v48 = vsub.f32 %v1520_v21, %v1536_v46 }
 0x6c4   : > { %v1539_v49 = vpop.xlane.xlu1 %1538 }
 0x6c5   : > { %v1550_v51 = vmul.f32 1.442695, %v1546_v48  ;;  %v1547_v52 = vsub.f32 %v1523_v25, %v1539_v49  ;;  %v5715_v25 = vld [vmem:[%s7106_s1 + $0x28] sm:$0xff]   ;;  %v5719_v49 = vld [vmem:[%s7106_s1 + $0x78] sm:$0xff]  }
 0x6c6   : > { %v1542_v53 = vpop.xlane.xlu0 %1541 }
 0x6c7   : > { %5786 = vpow2.f32 %v1550_v51  ;;  %v1552_v59 = vmul.f32 1.442695, %v1547_v52  ;;  %v1548_v60 = vsub.f32 %v1528_v24, %v1542_v53  ;;  %v4826_v52 = vld [vmem:[%s7109_s8 + $0xa] ss:$0 sm:$0xff] }
 0x6c8   : > { %v1545_v61 = vpop.xlane.xlu1 %1544 }
 0x6c9   : > { %5788 = vpow2.f32 %v1552_v59  ;;  %v1554_v63 = vmul.f32 1.442695, %v1548_v60  ;;  %v1549_v0 = vsub.f32 %v1531_v27, %v1545_v61  ;;  %v5717_v27 = vld [vmem:[%s7106_s1 + $0xa8] sm:$0xff]  }
 0x6cb   : > { %5790 = vpow2.f32 %v1554_v63  ;;  %v1556_v1 = vmul.f32 1.442695, %v1549_v0 }
 0x6cd   : > { %5792 = vpow2.f32 %v1556_v1 }
 0x6d1   : > { %v5787_v2 = vpop.eup %5786 }
 0x6d2   : > { %v1558_v3 = vsel %vm772_vm0, %v5787_v2, 0.0 }
 0x6d3   : > { %v5789_v4 = vpop.eup %5788  ;;  %1559 = vadd.xlane.f32.xlu0 %v1558_v3 }
 0x6d4   : > { %v1561_v5 = vsel %vm772_vm0, %v5789_v4, 0.0 }
 0x6d5   : > { %v5791_v6 = vpop.eup %5790  ;;  %1562 = vadd.xlane.f32.xlu1 %v1561_v5 }
 0x6d6   : > { %v1564_v7 = vsel %vm772_vm0, %v5791_v6, 0.0 }
 0x6d7   : > { %v5793_v8 = vpop.eup %5792  ;;  %1565 = vadd.xlane.f32.xlu0 %v1564_v7 }
 0x6d8   : > { %v1567_v9 = vsel %vm772_vm0, %v5793_v8, 0.0 }
 0x6d9   : > { %1568 = vadd.xlane.f32.xlu1 %v1567_v9 }
 0x760   : > { %v1560_v11 = vpop.xlane.xlu0 %1559 }
 0x761   : > { %5794 = vrcp.f32 %v1560_v11 }
 0x762   : > { %v1563_v12 = vpop.xlane.xlu1 %1562 }
 0x763   : > { %5796 = vrcp.f32 %v1563_v12 }
 0x764   : > { %v1566_v13 = vpop.xlane.xlu0 %1565 }
 0x765   : > { %5798 = vrcp.f32 %v1566_v13 }
 0x766   : > { %v1569_v14 = vpop.xlane.xlu1 %1568 }
 0x767   : > { %5800 = vrcp.f32 %v1569_v14 }
 0x76b   : > { %v5795_v15 = vpop.eup %5794 }
 0x76c   : > { %v1574_v17 = vmul.f32 %v5795_v15, %v5787_v2  ;;  %v4850_v15 = vld [vmem:[%s7109_s8 + $0x7] ss:$0 sm:$0xff] }
 0x76d   : > { %v5797_v16 = vpop.eup %5796 }
 0x76e   : > { %v1575_v18 = vmul.f32 %v5797_v16, %v5789_v4 }
 0x76f   : > { %v5799_v19 = vpop.eup %5798 }
 0x770   : > { %v1578_v20 = vpack.c.bf16 %v1575_v18, %v1574_v17  ;;  %v1576_v22 = vmul.f32 %v5799_v19, %v5791_v6 }
 0x771   : > { %v5801_v21 = vpop.eup %5800 }
 0x772   : > { %v1577_v23 = vmul.f32 %v5801_v21, %v5793_v8  ;;  %5293 = vmatprep.mubr.msk.bf16.mxu0 %vm772_vm0, %v1578_v20 }
 0x774   : > { %v1579_v24 = vpack.c.bf16 %v1577_v23, %v1576_v22 }
 0x776   : > { %5294 = vmatmul.mubr.msk.bf16.vlgmr.msra.gmra.mrb[24].mxu0 %vm772_vm0, %v1579_v24 }
 0x777   : > { %5298 = vmatpush3.bf16.msra.mxu0 %v5714_v10  ;;  %5301 = vmatprep.mubr.msk.bf16.mxu0 %vm772_vm0, %v6192_v58 }
 0x778   : > { %5299 = vmatprep.subr.bf16.mxu0 %v5715_v25 }
 0x77b   : > { %5300 = vmatpush3.bf16.msra.mxu0 %v5715_v25 }
 0x77c   : > { %5313 = vmatprep.subr.bf16.mxu0 %v5716_v26 }
 0x77e   : > { %5302 = vmatmul.mubr.msk.bf16.vlgmr.msra.gmra.mrb[28].mxu0 %vm772_vm0, %v6196_v62 }
 0x77f   : > { %5314 = vmatpush3.bf16.msra.mxu0 %v5716_v26  ;;  %5317 = vmatprep.mubr.msk.bf16.mxu0 %vm772_vm0, %v6192_v58 }
 0x780   : > { %5315 = vmatprep.subr.bf16.mxu0 %v5717_v27 }
 0x783   : > { %5316 = vmatpush3.bf16.msra.mxu0 %v5717_v27 }
 0x786   : > { %5318 = vmatmul.mubr.msk.bf16.vlgmr.msra.gmra.mrb[32].mxu0 %vm772_vm0, %v6196_v62 }
 0x849   : > { %v6377_v29 = vpop.f32.mrb[24].mxu0 }
 0x84a   : > { %v6379_v30 = vpop.f32.mrb[25].mxu0 }
 0x84b   : > { %v6381_v31 = vpop.f32.mrb[26].mxu0 }
 0x84c   : > { %v5645_v32 = vpack.i.bf16 %v6381_v31, %v6377_v29  ;;  %v6385_v33 = vpop.f32.mrb[27].mxu0 }
 0x84d   : > { %v5640_v34 = vpack.i.bf16 %v6385_v33, %v6379_v30 }
 0x851   : > { %v5303_v35 = vpop.f32.mrb[28].mxu0 }
 0x852   : > { %v1694_v37 = vpop.f32.mrb[29].mxu0  ;;  %v1703_v39 = vadd.f32 %v5303_v35, %v4806_v36 }
 0x853   : > { %v5304_v38 = vpop.f32.mrb[30].mxu0  ;;  %v1695_v42 = vadd.f32 %v4806_v36, %v1694_v37 }
 0x854   : > { %v1706_v40 = vadd.f32 %v5304_v38, %v4806_v36  ;;  %v1697_v41 = vpop.f32.mrb[31].mxu0 }
 0x855   : > { %v1698_v44 = vadd.f32 %v4806_v36, %v1697_v41 }
 0x856   : > { %v1710_v46 = vpack.c.bf16 %v1706_v40, %v1703_v39 }
 0x857   : > { %v1709_v48 = vpack.c.bf16 %v1698_v44, %v1695_v42 }
 0x859   : > { %v5319_v51 = vpop.f32.mrb[32].mxu0  ;;  %5325 = vmatprep.mubr.msk.bf16.mxu1 %vm1082_vm1, %v1709_v48 }
 0x85a   : > { %v1846_v53 = vpop.f32.mrb[33].mxu0  ;;  %5326 = vmatmul.mubr.msk.bf16.vlgmr.msra.gmra.mrb[16].mxu1 %vm1082_vm1, %v1710_v46  ;;  %v1855_v60 = vadd.f32 %v5319_v51, %v4826_v52 }
 0x85b   : > { %v5320_v59 = vpop.f32.mrb[34].mxu0  ;;  %5346 = vmatpush3.bf16.msra.mxu1 %v5718_v28  ;;  %5349 = vmatprep.mubr.msk.bf16.mxu1 %vm772_vm0, %v6192_v58  ;;  %v1847_v0 = vadd.f32 %v4826_v52, %v1846_v53 }
 0x85c   : > { %v1858_v61 = vadd.f32 %v5320_v59, %v4826_v52  ;;  %v1849_v63 = vpop.f32.mrb[35].mxu0  ;;  %5347 = vmatprep.subr.bf16.mxu1 %v5719_v49 }
 0x85d   : > { %v1850_v1 = vadd.f32 %v4826_v52, %v1849_v63 }
 0x85e   : > { %v1862_v2 = vpack.c.bf16 %v1858_v61, %v1855_v60 }
 0x85f   : > { %v1861_v3 = vpack.c.bf16 %v1850_v1, %v1847_v0  ;;  %5348 = vmatpush3.bf16.msra.mxu1 %v5719_v49  ;;  %v5720_v1 = vld [vmem:[%s7106_s1 + $0x30] sm:$0xff]  }
 0x861   : > { %5329 = vmatprep.subr.bf16.mxu0 %v1861_v3 }
 0x862   : > { %5330 = vmatpush3.bf16.msra.mxu0 %v1861_v3  ;;  %5350 = vmatmul.mubr.msk.bf16.vlgmr.msra.gmra.mrb[20].mxu1 %vm772_vm0, %v6196_v62 }
 0x863   : > { %5331 = vmatprep.subr.bf16.mxu0 %v1862_v2 }
 0x866   : > { %5332 = vmatpush3.bf16.msra.mxu0 %v1862_v2 }
 0x867   : > { %5337 = vmatprep.subr.bf16.mxu0 %v5720_v1 }
 0x92d   : > { %v5327_v4 = vpop.f32.mrb[16].mxu1 }
 0x92e   : > { %v1909_v5 = vpop.f32.mrb[17].mxu1  ;;  %v1918_v9 = vadd.f32 %v5327_v4, %v6260_v45 }
 0x92f   : > { %v1910_v6 = vadd.f32 %v1909_v5, %v6255_v43  ;;  %v5328_v7 = vpop.f32.mrb[18].mxu1 }
 0x930   : > { %v1912_v8 = vpop.f32.mrb[19].mxu1  ;;  %v1921_v12 = vadd.f32 %v5328_v7, %v6265_v50  ;;  %v1930_v16 = vsel %vm772_vm0, %v1918_v9, -inf }
 0x931   : > { %v1913_v10 = vadd.f32 %v1912_v8, %v6262_v47  ;;  %v1924_v11 = vsel %vm772_vm0, %v1910_v6, -inf }
 0x932   : > { %1925 = vmax.xlane.f32.xlu0 %v1924_v11  ;;  %v1933_v19 = vsel %vm772_vm0, %v1921_v12, -inf }
 0x933   : > { %v1927_v13 = vsel %vm772_vm0, %v1913_v10, -inf }
 0x934   : > { %1928 = vmax.xlane.f32.xlu1 %v1927_v13 }
 0x935   : > { %v5351_v14 = vpop.f32.mrb[20].mxu1 }
 0x936   : > { %v2160_v17 = vpop.f32.mrb[21].mxu1  ;;  %1931 = vmax.xlane.f32.xlu0 %v1930_v16  ;;  %v2169_v20 = vadd.f32 %v5351_v14, %v4850_v15  ;;  %v5721_v16 = vld [vmem:[%s7106_s1 + $0x38] sm:$0xff]  }
 0x937   : > { %v5352_v18 = vpop.f32.mrb[22].mxu1  ;;  %v2161_v23 = vadd.f32 %v4850_v15, %v2160_v17  ;;  %v5722_v17 = vld [vmem:[%s7106_s1 + $0xb0] sm:$0xff]  }
 0x938   : > { %v2172_v21 = vadd.f32 %v5352_v18, %v4850_v15  ;;  %v2163_v22 = vpop.f32.mrb[23].mxu1  ;;  %1934 = vmax.xlane.f32.xlu1 %v1933_v19  ;;  %v5723_v18 = vld [vmem:[%s7106_s1 + $0xb8] sm:$0xff]  }
 0x939   : > { %v2164_v24 = vadd.f32 %v4850_v15, %v2163_v22 }
 0x93a   : > { %v2176_v25 = vpack.c.bf16 %v2172_v21, %v2169_v20 }
 0x93b   : > { %v2175_v26 = vpack.c.bf16 %v2164_v24, %v2161_v23 }
 0x93c   : > { %v2263_v28 = vsel %vm1082_vm1, %v2176_v25, 0 }
 0x93d   : > { %5587 = vmatprep.subr.msk.bf16.mxu1 %vm1082_vm1, %v2175_v26  ;;  %v2260_v27 = vsel %vm1082_vm1, %v2175_v26, 0 }
 0x93e   : > { %5362 = vmatpush3.bf16.xpose.msra.mxu1 %v2260_v27 }
 0x93f   : > { %5588 = vmatprep.subr.msk.bf16.mxu1 %vm1082_vm1, %v2176_v25  ;;  %v4840_v25 = vld [vmem:[%s7109_s8 + $0x3] ss:$0 sm:$0xff] }
 0x946   : > { %5364 = vmatpush3.bf16.xpose.msra.mxu1 %v2263_v28 }
 0x9bf   : > { %v1926_v35 = vpop.xlane.xlu0 %1925 }
 0x9c0   : > { %v1936_v36 = vsub.f32 %v1910_v6, %v1926_v35 }
 0x9c1   : > { %v1929_v37 = vpop.xlane.xlu1 %1928 }
 0x9c2   : > { %v1940_v38 = vmul.f32 1.442695, %v1936_v36  ;;  %v1937_v39 = vsub.f32 %v1913_v10, %v1929_v37 }
 0x9c3   : > { %v1932_v40 = vpop.xlane.xlu0 %1931 }
 0x9c4   : > { %5802 = vpow2.f32 %v1940_v38  ;;  %v1942_v41 = vmul.f32 1.442695, %v1937_v39  ;;  %v1938_v42 = vsub.f32 %v1918_v9, %v1932_v40 }
 0x9c5   : > { %v1935_v44 = vpop.xlane.xlu1 %1934 }
 0x9c6   : > { %5804 = vpow2.f32 %v1942_v41  ;;  %v1944_v46 = vmul.f32 1.442695, %v1938_v42  ;;  %v1939_v48 = vsub.f32 %v1921_v12, %v1935_v44  ;;  %v4860_v41 = vld [vmem:[%s7109_s8 + $0xb] ss:$0 sm:$0xff] }
 0x9c8   : > { %5806 = vpow2.f32 %v1944_v46  ;;  %v1946_v49 = vmul.f32 1.442695, %v1939_v48 }
 0x9ca   : > { %5808 = vpow2.f32 %v1946_v49 }
 0x9ce   : > { %v5803_v51 = vpop.eup %5802 }
 0x9cf   : > { %v1948_v52 = vsel %vm772_vm0, %v5803_v51, 0.0 }
 0x9d0   : > { %v5805_v53 = vpop.eup %5804  ;;  %1949 = vadd.xlane.f32.xlu0 %v1948_v52 }
 0x9d1   : > { %v1951_v59 = vsel %vm772_vm0, %v5805_v53, 0.0 }
 0x9d2   : > { %v5807_v60 = vpop.eup %5806  ;;  %1952 = vadd.xlane.f32.xlu1 %v1951_v59 }
 0x9d3   : > { %v1954_v61 = vsel %vm772_vm0, %v5807_v60, 0.0 }
 0x9d4   : > { %v5809_v63 = vpop.eup %5808  ;;  %1955 = vadd.xlane.f32.xlu0 %v1954_v61 }
 0x9d5   : > { %v1957_v0 = vsel %vm772_vm0, %v5809_v63, 0.0 }
 0x9d6   : > { %1958 = vadd.xlane.f32.xlu1 %v1957_v0 }
 0xa5d   : > { %v1950_v2 = vpop.xlane.xlu0 %1949 }
 0xa5e   : > { %5810 = vrcp.f32 %v1950_v2 }
 0xa5f   : > { %v1953_v3 = vpop.xlane.xlu1 %1952 }
 0xa60   : > { %5812 = vrcp.f32 %v1953_v3 }
 0xa61   : > { %v1956_v4 = vpop.xlane.xlu0 %1955 }
 0xa62   : > { %5814 = vrcp.f32 %v1956_v4 }
 0xa63   : > { %v1959_v5 = vpop.xlane.xlu1 %1958 }
 0xa64   : > { %5816 = vrcp.f32 %v1959_v5 }
 0xa68   : > { %v5811_v6 = vpop.eup %5810 }
 0xa69   : > { %v1964_v8 = vmul.f32 %v5811_v6, %v5803_v51 }
 0xa6a   : > { %v5813_v7 = vpop.eup %5812 }
 0xa6b   : > { %v1965_v9 = vmul.f32 %v5813_v7, %v5805_v53 }
 0xa6c   : > { %v5815_v10 = vpop.eup %5814 }
 0xa6d   : > { %v1968_v11 = vpack.c.bf16 %v1965_v9, %v1964_v8  ;;  %v1966_v13 = vmul.f32 %v5815_v10, %v5807_v60 }
 0xa6e   : > { %v5817_v12 = vpop.eup %5816 }
 0xa6f   : > { %v1967_v14 = vmul.f32 %v5817_v12, %v5809_v63  ;;  %5333 = vmatprep.mubr.msk.bf16.mxu0 %vm772_vm0, %v1968_v11 }
 0xa71   : > { %v1969_v15 = vpack.c.bf16 %v1967_v14, %v1966_v13 }
 0xa73   : > { %5334 = vmatmul.mubr.msk.bf16.vlgmr.msra.gmra.mrb[36].mxu0 %vm772_vm0, %v1969_v15 }
 0xa74   : > { %5338 = vmatpush3.bf16.msra.mxu0 %v5720_v1  ;;  %5341 = vmatprep.mubr.msk.bf16.mxu0 %vm772_vm0, %v6192_v58 }
 0xa75   : > { %5339 = vmatprep.subr.bf16.mxu0 %v5721_v16 }
 0xa78   : > { %5340 = vmatpush3.bf16.msra.mxu0 %v5721_v16 }
 0xa79   : > { %5353 = vmatprep.subr.bf16.mxu0 %v5722_v17 }
 0xa7b   : > { %5342 = vmatmul.mubr.msk.bf16.vlgmr.msra.gmra.mrb[40].mxu0 %vm772_vm0, %v6196_v62 }
 0xa7c   : > { %5354 = vmatpush3.bf16.msra.mxu0 %v5722_v17  ;;  %5357 = vmatprep.mubr.msk.bf16.mxu0 %vm772_vm0, %v6192_v58 }
 0xa7d   : > { %5355 = vmatprep.subr.bf16.mxu0 %v5723_v18 }
 0xa80   : > { %5356 = vmatpush3.bf16.msra.mxu0 %v5723_v18 }
 0xa83   : > { %5358 = vmatmul.mubr.msk.bf16.vlgmr.msra.gmra.mrb[44].mxu0 %vm772_vm0, %v6196_v62 }
 0xb46   : > { %v6445_v19 = vpop.f32.mrb[36].mxu0 }
 0xb47   : > { %v6447_v20 = vpop.f32.mrb[37].mxu0 }
 0xb48   : > { %v6449_v21 = vpop.f32.mrb[38].mxu0 }
 0xb49   : > { %v5655_v22 = vpack.i.bf16 %v6449_v21, %v6445_v19  ;;  %v6453_v23 = vpop.f32.mrb[39].mxu0  ;;  %v5724_v21 = vld [vmem:[%s7049_s9] sm:$0xff]  }
 0xb4a   : > { %v5650_v24 = vpack.i.bf16 %v6453_v23, %v6447_v20 }
 0xb4e   : > { %v5343_v58 = vpop.f32.mrb[40].mxu0 }
 0xb4f   : > { %v2084_v62 = vpop.f32.mrb[41].mxu0  ;;  %v2093_v27 = vadd.f32 %v5343_v58, %v4840_v25 }
 0xb50   : > { %v5344_v26 = vpop.f32.mrb[42].mxu0  ;;  %v2085_v36 = vadd.f32 %v4840_v25, %v2084_v62 }
 0xb51   : > { %v2096_v28 = vadd.f32 %v5344_v26, %v4840_v25  ;;  %v2087_v35 = vpop.f32.mrb[43].mxu0 }
 0xb52   : > { %v2088_v37 = vadd.f32 %v4840_v25, %v2087_v35 }
 0xb53   : > { %v2100_v38 = vpack.c.bf16 %v2096_v28, %v2093_v27 }
 0xb54   : > { %v2099_v39 = vpack.c.bf16 %v2088_v37, %v2085_v36 }
 0xb56   : > { %v5359_v40 = vpop.f32.mrb[44].mxu0  ;;  %5365 = vmatprep.mubr.msk.bf16.mxu1 %vm1082_vm1, %v2099_v39 }
 0xb57   : > { %v2236_v42 = vpop.f32.mrb[45].mxu0  ;;  %5366 = vmatmul.mubr.msk.bf16.vlgmr.msra.gmra.mrb[24].mxu1 %vm1082_vm1, %v2100_v38  ;;  %v2245_v46 = vadd.f32 %v5359_v40, %v4860_v41 }
 0xb58   : > { %v5360_v44 = vpop.f32.mrb[46].mxu0  ;;  %v2237_v51 = vadd.f32 %v4860_v41, %v2236_v42 }
 0xb59   : > { %v2248_v48 = vadd.f32 %v5360_v44, %v4860_v41  ;;  %v2239_v49 = vpop.f32.mrb[47].mxu0 }
 0xb5a   : > { %v2240_v52 = vadd.f32 %v4860_v41, %v2239_v49 }
 0xb5b   : > { %v2252_v53 = vpack.c.bf16 %v2248_v48, %v2245_v46 }
 0xb5c   : > { %v2251_v59 = vpack.c.bf16 %v2240_v52, %v2237_v51 }
 0xb5e   : > { %5369 = vmatprep.subr.bf16.mxu0 %v2251_v59 }
 0xb5f   : > { %5370 = vmatpush3.bf16.msra.mxu0 %v2251_v59 }
 0xb60   : > { %5371 = vmatprep.subr.bf16.mxu0 %v2252_v53 }
 0xb63   : > { %5372 = vmatpush3.bf16.msra.mxu0 %v2252_v53 }
 0xb64   : > { %5377 = vmatprep.subr.bf16.mxu0 %v5724_v21 }
 0xc2a   : > { %v5367_v60 = vpop.f32.mrb[24].mxu1 }
 0xc2b   : > { %v2299_v61 = vpop.f32.mrb[25].mxu1  ;;  %v2308_v2 = vadd.f32 %v5367_v60, %v6260_v45 }
 0xc2c   : > { %v2300_v63 = vadd.f32 %v2299_v61, %v6255_v43  ;;  %v5368_v0 = vpop.f32.mrb[26].mxu1 }
 0xc2d   : > { %v2302_v1 = vpop.f32.mrb[27].mxu1  ;;  %v2311_v5 = vadd.f32 %v5368_v0, %v6265_v50  ;;  %v2320_v7 = vsel %vm772_vm0, %v2308_v2, -inf }
 0xc2e   : > { %v2303_v3 = vadd.f32 %v2302_v1, %v6262_v47  ;;  %v2314_v4 = vsel %vm772_vm0, %v2300_v63, -inf }
 0xc2f   : > { %2315 = vmax.xlane.f32.xlu0 %v2314_v4  ;;  %v2323_v8 = vsel %vm772_vm0, %v2311_v5, -inf }
 0xc30   : > { %v2317_v6 = vsel %vm772_vm0, %v2303_v3, -inf }
 0xc31   : > { %2318 = vmax.xlane.f32.xlu1 %v2317_v6 }
 0xc33   : > { %2321 = vmax.xlane.f32.xlu0 %v2320_v7 }
 0xc35   : > { %2324 = vmax.xlane.f32.xlu1 %v2323_v8 }
 0xcbc   : > { %v2316_v43 = vpop.xlane.xlu0 %2315 }
 0xcbd   : > { %v2326_v9 = vsub.f32 %v2300_v63, %v2316_v43 }
 0xcbe   : > { %v2319_v10 = vpop.xlane.xlu1 %2318 }
 0xcbf   : > { %v2330_v45 = vmul.f32 1.442695, %v2326_v9  ;;  %v2327_v11 = vsub.f32 %v2303_v3, %v2319_v10 }
 0xcc0   : > { %v2322_v47 = vpop.xlane.xlu0 %2321 }
 0xcc1   : > { %5818 = vpow2.f32 %v2330_v45  ;;  %v2332_v12 = vmul.f32 1.442695, %v2327_v11  ;;  %v2328_v13 = vsub.f32 %v2308_v2, %v2322_v47 }
 0xcc2   : > { %v2325_v14 = vpop.xlane.xlu1 %2324 }
 0xcc3   : > { %5820 = vpow2.f32 %v2332_v12  ;;  %v2334_v50 = vmul.f32 1.442695, %v2328_v13  ;;  %v2329_v15 = vsub.f32 %v2311_v5, %v2325_v14 }
 0xcc5   : > { %5822 = vpow2.f32 %v2334_v50  ;;  %v2336_v16 = vmul.f32 1.442695, %v2329_v15  ;;  %v4869_v15 = vld [vmem:[%s7050_s10] ss:$0 sm:$0xff] }
 0xcc7   : > { %5824 = vpow2.f32 %v2336_v16 }
 0xccb   : > { %v5819_v17 = vpop.eup %5818 }
 0xccc   : > { %v2338_v18 = vsel %vm772_vm0, %v5819_v17, 0.0 }
 0xccd   : > { %v5821_v58 = vpop.eup %5820  ;;  %2339 = vadd.xlane.f32.xlu0 %v2338_v18 }
 0xcce   : > { %v2341_v25 = vsel %vm772_vm0, %v5821_v58, 0.0 }
 0xccf   : > { %v5823_v62 = vpop.eup %5822  ;;  %2342 = vadd.xlane.f32.xlu1 %v2341_v25 }
 0xcd0   : > { %v2344_v26 = vsel %vm772_vm0, %v5823_v62, 0.0 }
 0xcd1   : > { %v5825_v27 = vpop.eup %5824  ;;  %2345 = vadd.xlane.f32.xlu0 %v2344_v26  ;;  %v5914_v26 = vld [vmem:[%s6163_s6] sm:$0xff] }
 0xcd2   : > { %v2347_v28 = vsel %vm772_vm0, %v5825_v27, 0.0 }
 0xcd3   : > { %2348 = vadd.xlane.f32.xlu1 %v2347_v28 }
 0xce4   : > { %5646 = vrot.lane.b32.xlu1 %v5645_v32, %s7081_s4 }
 0xce7   : > { %5641 = vrot.lane.b32.xlu0 %v5640_v34, %s7081_s4 }
 0xce8   : > { %5651 = vrot.lane.b32.xlu1 %v5650_v24, %s7079_s25 }
 0xcec   : > { %5656 = vrot.lane.b32.xlu1 %v5655_v22, %s7079_s25  ;;  %v5725_v22 = vld [vmem:[%s7049_s9 + $0x8] sm:$0xff]   ;;  %s7118_s25 = sld [smem:[#allocation22_spill]] }
 0xd5a   : > { %v2340_v35 = vpop.xlane.xlu0 %2339 }
 0xd5b   : > { %5826 = vrcp.f32 %v2340_v35  ;;  %v5915_v35 = vld [vmem:[%s6163_s6 + $0x10] sm:$0xff] }
 0xd5c   : > { %v2343_v29 = vpop.xlane.xlu1 %2342 }
 0xd5d   : > { %5828 = vrcp.f32 %v2343_v29 }
 0xd5e   : > { %v2346_v31 = vpop.xlane.xlu0 %2345 }
 0xd5f   : > { %5830 = vrcp.f32 %v2346_v31 }
 0xd60   : > { %v2349_v32 = vpop.xlane.xlu1 %2348 }
 0xd61   : > { %5832 = vrcp.f32 %v2349_v32  ;;  %v5916_v32 = vld [vmem:[%s6163_s6 + $0x8] sm:$0xff] }
 0xd62   : > { %v5642_v51 = vpop.permute.xlu0 %5641 }
 0xd63   : > { %v5644_v53 = vunpack.i.h.bf16 %v5642_v51  ;;  %v5643_v59 = vunpack.i.l.bf16 %v5642_v51 }
 0xd64   : > { %v5647_v48 = vpop.permute.xlu1 %5646 }
 0xd65   : > { %v5827_v30 = vpop.eup %5826  ;;  %v5649_v60 = vunpack.i.h.bf16 %v5647_v48  ;;  %v5648_v61 = vunpack.i.l.bf16 %v5647_v48  ;;  %v2464_v3 = vsel %vm1082_vm1, %v6316_v57, %v5644_v53  ;;  %v2463_v4 = vsel %vm1082_vm1, %v6312_v55, %v5643_v59 }
 0xd66   : > { %v2354_v34 = vmul.f32 %v5827_v30, %v5819_v17 }
 0xd67   : > { %v5829_v33 = vpop.eup %5828  ;;  %v2466_v6 = vsel %vm1082_vm1, %v6314_v56, %v5649_v60  ;;  %v2465_v7 = vsel %vm1082_vm1, %v6310_v54, %v5648_v61 }
 0xd68   : > { %v2355_v36 = vmul.f32 %v5829_v33, %v5821_v58  ;;  %v5652_v49 = vpop.permute.xlu1 %5651 }
 0xd69   : > { %v5831_v37 = vpop.eup %5830  ;;  %v5654_v1 = vunpack.i.h.bf16 %v5652_v49  ;;  %v5653_v2 = vunpack.i.l.bf16 %v5652_v49 }
 0xd6a   : > { %v2358_v20 = vpack.c.bf16 %v2355_v36, %v2354_v34  ;;  %v2356_v24 = vmul.f32 %v5831_v37, %v5823_v62  ;;  %v5917_v36 = vld [vmem:[%s6163_s6 + $0x18] sm:$0xff] }
 0xd6b   : > { %v5833_v23 = vpop.eup %5832  ;;  %v2468_v55 = vsel %vm2467_vm2, %v2463_v4, %v5653_v2  ;;  %v2469_v47 = vsel %vm2467_vm2, %v2464_v3, %v5654_v1  ;;  %v5727_v1 = vld [vmem:[%s7053_s13] sm:$0xff]   ;;  %v5728_v2 = vld [vmem:[%s7053_s13 + $0x48] sm:$0xff]  }
 0xd6c   : > { %v2357_v38 = vmul.f32 %v5833_v23, %v5825_v27  ;;  %5373 = vmatprep.mubr.msk.bf16.mxu0 %vm772_vm0, %v2358_v20  ;;  %v5657_v52 = vpop.permute.xlu1 %5656  ;;  %5385 = vmatprep.subr.bf16.mxu1 %v5727_v1  ;;  %v5729_v3 = vld [vmem:[%s7053_s13 + $0x8] sm:$0xff]   ;;  %v5730_v4 = vld [vmem:[%s7053_s13 + $0x80] sm:$0xff]  }
 0xd6d   : > { %v5659_v63 = vunpack.i.h.bf16 %v5657_v52  ;;  %v5658_v0 = vunpack.i.l.bf16 %v5657_v52  ;;  %5386 = vmatpush3.bf16.msra.mxu1 %v5727_v1  ;;  %v4896_v1 = vld [vmem:[%s7054_s14 + $0x8] ss:$0 sm:$0xff] }
 0xd6e   : > { %v2359_v19 = vpack.c.bf16 %v2357_v38, %v2356_v24  ;;  %5387 = vmatprep.subr.bf16.mxu1 %v5729_v3 }
 0xd6f   : > { %v2470_v10 = vsel %vm2467_vm2, %v2465_v7, %v5658_v0  ;;  %v2471_v45 = vsel %vm2467_vm2, %v2466_v6, %v5659_v63  ;;  %v5726_v0 = vld [vmem:[%s7053_s13 + $0x40] sm:$0xff]  }
 0xd70   : > { %5374 = vmatmul.mubr.msk.bf16.vlgmr.msra.gmra.mrb[48].mxu0 %vm772_vm0, %v2359_v19 }
 0xd71   : > { %5378 = vmatpush3.bf16.msra.mxu0 %v5724_v21  ;;  %5388 = vmatpush3.bf16.msra.mxu1 %v5729_v3 }
 0xd72   : > { %5379 = vmatprep.subr.bf16.mxu0 %v5725_v22  ;;  %5401 = vmatprep.subr.bf16.mxu1 %v5730_v4 }
 0xd75   : > { %5380 = vmatpush3.bf16.msra.mxu0 %v5725_v22 }
 0xd76   : > { %5393 = vmatprep.subr.bf16.mxu0 %v5726_v0 }
 0xe43   : > { %v5375_v39 = vpop.f32.mrb[48].mxu0 }
 0xe44   : > { %v2400_v40 = vpop.f32.mrb[49].mxu0 }
 0xe45   : > { %v5376_v41 = vpop.f32.mrb[50].mxu0 }
 0xe46   : > { %v5665_v42 = vpack.i.bf16 %v5376_v41, %v5375_v39  ;;  %v2403_v44 = vpop.f32.mrb[51].mxu0 }
 0xe47   : > { %v5660_v46 = vpack.i.bf16 %v2403_v44, %v2400_v40 }
 0xe48   : > { %5666 = vrot.lane.b32.xlu1 %v5665_v42, %s7077_s2 }
 0xe49   : > { %5661 = vrot.lane.b32.xlu0 %v5660_v46, %s7077_s2 }
 0xeba   : > { %v5667_v5 = vpop.permute.xlu1 %5666 }
 0xebb   : > { %v5669_v8 = vunpack.i.h.bf16 %v5667_v5  ;;  %v5668_v43 = vunpack.i.l.bf16 %v5667_v5  ;;  %v5662_v9 = vpop.permute.xlu0 %5661 }
 0xebc   : > { %v5664_v57 = vunpack.i.h.bf16 %v5662_v9  ;;  %v5663_v11 = vunpack.i.l.bf16 %v5662_v9 }
 0xebd   : > { %v2476_v12 = vsel %vm2472_vm3, %v2471_v45, %v5669_v8  ;;  %v2475_v56 = vsel %vm2472_vm3, %v2470_v10, %v5668_v43 }
 0xebe   : > { %v2478_v13 = vpack.c.bf16 %v2476_v12, %v2475_v56  ;;  %v2473_v54 = vsel %vm2472_vm3, %v2468_v55, %v5663_v11  ;;  %v2474_v14 = vsel %vm2472_vm3, %v2469_v47, %v5664_v57  ;;  %v4874_v56 = vld [vmem:[%s7051_s11] ss:$0 sm:$0xff] }
 0xebf   : > { %v2477_v50 = vpack.c.bf16 %v2474_v14, %v2473_v54 }
 0xec1   : > { %5381 = vmatprep.mubr.msk.bf16.mxu0 %vm772_vm0, %v2477_v50 }
 0xec2   : > { %5382 = vmatmul.mubr.msk.bf16.vlgmr.msra.gmra.mrb[52].mxu0 %vm772_vm0, %v2478_v13 }
 0xec3   : > { %5394 = vmatpush3.bf16.msra.mxu0 %v5726_v0 }
 0xec4   : > { %5395 = vmatprep.subr.bf16.mxu0 %v5728_v2 }
 0xec7   : > { %5396 = vmatpush3.bf16.msra.mxu0 %v5728_v2 }
 0xf95   : > { %v5383_v16 = vpop.f32.mrb[52].mxu0 }
 0xf96   : > { %v2542_v17 = vpop.f32.mrb[53].mxu0  ;;  %v2551_v18 = vadd.f32 %v5383_v16, %v4869_v15  ;;  %v4875_v16 = vld [vmem:[%s7052_s12] ss:$0 sm:$0xff] }
 0xf97   : > { %v2543_v58 = vadd.f32 %v4869_v15, %v2542_v17  ;;  %v5384_v25 = vpop.f32.mrb[54].mxu0 }
 0xf98   : > { %v2545_v62 = vpop.f32.mrb[55].mxu0  ;;  %v6528_v29 = vadd.f32 %v5915_v35, %v2551_v18  ;;  %v2554_v31 = vadd.f32 %v5384_v25, %v4869_v15 }
 0xf99   : > { %v6525_v27 = vadd.f32 %v5914_v26, %v2543_v58  ;;  %v2546_v28 = vadd.f32 %v4869_v15, %v2545_v62 }
 0xf9a   : > { %v6538_v37 = vadd.f32 %v5917_v36, %v2554_v31  ;;  %v2567_v20 = vsel %vm772_vm0, %v6528_v29, 0.0  ;;  %v5731_v36 = vld [vmem:[%s7053_s13 + $0x88] sm:$0xff]  }
 0xf9b   : > { %v6531_v30 = vadd.f32 %v5916_v32, %v2546_v28  ;;  %v2561_v33 = vsel %vm772_vm0, %v6525_v27, 0.0 }
 0xf9c   : > { %2562 = vadd.xlane.f32.xlu0 %v2561_v33  ;;  %v2570_v23 = vsel %vm772_vm0, %v6538_v37, 0.0 }
 0xf9d   : > { %v2564_v34 = vsel %vm772_vm0, %v6531_v30, 0.0 }
 0xf9e   : > { %2565 = vadd.xlane.f32.xlu1 %v2564_v34 }
 0xfa0   : > { %2568 = vadd.xlane.f32.xlu0 %v2567_v20 }
 0xfa4   : > { %2571 = vadd.xlane.f32.xlu0 %v2570_v23  ;;  %v4876_v23 = vld [vmem:[%s7054_s14] ss:$0 sm:$0xff] }
0x1029   : > { %v2563_v24 = vpop.xlane.xlu0 %2562 }
0x102a   : > { %v2573_v38 = vmul.f32 0.03125, %v2563_v24 }
0x102b   : > { %v2566_v19 = vpop.xlane.xlu1 %2565 }
0x102c   : > { %v2577_v21 = vsub.f32 %v6525_v27, %v2573_v38  ;;  %v2574_v22 = vmul.f32 0.03125, %v2566_v19  ;;  %v4886_v38 = vld [vmem:[%s7054_s14 + $0x4] ss:$0 sm:$0xff] }
0x102d   : > { %v2569_v39 = vpop.xlane.xlu0 %2568 }
0x102e   : > { %v2578_v40 = vsub.f32 %v6531_v30, %v2574_v22  ;;  %v2575_v41 = vmul.f32 0.03125, %v2569_v39  ;;  %v2581_v42 = vmul.f32 %v2577_v21, %v2577_v21 }
0x1030   : > { %v2579_v44 = vsub.f32 %v6528_v29, %v2575_v41  ;;  %v2585_v46 = vsel %vm772_vm0, %v2581_v42, 0.0  ;;  %v2582_v48 = vmul.f32 %v2578_v40, %v2578_v40 }
0x1031   : > { %2586 = vadd.xlane.f32.xlu0 %v2585_v46  ;;  %v2572_v49 = vpop.xlane.xlu0 %2571 }
0x1032   : > { %v2576_v51 = vmul.f32 0.03125, %v2572_v49  ;;  %v2588_v52 = vsel %vm772_vm0, %v2582_v48, 0.0  ;;  %v2583_v53 = vmul.f32 %v2579_v44, %v2579_v44 }
0x1033   : > { %2589 = vadd.xlane.f32.xlu1 %v2588_v52 }
0x1034   : > { %v2580_v59 = vsub.f32 %v6538_v37, %v2576_v51  ;;  %v2591_v60 = vsel %vm772_vm0, %v2583_v53, 0.0 }
0x1035   : > { %2592 = vadd.xlane.f32.xlu0 %v2591_v60 }
0x1036   : > { %v2584_v61 = vmul.f32 %v2580_v59, %v2580_v59 }
0x1038   : > { %v2594_v63 = vsel %vm772_vm0, %v2584_v61, 0.0 }
0x1039   : > { %2595 = vadd.xlane.f32.xlu1 %v2594_v63 }
0x10be   : > { %v2587_v5 = vpop.xlane.xlu0 %2586 }
0x10bf   : > { %v2597_v6 = vmul.f32 0.03125, %v2587_v5 }
0x10c0   : > { %v2590_v7 = vpop.xlane.xlu1 %2589 }
0x10c1   : > { %v2601_v8 = vadd.f32 1e-05, %v2597_v6  ;;  %v2598_v43 = vmul.f32 0.03125, %v2590_v7 }
0x10c2   : > { %v2593_v9 = vpop.xlane.xlu0 %2592 }
0x10c3   : > { %5834 = vrsqrt.f32 %v2601_v8  ;;  %v2602_v10 = vadd.f32 1e-05, %v2598_v43  ;;  %v2599_v45 = vmul.f32 0.03125, %v2593_v9 }
0x10c5   : > { %5836 = vrsqrt.f32 %v2602_v10  ;;  %v2603_v57 = vadd.f32 1e-05, %v2599_v45  ;;  %v5732_v45 = vld [vmem:[%s7053_s13 + $0x50] sm:$0xff]  }
0x10c6   : > { %v2596_v11 = vpop.xlane.xlu1 %2595 }
0x10c7   : > { %5838 = vrsqrt.f32 %v2603_v57  ;;  %v2600_v55 = vmul.f32 0.03125, %v2596_v11  ;;  %v5733_v11 = vld [vmem:[%s7053_s13 + $0x58] sm:$0xff]  }
0x10c9   : > { %v2604_v47 = vadd.f32 1e-05, %v2600_v55  ;;  %v4735_v55 = vld [vmem:[%s736_s26] ss:$0 sm:$0xff] }
0x10cb   : > { %5840 = vrsqrt.f32 %v2604_v47  ;;  %v757_v47 = vld [vmem:[%s7113_s22] sm:$0xff] }
0x10cd   : > { %v5835_v12 = vpop.eup %5834 }
0x10ce   : > { %v2609_v13 = vmul.f32 %v5835_v12, %v2577_v21  ;;  %v759_v12 = vld [vmem:[%s7113_s22 + $0x10] sm:$0xff] }
0x10cf   : > { %v5837_v54 = vpop.eup %5836 }
0x10d0   : > { %v2620_v14 = vmul.f32 %v4874_v56, %v2609_v13  ;;  %v2610_v50 = vmul.f32 %v5837_v54, %v2578_v40  ;;  %v6630_v13 = vadd.f32 %v4735_v55, %v757_v47  ;;  %v760_v54 = vld [vmem:[%s7113_s22 + $0x18] sm:$0xff] }
0x10d1   : > { %v5839_v15 = vpop.eup %5838 }
0x10d2   : > { %v2621_v17 = vmul.f32 %v4874_v56, %v2610_v50  ;;  %v2611_v18 = vmul.f32 %v5839_v15, %v2579_v44  ;;  %v2631_v58 = vadd.f32 %v4875_v16, %v2620_v14  ;;  %v6635_v14 = vadd.f32 %v4735_v55, %v759_v12 }
0x10d4   : > { %v2632_v25 = vadd.f32 %v4875_v16, %v2621_v17  ;;  %v2622_v28 = vmul.f32 %v4874_v56, %v2611_v18  ;;  %v6640_v18 = vadd.f32 %v4735_v55, %v760_v54 }
0x10d5   : > { %v5841_v62 = vpop.eup %5840 }
0x10d6   : > { %v6573_v26 = vpack.c.bf16 %v2632_v25, %v2631_v58  ;;  %v2612_v35 = vmul.f32 %v5841_v62, %v2580_v59  ;;  %v2633_v32 = vadd.f32 %v4875_v16, %v2622_v28 }
0x10d8   : > { %v2623_v31 = vmul.f32 %v4874_v56, %v2612_v35  ;;  %5389 = vmatprep.mubr.msk.bf16.mxu1 %vm772_vm0, %v6573_v26  ;;  %5397 = vmatprep.mubr.msk.bf16.mxu0 %vm772_vm0, %v6573_v26  ;;  %v758_v56 = vld [vmem:[%s7113_s22 + $0x8] sm:$0xff] }
0x10d9   : > { %v6637_v15 = vadd.f32 %v4735_v55, %v758_v56 }
0x10da   : > { %v2634_v33 = vadd.f32 %v4875_v16, %v2623_v31 }
0x10dc   : > { %v6579_v34 = vpack.c.bf16 %v2634_v33, %v2633_v32 }
0x10de   : > { %5390 = vmatmul.mubr.msk.bf16.vlgmr.msra.gmra.mrb[28].mxu1 %vm772_vm0, %v6579_v34  ;;  %5398 = vmatmul.mubr.msk.bf16.vlgmr.msra.gmra.mrb[56].mxu0 %vm772_vm0, %v6579_v34 }
0x10df   : > { %5402 = vmatpush3.bf16.msra.mxu1 %v5730_v4  ;;  %5405 = vmatprep.mubr.msk.bf16.mxu1 %vm772_vm0, %v6573_v26 }
0x10e0   : > { %5403 = vmatprep.subr.bf16.mxu1 %v5731_v36 }
0x10e3   : > { %5404 = vmatpush3.bf16.msra.mxu1 %v5731_v36  ;;  %v4920_v36 = vld [vmem:[%s7054_s14 + $0x5] ss:$0 sm:$0xff] }
0x10e6   : > { %5406 = vmatmul.mubr.msk.bf16.vlgmr.msra.gmra.mrb[32].mxu1 %vm772_vm0, %v6579_v34 }
0x11b1   : > { %v5391_v20 = vpop.f32.mrb[28].mxu1  ;;  %v5399_v24 = vpop.f32.mrb[56].mxu0 }
0x11b2   : > { %v2700_v19 = vpop.f32.mrb[29].mxu1  ;;  %v2776_v21 = vpop.f32.mrb[57].mxu0  ;;  %v2709_v40 = vadd.f32 %v5391_v20, %v4876_v23  ;;  %v2785_v41 = vadd.f32 %v5399_v24, %v4886_v38 }
0x11b3   : > { %v5392_v22 = vpop.f32.mrb[30].mxu1  ;;  %v5400_v39 = vpop.f32.mrb[58].mxu0  ;;  %v2701_v49 = vadd.f32 %v4876_v23, %v2700_v19  ;;  %v2777_v51 = vadd.f32 %v4886_v38, %v2776_v21 }
0x11b4   : > { %v2712_v42 = vadd.f32 %v5392_v22, %v4876_v23  ;;  %v2788_v44 = vadd.f32 %v5400_v39, %v4886_v38  ;;  %v2703_v46 = vpop.f32.mrb[31].mxu1  ;;  %v2779_v48 = vpop.f32.mrb[59].mxu0 }
0x11b5   : > { %v2704_v52 = vadd.f32 %v4876_v23, %v2703_v46  ;;  %v2780_v53 = vadd.f32 %v4886_v38, %v2779_v48 }
0x11b6   : > { %v2716_v59 = vpack.c.bf16 %v2712_v42, %v2709_v40  ;;  %v2792_v60 = vpack.c.bf16 %v2788_v44, %v2785_v41 }
0x11b7   : > { %v2715_v61 = vpack.c.bf16 %v2704_v52, %v2701_v49  ;;  %v2791_v63 = vpack.c.bf16 %v2780_v53, %v2777_v51 }
0x11b8   : > { %v2879_v57 = vsel %vm1082_vm1, %v2792_v60, 0 }
0x11b9   : > { %v5407_v0 = vpop.f32.mrb[32].mxu1  ;;  %5589 = vmatprep.subr.msk.bf16.mxu0 %vm1082_vm1, %v2791_v63  ;;  %5413 = vmatprep.mubr.msk.bf16.mxu0 %vm1082_vm1, %v2715_v61  ;;  %v2876_v2 = vsel %vm1082_vm1, %v2791_v63, 0 }
0x11ba   : > { %v2852_v3 = vpop.f32.mrb[33].mxu1  ;;  %5410 = vmatpush3.bf16.xpose.msra.mxu0 %v2876_v2  ;;  %v2861_v5 = vadd.f32 %v5407_v0, %v4896_v1 }
0x11bb   : > { %v5408_v4 = vpop.f32.mrb[34].mxu1  ;;  %5590 = vmatprep.subr.msk.bf16.mxu0 %vm1082_vm1, %v2792_v60  ;;  %v2853_v8 = vadd.f32 %v4896_v1, %v2852_v3 }
0x11bc   : > { %v2864_v6 = vadd.f32 %v5408_v4, %v4896_v1  ;;  %v2855_v7 = vpop.f32.mrb[35].mxu1 }
0x11bd   : > { %v2856_v43 = vadd.f32 %v4896_v1, %v2855_v7 }
0x11be   : > { %v2868_v9 = vpack.c.bf16 %v2864_v6, %v2861_v5 }
0x11bf   : > { %v2867_v10 = vpack.c.bf16 %v2856_v43, %v2853_v8 }
0x11c1   : > { %5417 = vmatprep.subr.bf16.mxu1 %v2867_v10 }
0x11c2   : > { %5412 = vmatpush3.bf16.xpose.msra.mxu0 %v2879_v57  ;;  %5418 = vmatpush3.bf16.msra.mxu1 %v2867_v10  ;;  %v5734_v10 = vld [vmem:[%s7053_s13 + $0x10] sm:$0xff]  }
0x11c3   : > { %5419 = vmatprep.subr.bf16.mxu1 %v2868_v9  ;;  %5433 = vmatprep.subr.bf16.mxu0 %v5732_v45 }
0x11c6   : > { %5420 = vmatpush3.bf16.msra.mxu1 %v2868_v9 }
0x11c7   : > { %5425 = vmatprep.subr.bf16.mxu1 %v5734_v10 }
0x11c9   : > { %5414 = vmatmul.mubr.msk.bf16.vlgmr.msra.gmra.mrb[60].mxu0 %vm1082_vm1, %v2716_v59 }
0x11ca   : > { %5434 = vmatpush3.bf16.msra.mxu0 %v5732_v45  ;;  %5437 = vmatprep.mubr.msk.bf16.mxu0 %vm772_vm0, %v6573_v26 }
0x11cb   : > { %5435 = vmatprep.subr.bf16.mxu0 %v5733_v11 }
0x11ce   : > { %5436 = vmatpush3.bf16.msra.mxu0 %v5733_v11 }
0x11d1   : > { %5438 = vmatmul.mubr.msk.bf16.vlgmr.msra.gmra.mrb[64].mxu0 %vm772_vm0, %v6579_v34 }
0x129c   : > { %v5415_v50 = vpop.f32.mrb[60].mxu0 }
0x129d   : > { %v2915_v16 = vpop.f32.mrb[61].mxu0  ;;  %v2924_v62 = vadd.f32 %v5415_v50, %v6635_v14 }
0x129e   : > { %v2916_v17 = vadd.f32 %v2915_v16, %v6630_v13  ;;  %v5416_v58 = vpop.f32.mrb[62].mxu0 }
0x129f   : > { %v2918_v25 = vpop.f32.mrb[63].mxu0  ;;  %v2927_v31 = vadd.f32 %v5416_v58, %v6640_v18  ;;  %v2936_v20 = vsel %vm772_vm0, %v2924_v62, -inf }
0x12a0   : > { %v2919_v28 = vadd.f32 %v2918_v25, %v6637_v15  ;;  %v2930_v35 = vsel %vm772_vm0, %v2916_v17, -inf }
0x12a1   : > { %2931 = vmax.xlane.f32.xlu0 %v2930_v35  ;;  %v2939_v38 = vsel %vm772_vm0, %v2927_v31, -inf  ;;  %v5736_v35 = vld [vmem:[%s7053_s13 + $0x90] sm:$0xff]  }
0x12a2   : > { %v2933_v32 = vsel %vm772_vm0, %v2919_v28, -inf }
0x12a3   : > { %2934 = vmax.xlane.f32.xlu1 %v2933_v32  ;;  %v5738_v32 = vld [vmem:[%s7053_s13 + $0x60] sm:$0xff]  }
0x12a4   : > { %v5439_v33 = vpop.f32.mrb[64].mxu0 }
0x12a5   : > { %v3166_v23 = vpop.f32.mrb[65].mxu0  ;;  %2937 = vmax.xlane.f32.xlu0 %v2936_v20  ;;  %v3175_v19 = vadd.f32 %v5439_v33, %v4920_v36 }
0x12a6   : > { %v5440_v24 = vpop.f32.mrb[66].mxu0  ;;  %v3167_v39 = vadd.f32 %v4920_v36, %v3166_v23 }
0x12a7   : > { %v3178_v21 = vadd.f32 %v5440_v24, %v4920_v36  ;;  %v3169_v22 = vpop.f32.mrb[67].mxu0  ;;  %2940 = vmax.xlane.f32.xlu1 %v2939_v38  ;;  %v4910_v38 = vld [vmem:[%s7054_s14 + $0x1] ss:$0 sm:$0xff] }
0x12a8   : > { %v3170_v40 = vadd.f32 %v4920_v36, %v3169_v22 }
0x12a9   : > { %v3182_v41 = vpack.c.bf16 %v3178_v21, %v3175_v19 }
0x12aa   : > { %v3181_v42 = vpack.c.bf16 %v3170_v40, %v3167_v39 }
0x12ab   : > { %v3269_v46 = vsel %vm1082_vm1, %v3182_v41, 0 }
0x12ac   : > { %5591 = vmatprep.subr.msk.bf16.mxu0 %vm1082_vm1, %v3181_v42  ;;  %v3266_v44 = vsel %vm1082_vm1, %v3181_v42, 0 }
0x12ad   : > { %5450 = vmatpush3.bf16.xpose.msra.mxu0 %v3266_v44 }
0x12ae   : > { %5592 = vmatprep.subr.msk.bf16.mxu0 %vm1082_vm1, %v3182_v41 }
0x12b5   : > { %5452 = vmatpush3.bf16.xpose.msra.mxu0 %v3269_v46 }
0x12b6   : > { %5473 = vmatprep.subr.bf16.mxu0 %v5738_v32 }
0x132e   : > { %v2932_v48 = vpop.xlane.xlu0 %2931 }
0x132f   : > { %v2942_v49 = vsub.f32 %v2916_v17, %v2932_v48  ;;  %v5739_v48 = vld [vmem:[%s7053_s13 + $0x68] sm:$0xff]  }
0x1330   : > { %v2935_v51 = vpop.xlane.xlu1 %2934 }
0x1331   : > { %v2946_v52 = vmul.f32 1.442695, %v2942_v49  ;;  %v2943_v53 = vsub.f32 %v2919_v28, %v2935_v51  ;;  %v5735_v28 = vld [vmem:[%s7053_s13 + $0x18] sm:$0xff]   ;;  %v4930_v51 = vld [vmem:[%s7054_s14 + $0x9] ss:$0 sm:$0xff] }
0x1332   : > { %v2938_v59 = vpop.xlane.xlu0 %2937 }
0x1333   : > { %5842 = vpow2.f32 %v2946_v52  ;;  %v2948_v60 = vmul.f32 1.442695, %v2943_v53  ;;  %v2944_v61 = vsub.f32 %v2924_v62, %v2938_v59 }
0x1334   : > { %v2941_v63 = vpop.xlane.xlu1 %2940 }
0x1335   : > { %5844 = vpow2.f32 %v2948_v60  ;;  %v2950_v0 = vmul.f32 1.442695, %v2944_v61  ;;  %v2945_v1 = vsub.f32 %v2927_v31, %v2941_v63  ;;  %v5737_v31 = vld [vmem:[%s7053_s13 + $0x98] sm:$0xff]  }
0x1337   : > { %5846 = vpow2.f32 %v2950_v0  ;;  %v2952_v2 = vmul.f32 1.442695, %v2945_v1 }
0x1339   : > { %5848 = vpow2.f32 %v2952_v2 }
0x133d   : > { %v5843_v3 = vpop.eup %5842 }
0x133e   : > { %v2954_v4 = vsel %vm772_vm0, %v5843_v3, 0.0 }
0x133f   : > { %v5845_v5 = vpop.eup %5844  ;;  %2955 = vadd.xlane.f32.xlu0 %v2954_v4 }
0x1340   : > { %v2957_v6 = vsel %vm772_vm0, %v5845_v5, 0.0 }
0x1341   : > { %v5847_v7 = vpop.eup %5846  ;;  %2958 = vadd.xlane.f32.xlu1 %v2957_v6 }
0x1342   : > { %v2960_v8 = vsel %vm772_vm0, %v5847_v7, 0.0 }
0x1343   : > { %v5849_v43 = vpop.eup %5848  ;;  %2961 = vadd.xlane.f32.xlu0 %v2960_v8 }
0x1344   : > { %v2963_v9 = vsel %vm772_vm0, %v5849_v43, 0.0 }
0x1345   : > { %2964 = vadd.xlane.f32.xlu1 %v2963_v9 }
0x13cc   : > { %v2956_v45 = vpop.xlane.xlu0 %2955 }
0x13cd   : > { %5850 = vrcp.f32 %v2956_v45 }
0x13ce   : > { %v2959_v57 = vpop.xlane.xlu1 %2958 }
0x13cf   : > { %5852 = vrcp.f32 %v2959_v57 }
0x13d0   : > { %v2962_v11 = vpop.xlane.xlu0 %2961 }
0x13d1   : > { %5854 = vrcp.f32 %v2962_v11  ;;  %v4954_v11 = vld [vmem:[%s7054_s14 + $0x6] ss:$0 sm:$0xff] }
0x13d2   : > { %v2965_v55 = vpop.xlane.xlu1 %2964 }
0x13d3   : > { %5856 = vrcp.f32 %v2965_v55 }
0x13d7   : > { %v5851_v47 = vpop.eup %5850 }
0x13d8   : > { %v2970_v56 = vmul.f32 %v5851_v47, %v5843_v3 }
0x13d9   : > { %v5853_v12 = vpop.eup %5852 }
0x13da   : > { %v2971_v54 = vmul.f32 %v5853_v12, %v5845_v5 }
0x13db   : > { %v5855_v50 = vpop.eup %5854 }
0x13dc   : > { %v2974_v16 = vpack.c.bf16 %v2971_v54, %v2970_v56  ;;  %v2972_v58 = vmul.f32 %v5855_v50, %v5847_v7 }
0x13dd   : > { %v5857_v17 = vpop.eup %5856 }
0x13de   : > { %v2973_v25 = vmul.f32 %v5857_v17, %v5849_v43  ;;  %5421 = vmatprep.mubr.msk.bf16.mxu1 %vm772_vm0, %v2974_v16 }
0x13e0   : > { %v2975_v62 = vpack.c.bf16 %v2973_v25, %v2972_v58 }
0x13e2   : > { %5422 = vmatmul.mubr.msk.bf16.vlgmr.msra.gmra.mrb[36].mxu1 %vm772_vm0, %v2975_v62 }
0x13e3   : > { %5426 = vmatpush3.bf16.msra.mxu1 %v5734_v10  ;;  %5429 = vmatprep.mubr.msk.bf16.mxu1 %vm772_vm0, %v6573_v26 }
0x13e4   : > { %5427 = vmatprep.subr.bf16.mxu1 %v5735_v28 }
0x13e7   : > { %5428 = vmatpush3.bf16.msra.mxu1 %v5735_v28 }
0x13e8   : > { %5441 = vmatprep.subr.bf16.mxu1 %v5736_v35 }
0x13ea   : > { %5430 = vmatmul.mubr.msk.bf16.vlgmr.msra.gmra.mrb[40].mxu1 %vm772_vm0, %v6579_v34 }
0x13eb   : > { %5442 = vmatpush3.bf16.msra.mxu1 %v5736_v35  ;;  %5445 = vmatprep.mubr.msk.bf16.mxu1 %vm772_vm0, %v6573_v26 }
0x13ec   : > { %5443 = vmatprep.subr.bf16.mxu1 %v5737_v31 }
0x13ef   : > { %5444 = vmatpush3.bf16.msra.mxu1 %v5737_v31 }
0x13f2   : > { %5446 = vmatmul.mubr.msk.bf16.vlgmr.msra.gmra.mrb[44].mxu1 %vm772_vm0, %v6579_v34 }
0x14b5   : > { %v6685_v33 = vpop.f32.mrb[36].mxu1 }
0x14b6   : > { %v6687_v36 = vpop.f32.mrb[37].mxu1 }
0x14b7   : > { %v6689_v20 = vpop.f32.mrb[38].mxu1 }
0x14b8   : > { %v6691_v23 = vpop.f32.mrb[39].mxu1 }
0x14bd   : > { %v5431_v24 = vpop.f32.mrb[40].mxu1 }
0x14be   : > { %v3090_v19 = vpop.f32.mrb[41].mxu1  ;;  %v3099_v22 = vadd.f32 %v5431_v24, %v4910_v38 }
0x14bf   : > { %v5432_v21 = vpop.f32.mrb[42].mxu1  ;;  %v3091_v41 = vadd.f32 %v4910_v38, %v3090_v19 }
0x14c0   : > { %v3102_v39 = vadd.f32 %v5432_v21, %v4910_v38  ;;  %v3093_v40 = vpop.f32.mrb[43].mxu1 }
0x14c1   : > { %v3094_v42 = vadd.f32 %v4910_v38, %v3093_v40 }
0x14c2   : > { %v3106_v44 = vpack.c.bf16 %v3102_v39, %v3099_v22 }
0x14c3   : > { %v3105_v46 = vpack.c.bf16 %v3094_v42, %v3091_v41 }
0x14c5   : > { %v5447_v49 = vpop.f32.mrb[44].mxu1  ;;  %5453 = vmatprep.mubr.msk.bf16.mxu0 %vm1082_vm1, %v3105_v46 }
0x14c6   : > { %v3242_v52 = vpop.f32.mrb[45].mxu1  ;;  %5454 = vmatmul.mubr.msk.bf16.vlgmr.msra.gmra.mrb[68].mxu0 %vm1082_vm1, %v3106_v44  ;;  %v3251_v59 = vadd.f32 %v5447_v49, %v4930_v51 }
0x14c7   : > { %v5448_v53 = vpop.f32.mrb[46].mxu1  ;;  %5474 = vmatpush3.bf16.msra.mxu0 %v5738_v32  ;;  %5477 = vmatprep.mubr.msk.bf16.mxu0 %vm772_vm0, %v6573_v26  ;;  %v3243_v63 = vadd.f32 %v4930_v51, %v3242_v52 }
0x14c8   : > { %v3254_v60 = vadd.f32 %v5448_v53, %v4930_v51  ;;  %v3245_v61 = vpop.f32.mrb[47].mxu1  ;;  %5475 = vmatprep.subr.bf16.mxu0 %v5739_v48 }
0x14c9   : > { %v3246_v0 = vadd.f32 %v4930_v51, %v3245_v61  ;;  %v5740_v61 = vld [vmem:[%s7053_s13 + $0x20] sm:$0xff]  }
0x14ca   : > { %v3258_v1 = vpack.c.bf16 %v3254_v60, %v3251_v59 }
0x14cb   : > { %v3257_v2 = vpack.c.bf16 %v3246_v0, %v3243_v63  ;;  %5476 = vmatpush3.bf16.msra.mxu0 %v5739_v48 }
0x14cd   : > { %5457 = vmatprep.subr.bf16.mxu1 %v3257_v2 }
0x14ce   : > { %5458 = vmatpush3.bf16.msra.mxu1 %v3257_v2  ;;  %5478 = vmatmul.mubr.msk.bf16.vlgmr.msra.gmra.mrb[72].mxu0 %vm772_vm0, %v6579_v34 }
0x14cf   : > { %5459 = vmatprep.subr.bf16.mxu1 %v3258_v1 }
0x14d2   : > { %5460 = vmatpush3.bf16.msra.mxu1 %v3258_v1 }
0x14d3   : > { %5465 = vmatprep.subr.bf16.mxu1 %v5740_v61 }
0x1599   : > { %v5455_v3 = vpop.f32.mrb[68].mxu0 }
0x159a   : > { %v3305_v4 = vpop.f32.mrb[69].mxu0  ;;  %v3314_v8 = vadd.f32 %v5455_v3, %v6635_v14 }
0x159b   : > { %v3306_v5 = vadd.f32 %v3305_v4, %v6630_v13  ;;  %v5456_v6 = vpop.f32.mrb[70].mxu0 }
0x159c   : > { %v3308_v7 = vpop.f32.mrb[71].mxu0  ;;  %v3317_v10 = vadd.f32 %v5456_v6, %v6640_v18  ;;  %v3326_v55 = vsel %vm772_vm0, %v3314_v8, -inf }
0x159d   : > { %v3309_v43 = vadd.f32 %v3308_v7, %v6637_v15  ;;  %v3320_v9 = vsel %vm772_vm0, %v3306_v5, -inf }
0x159e   : > { %3321 = vmax.xlane.f32.xlu0 %v3320_v9  ;;  %v3329_v56 = vsel %vm772_vm0, %v3317_v10, -inf }
0x159f   : > { %v3323_v45 = vsel %vm772_vm0, %v3309_v43, -inf }
0x15a0   : > { %3324 = vmax.xlane.f32.xlu1 %v3323_v45 }
0x15a1   : > { %v5479_v57 = vpop.f32.mrb[72].mxu0 }
0x15a2   : > { %v3556_v47 = vpop.f32.mrb[73].mxu0  ;;  %3327 = vmax.xlane.f32.xlu0 %v3326_v55  ;;  %v3565_v54 = vadd.f32 %v5479_v57, %v4954_v11  ;;  %v5741_v57 = vld [vmem:[%s7053_s13 + $0x28] sm:$0xff]  }
0x15a3   : > { %v5480_v12 = vpop.f32.mrb[74].mxu0  ;;  %v3557_v17 = vadd.f32 %v4954_v11, %v3556_v47  ;;  %v5743_v55 = vld [vmem:[%s7053_s13 + $0xa8] sm:$0xff]   ;;  %v5744_v47 = vld [vmem:[%s7053_s13 + $0x70] sm:$0xff]  }
0x15a4   : > { %v3568_v50 = vadd.f32 %v5480_v12, %v4954_v11  ;;  %v3559_v16 = vpop.f32.mrb[75].mxu0  ;;  %3330 = vmax.xlane.f32.xlu1 %v3329_v56 }
0x15a5   : > { %v3560_v58 = vadd.f32 %v4954_v11, %v3559_v16  ;;  %v5742_v11 = vld [vmem:[%s7053_s13 + $0xa0] sm:$0xff]  }
0x15a6   : > { %v3572_v25 = vpack.c.bf16 %v3568_v50, %v3565_v54 }
0x15a7   : > { %v3571_v62 = vpack.c.bf16 %v3560_v58, %v3557_v17 }
0x15a8   : > { %v3659_v35 = vsel %vm1082_vm1, %v3572_v25, 0 }
0x15a9   : > { %5593 = vmatprep.subr.msk.bf16.mxu0 %vm1082_vm1, %v3571_v62  ;;  %v3656_v28 = vsel %vm1082_vm1, %v3571_v62, 0 }
0x15aa   : > { %5490 = vmatpush3.bf16.xpose.msra.mxu0 %v3656_v28 }
0x15ab   : > { %5594 = vmatprep.subr.msk.bf16.mxu0 %vm1082_vm1, %v3572_v25  ;;  %v4944_v25 = vld [vmem:[%s7054_s14 + $0x2] ss:$0 sm:$0xff] }
0x15b2   : > { %5492 = vmatpush3.bf16.xpose.msra.mxu0 %v3659_v35 }
0x15b3   : > { %5513 = vmatprep.subr.bf16.mxu0 %v5744_v47 }
0x162b   : > { %v3322_v31 = vpop.xlane.xlu0 %3321 }
0x162c   : > { %v3332_v32 = vsub.f32 %v3306_v5, %v3322_v31 }
0x162d   : > { %v3325_v24 = vpop.xlane.xlu1 %3324 }
0x162e   : > { %v3336_v38 = vmul.f32 1.442695, %v3332_v32  ;;  %v3333_v19 = vsub.f32 %v3309_v43, %v3325_v24 }
0x162f   : > { %v3328_v21 = vpop.xlane.xlu0 %3327 }
0x1630   : > { %5858 = vpow2.f32 %v3336_v38  ;;  %v3338_v22 = vmul.f32 1.442695, %v3333_v19  ;;  %v3334_v39 = vsub.f32 %v3314_v8, %v3328_v21 }
0x1631   : > { %v3331_v40 = vpop.xlane.xlu1 %3330 }
0x1632   : > { %5860 = vpow2.f32 %v3338_v22  ;;  %v3340_v41 = vmul.f32 1.442695, %v3334_v39  ;;  %v3335_v42 = vsub.f32 %v3317_v10, %v3331_v40  ;;  %v5745_v22 = vld [vmem:[%s7053_s13 + $0x78] sm:$0xff]   ;;  %v4964_v40 = vld [vmem:[%s7054_s14 + $0xa] ss:$0 sm:$0xff] }
0x1634   : > { %5862 = vpow2.f32 %v3340_v41  ;;  %v3342_v44 = vmul.f32 1.442695, %v3335_v42 }
0x1636   : > { %5864 = vpow2.f32 %v3342_v44 }
0x163a   : > { %v5859_v46 = vpop.eup %5858 }
0x163b   : > { %v3344_v48 = vsel %vm772_vm0, %v5859_v46, 0.0 }
0x163c   : > { %v5861_v49 = vpop.eup %5860  ;;  %3345 = vadd.xlane.f32.xlu0 %v3344_v48 }
0x163d   : > { %v3347_v51 = vsel %vm772_vm0, %v5861_v49, 0.0 }
0x163e   : > { %v5863_v52 = vpop.eup %5862  ;;  %3348 = vadd.xlane.f32.xlu1 %v3347_v51 }
0x163f   : > { %v3350_v53 = vsel %vm772_vm0, %v5863_v52, 0.0 }
0x1640   : > { %v5865_v59 = vpop.eup %5864  ;;  %3351 = vadd.xlane.f32.xlu0 %v3350_v53 }
0x1641   : > { %v3353_v60 = vsel %vm772_vm0, %v5865_v59, 0.0 }
0x1642   : > { %3354 = vadd.xlane.f32.xlu1 %v3353_v60 }
0x16c9   : > { %v3346_v63 = vpop.xlane.xlu0 %3345 }
0x16ca   : > { %5866 = vrcp.f32 %v3346_v63 }
0x16cb   : > { %v3349_v0 = vpop.xlane.xlu1 %3348 }
0x16cc   : > { %5868 = vrcp.f32 %v3349_v0 }
0x16cd   : > { %v3352_v1 = vpop.xlane.xlu0 %3351 }
0x16ce   : > { %5870 = vrcp.f32 %v3352_v1 }
0x16cf   : > { %v3355_v2 = vpop.xlane.xlu1 %3354 }
0x16d0   : > { %5872 = vrcp.f32 %v3355_v2 }
0x16d4   : > { %v5867_v3 = vpop.eup %5866 }
0x16d5   : > { %v3360_v5 = vmul.f32 %v5867_v3, %v5859_v46 }
0x16d6   : > { %v5869_v4 = vpop.eup %5868 }
0x16d7   : > { %v3361_v6 = vmul.f32 %v5869_v4, %v5861_v49 }
0x16d8   : > { %v5871_v7 = vpop.eup %5870 }
0x16d9   : > { %v3364_v8 = vpack.c.bf16 %v3361_v6, %v3360_v5  ;;  %v3362_v9 = vmul.f32 %v5871_v7, %v5863_v52  ;;  %v4988_v7 = vld [vmem:[%s7054_s14 + $0x7] ss:$0 sm:$0xff] }
0x16da   : > { %v5873_v43 = vpop.eup %5872 }
0x16db   : > { %v3363_v10 = vmul.f32 %v5873_v43, %v5865_v59  ;;  %5461 = vmatprep.mubr.msk.bf16.mxu1 %vm772_vm0, %v3364_v8 }
0x16dd   : > { %v3365_v45 = vpack.c.bf16 %v3363_v10, %v3362_v9 }
0x16df   : > { %5462 = vmatmul.mubr.msk.bf16.vlgmr.msra.gmra.mrb[48].mxu1 %vm772_vm0, %v3365_v45 }
0x16e0   : > { %5466 = vmatpush3.bf16.msra.mxu1 %v5740_v61  ;;  %5469 = vmatprep.mubr.msk.bf16.mxu1 %vm772_vm0, %v6573_v26 }
0x16e1   : > { %5467 = vmatprep.subr.bf16.mxu1 %v5741_v57 }
0x16e4   : > { %5468 = vmatpush3.bf16.msra.mxu1 %v5741_v57 }
0x16e5   : > { %5481 = vmatprep.subr.bf16.mxu1 %v5742_v11 }
0x16e7   : > { %5470 = vmatmul.mubr.msk.bf16.vlgmr.msra.gmra.mrb[52].mxu1 %vm772_vm0, %v6579_v34 }
0x16e8   : > { %5482 = vmatpush3.bf16.msra.mxu1 %v5742_v11  ;;  %5485 = vmatprep.mubr.msk.bf16.mxu1 %vm772_vm0, %v6573_v26 }
0x16e9   : > { %5483 = vmatprep.subr.bf16.mxu1 %v5743_v55 }
0x16ec   : > { %5484 = vmatpush3.bf16.msra.mxu1 %v5743_v55 }
0x16ef   : > { %5486 = vmatmul.mubr.msk.bf16.vlgmr.msra.gmra.mrb[56].mxu1 %vm772_vm0, %v6579_v34 }
0x17b2   : > { %v6752_v12 = vpop.f32.mrb[48].mxu1 }
0x17b3   : > { %v6754_v56 = vpop.f32.mrb[49].mxu1 }
0x17b4   : > { %v6756_v54 = vpop.f32.mrb[50].mxu1 }
0x17b5   : > { %v5675_v50 = vpack.i.bf16 %v6756_v54, %v6752_v12  ;;  %v6760_v16 = vpop.f32.mrb[51].mxu1 }
0x17b6   : > { %v5670_v17 = vpack.i.bf16 %v6760_v16, %v6754_v56 }
0x17ba   : > { %v5471_v58 = vpop.f32.mrb[52].mxu1 }
0x17bb   : > { %v3480_v62 = vpop.f32.mrb[53].mxu1  ;;  %v3489_v35 = vadd.f32 %v5471_v58, %v4944_v25 }
0x17bc   : > { %v5472_v28 = vpop.f32.mrb[54].mxu1  ;;  %v3481_v24 = vadd.f32 %v4944_v25, %v3480_v62 }
0x17bd   : > { %v3492_v31 = vadd.f32 %v5472_v28, %v4944_v25  ;;  %v3483_v32 = vpop.f32.mrb[55].mxu1 }
0x17be   : > { %v3484_v38 = vadd.f32 %v4944_v25, %v3483_v32 }
0x17bf   : > { %v3496_v19 = vpack.c.bf16 %v3492_v31, %v3489_v35 }
0x17c0   : > { %v3495_v21 = vpack.c.bf16 %v3484_v38, %v3481_v24 }
0x17c2   : > { %v5487_v39 = vpop.f32.mrb[56].mxu1  ;;  %5493 = vmatprep.mubr.msk.bf16.mxu0 %vm1082_vm1, %v3495_v21 }
0x17c3   : > { %v3632_v41 = vpop.f32.mrb[57].mxu1  ;;  %5494 = vmatmul.mubr.msk.bf16.vlgmr.msra.gmra.mrb[76].mxu0 %vm1082_vm1, %v3496_v19  ;;  %v3641_v44 = vadd.f32 %v5487_v39, %v4964_v40 }
0x17c4   : > { %v5488_v42 = vpop.f32.mrb[58].mxu1  ;;  %5514 = vmatpush3.bf16.msra.mxu0 %v5744_v47  ;;  %5517 = vmatprep.mubr.msk.bf16.mxu0 %vm772_vm0, %v6573_v26  ;;  %v3633_v49 = vadd.f32 %v4964_v40, %v3632_v41 }
0x17c5   : > { %v3644_v46 = vadd.f32 %v5488_v42, %v4964_v40  ;;  %v3635_v48 = vpop.f32.mrb[59].mxu1  ;;  %5515 = vmatprep.subr.bf16.mxu0 %v5745_v22 }
0x17c6   : > { %v3636_v51 = vadd.f32 %v4964_v40, %v3635_v48 }
0x17c7   : > { %v3648_v52 = vpack.c.bf16 %v3644_v46, %v3641_v44 }
0x17c8   : > { %v3647_v53 = vpack.c.bf16 %v3636_v51, %v3633_v49  ;;  %5516 = vmatpush3.bf16.msra.mxu0 %v5745_v22 }
0x17ca   : > { %5497 = vmatprep.subr.bf16.mxu1 %v3647_v53 }
0x17cb   : > { %5498 = vmatpush3.bf16.msra.mxu1 %v3647_v53  ;;  %5518 = vmatmul.mubr.msk.bf16.vlgmr.msra.gmra.mrb[80].mxu0 %vm772_vm0, %v6579_v34 }
0x17cc   : > { %5499 = vmatprep.subr.bf16.mxu1 %v3648_v52 }
0x17cf   : > { %5500 = vmatpush3.bf16.msra.mxu1 %v3648_v52 }
0x1896   : > { %v5495_v59 = vpop.f32.mrb[76].mxu0 }
0x1897   : > { %v3695_v60 = vpop.f32.mrb[77].mxu0  ;;  %v3704_v1 = vadd.f32 %v5495_v59, %v6635_v14 }
0x1898   : > { %v3696_v61 = vadd.f32 %v3695_v60, %v6630_v13  ;;  %v5496_v63 = vpop.f32.mrb[78].mxu0  ;;  %v5746_v60 = vld [vmem:[%s7053_s13 + $0x30] sm:$0xff]  }
0x1899   : > { %v3698_v0 = vpop.f32.mrb[79].mxu0  ;;  %v3707_v4 = vadd.f32 %v5496_v63, %v6640_v18  ;;  %v3716_v8 = vsel %vm772_vm0, %v3704_v1, -inf  ;;  %5505 = vmatprep.subr.bf16.mxu1 %v5746_v60 }
0x189a   : > { %v3699_v2 = vadd.f32 %v3698_v0, %v6637_v15  ;;  %v3710_v3 = vsel %vm772_vm0, %v3696_v61, -inf }
0x189b   : > { %3711 = vmax.xlane.f32.xlu0 %v3710_v3  ;;  %v3719_v10 = vsel %vm772_vm0, %v3707_v4, -inf }
0x189c   : > { %v3713_v5 = vsel %vm772_vm0, %v3699_v2, -inf }
0x189d   : > { %3714 = vmax.xlane.f32.xlu1 %v3713_v5 }
0x189e   : > { %v5519_v6 = vpop.f32.mrb[80].mxu0 }
0x189f   : > { %v3946_v43 = vpop.f32.mrb[81].mxu0  ;;  %3717 = vmax.xlane.f32.xlu0 %v3716_v8  ;;  %v3955_v45 = vadd.f32 %v5519_v6, %v4988_v7 }
0x18a0   : > { %v5520_v9 = vpop.f32.mrb[82].mxu0  ;;  %v3947_v55 = vadd.f32 %v4988_v7, %v3946_v43 }
0x18a1   : > { %v3958_v57 = vadd.f32 %v5520_v9, %v4988_v7  ;;  %v3949_v11 = vpop.f32.mrb[83].mxu0  ;;  %3720 = vmax.xlane.f32.xlu1 %v3719_v10 }
0x18a2   : > { %v3950_v47 = vadd.f32 %v4988_v7, %v3949_v11  ;;  %v5749_v11 = vld [vmem:[%s7053_s13 + $0xb8] sm:$0xff]  }
0x18a3   : > { %v3962_v58 = vpack.c.bf16 %v3958_v57, %v3955_v45  ;;  %v5747_v45 = vld [vmem:[%s7053_s13 + $0x38] sm:$0xff]   ;;  %v5748_v57 = vld [vmem:[%s7053_s13 + $0xb0] sm:$0xff]  }
0x18a4   : > { %v3961_v25 = vpack.c.bf16 %v3950_v47, %v3947_v55 }
0x18a5   : > { %v4049_v28 = vsel %vm1082_vm1, %v3962_v58, 0 }
0x18a6   : > { %5595 = vmatprep.subr.msk.bf16.mxu0 %vm1082_vm1, %v3961_v25  ;;  %v4046_v62 = vsel %vm1082_vm1, %v3961_v25, 0 }
0x18a7   : > { %5530 = vmatpush3.bf16.xpose.msra.mxu0 %v4046_v62 }
0x18a8   : > { %5596 = vmatprep.subr.msk.bf16.mxu0 %vm1082_vm1, %v3962_v58 }
0x18af   : > { %5532 = vmatpush3.bf16.xpose.msra.mxu0 %v4049_v28 }
0x1928   : > { %v3712_v35 = vpop.xlane.xlu0 %3711 }
0x1929   : > { %v3722_v31 = vsub.f32 %v3696_v61, %v3712_v35  ;;  %v4978_v35 = vld [vmem:[%s7054_s14 + $0x3] ss:$0 sm:$0xff] }
0x192a   : > { %v3715_v32 = vpop.xlane.xlu1 %3714 }
0x192b   : > { %v3726_v24 = vmul.f32 1.442695, %v3722_v31  ;;  %v3723_v38 = vsub.f32 %v3699_v2, %v3715_v32 }
0x192c   : > { %v3718_v19 = vpop.xlane.xlu0 %3717 }
0x192d   : > { %5874 = vpow2.f32 %v3726_v24  ;;  %v3728_v21 = vmul.f32 1.442695, %v3723_v38  ;;  %v3724_v22 = vsub.f32 %v3704_v1, %v3718_v19 }
0x192e   : > { %v3721_v39 = vpop.xlane.xlu1 %3720 }
0x192f   : > { %5876 = vpow2.f32 %v3728_v21  ;;  %v3730_v40 = vmul.f32 1.442695, %v3724_v22  ;;  %v3725_v41 = vsub.f32 %v3707_v4, %v3721_v39 }
0x1931   : > { %5878 = vpow2.f32 %v3730_v40  ;;  %v3732_v42 = vmul.f32 1.442695, %v3725_v41  ;;  %v4998_v41 = vld [vmem:[%s7054_s14 + $0xb] ss:$0 sm:$0xff] }
0x1933   : > { %5880 = vpow2.f32 %v3732_v42 }
0x1937   : > { %v5875_v44 = vpop.eup %5874 }
0x1938   : > { %v3734_v46 = vsel %vm772_vm0, %v5875_v44, 0.0 }
0x1939   : > { %v5877_v48 = vpop.eup %5876  ;;  %3735 = vadd.xlane.f32.xlu0 %v3734_v46 }
0x193a   : > { %v3737_v49 = vsel %vm772_vm0, %v5877_v48, 0.0 }
0x193b   : > { %v5879_v51 = vpop.eup %5878  ;;  %3738 = vadd.xlane.f32.xlu1 %v3737_v49 }
0x193c   : > { %v3740_v52 = vsel %vm772_vm0, %v5879_v51, 0.0 }
0x193d   : > { %v5881_v53 = vpop.eup %5880  ;;  %3741 = vadd.xlane.f32.xlu0 %v3740_v52 }
0x193e   : > { %v3743_v59 = vsel %vm772_vm0, %v5881_v53, 0.0 }
0x193f   : > { %3744 = vadd.xlane.f32.xlu1 %v3743_v59 }
0x19c6   : > { %v3736_v61 = vpop.xlane.xlu0 %3735 }
0x19c7   : > { %5882 = vrcp.f32 %v3736_v61 }
0x19c8   : > { %v3739_v63 = vpop.xlane.xlu1 %3738 }
0x19c9   : > { %5884 = vrcp.f32 %v3739_v63 }
0x19ca   : > { %v3742_v0 = vpop.xlane.xlu0 %3741 }
0x19cb   : > { %5886 = vrcp.f32 %v3742_v0 }
0x19cc   : > { %v3745_v1 = vpop.xlane.xlu1 %3744 }
0x19cd   : > { %5888 = vrcp.f32 %v3745_v1 }
0x19d1   : > { %v5883_v2 = vpop.eup %5882 }
0x19d2   : > { %v3750_v4 = vmul.f32 %v5883_v2, %v5875_v44 }
0x19d3   : > { %v5885_v3 = vpop.eup %5884 }
0x19d4   : > { %v3751_v5 = vmul.f32 %v5885_v3, %v5877_v48 }
0x19d5   : > { %v5887_v6 = vpop.eup %5886 }
0x19d6   : > { %v3754_v7 = vpack.c.bf16 %v3751_v5, %v3750_v4  ;;  %v3752_v43 = vmul.f32 %v5887_v6, %v5879_v51 }
0x19d7   : > { %v5889_v8 = vpop.eup %5888 }
0x19d8   : > { %v3753_v9 = vmul.f32 %v5889_v8, %v5881_v53  ;;  %5501 = vmatprep.mubr.msk.bf16.mxu1 %vm772_vm0, %v3754_v7 }
0x19da   : > { %v3755_v10 = vpack.c.bf16 %v3753_v9, %v3752_v43 }
0x19dc   : > { %5502 = vmatmul.mubr.msk.bf16.vlgmr.msra.gmra.mrb[60].mxu1 %vm772_vm0, %v3755_v10 }
0x19dd   : > { %5506 = vmatpush3.bf16.msra.mxu1 %v5746_v60  ;;  %5509 = vmatprep.mubr.msk.bf16.mxu1 %vm772_vm0, %v6573_v26 }
0x19de   : > { %5507 = vmatprep.subr.bf16.mxu1 %v5747_v45 }
0x19e1   : > { %5508 = vmatpush3.bf16.msra.mxu1 %v5747_v45 }
0x19e2   : > { %5521 = vmatprep.subr.bf16.mxu1 %v5748_v57 }
0x19e4   : > { %5510 = vmatmul.mubr.msk.bf16.vlgmr.msra.gmra.mrb[64].mxu1 %vm772_vm0, %v6579_v34 }
0x19e5   : > { %5522 = vmatpush3.bf16.msra.mxu1 %v5748_v57  ;;  %5525 = vmatprep.mubr.msk.bf16.mxu1 %vm772_vm0, %v6573_v26 }
0x19e6   : > { %5523 = vmatprep.subr.bf16.mxu1 %v5749_v11 }
0x19e9   : > { %5524 = vmatpush3.bf16.msra.mxu1 %v5749_v11 }
0x19ec   : > { %5526 = vmatmul.mubr.msk.bf16.vlgmr.msra.gmra.mrb[68].mxu1 %vm772_vm0, %v6579_v34 }
0x1aaf   : > { %v6820_v55 = vpop.f32.mrb[60].mxu1 }
0x1ab0   : > { %v6822_v47 = vpop.f32.mrb[61].mxu1 }
0x1ab1   : > { %v6824_v58 = vpop.f32.mrb[62].mxu1 }
0x1ab2   : > { %v5685_v25 = vpack.i.bf16 %v6824_v58, %v6820_v55  ;;  %v6828_v62 = vpop.f32.mrb[63].mxu1  ;;  %v5750_v58 = vld [vmem:[%s7055_s15] sm:$0xff]  }
0x1ab3   : > { %v5680_v28 = vpack.i.bf16 %v6828_v62, %v6822_v47 }
0x1ab7   : > { %v5511_v26 = vpop.f32.mrb[64].mxu1 }
0x1ab8   : > { %v3870_v34 = vpop.f32.mrb[65].mxu1  ;;  %v3879_v32 = vadd.f32 %v5511_v26, %v4978_v35 }
0x1ab9   : > { %v5512_v31 = vpop.f32.mrb[66].mxu1  ;;  %v3871_v19 = vadd.f32 %v4978_v35, %v3870_v34 }
0x1aba   : > { %v3882_v24 = vadd.f32 %v5512_v31, %v4978_v35  ;;  %v3873_v38 = vpop.f32.mrb[67].mxu1 }
0x1abb   : > { %v3874_v21 = vadd.f32 %v4978_v35, %v3873_v38 }
0x1abc   : > { %v3886_v22 = vpack.c.bf16 %v3882_v24, %v3879_v32 }
0x1abd   : > { %v3885_v39 = vpack.c.bf16 %v3874_v21, %v3871_v19 }
0x1abf   : > { %v5527_v40 = vpop.f32.mrb[68].mxu1  ;;  %5533 = vmatprep.mubr.msk.bf16.mxu0 %vm1082_vm1, %v3885_v39 }
0x1ac0   : > { %v4022_v42 = vpop.f32.mrb[69].mxu1  ;;  %5534 = vmatmul.mubr.msk.bf16.vlgmr.msra.gmra.mrb[84].mxu0 %vm1082_vm1, %v3886_v22  ;;  %v4031_v46 = vadd.f32 %v5527_v40, %v4998_v41 }
0x1ac1   : > { %v5528_v44 = vpop.f32.mrb[70].mxu1  ;;  %v4023_v51 = vadd.f32 %v4998_v41, %v4022_v42 }
0x1ac2   : > { %v4034_v48 = vadd.f32 %v5528_v44, %v4998_v41  ;;  %v4025_v49 = vpop.f32.mrb[71].mxu1 }
0x1ac3   : > { %v4026_v52 = vadd.f32 %v4998_v41, %v4025_v49 }
0x1ac4   : > { %v4038_v53 = vpack.c.bf16 %v4034_v48, %v4031_v46 }
0x1ac5   : > { %v4037_v59 = vpack.c.bf16 %v4026_v52, %v4023_v51 }
0x1ac7   : > { %5537 = vmatprep.subr.bf16.mxu1 %v4037_v59 }
0x1ac8   : > { %5538 = vmatpush3.bf16.msra.mxu1 %v4037_v59 }
0x1ac9   : > { %5539 = vmatprep.subr.bf16.mxu1 %v4038_v53 }
0x1acc   : > { %5540 = vmatpush3.bf16.msra.mxu1 %v4038_v53 }
0x1acd   : > { %5545 = vmatprep.subr.bf16.mxu1 %v5750_v58 }
0x1b93   : > { %v5535_v60 = vpop.f32.mrb[84].mxu0 }
0x1b94   : > { %v4085_v61 = vpop.f32.mrb[85].mxu0  ;;  %v4094_v2 = vadd.f32 %v5535_v60, %v6635_v14 }
0x1b95   : > { %v4086_v63 = vadd.f32 %v4085_v61, %v6630_v13  ;;  %v5536_v0 = vpop.f32.mrb[86].mxu0 }
0x1b96   : > { %v4088_v1 = vpop.f32.mrb[87].mxu0  ;;  %v4097_v5 = vadd.f32 %v5536_v0, %v6640_v18  ;;  %v4106_v7 = vsel %vm772_vm0, %v4094_v2, -inf }
0x1b97   : > { %v4089_v3 = vadd.f32 %v4088_v1, %v6637_v15  ;;  %v4100_v4 = vsel %vm772_vm0, %v4086_v63, -inf }
0x1b98   : > { %4101 = vmax.xlane.f32.xlu0 %v4100_v4  ;;  %v4109_v8 = vsel %vm772_vm0, %v4097_v5, -inf }
0x1b99   : > { %v4103_v6 = vsel %vm772_vm0, %v4089_v3, -inf }
0x1b9a   : > { %4104 = vmax.xlane.f32.xlu1 %v4103_v6 }
0x1b9c   : > { %4107 = vmax.xlane.f32.xlu0 %v4106_v7 }
0x1b9e   : > { %4110 = vmax.xlane.f32.xlu1 %v4109_v8 }
0x1c25   : > { %v4102_v13 = vpop.xlane.xlu0 %4101 }
0x1c26   : > { %v4112_v43 = vsub.f32 %v4086_v63, %v4102_v13 }
0x1c27   : > { %v4105_v9 = vpop.xlane.xlu1 %4104 }
0x1c28   : > { %v4116_v14 = vmul.f32 1.442695, %v4112_v43  ;;  %v4113_v10 = vsub.f32 %v4089_v3, %v4105_v9 }
0x1c29   : > { %v4108_v15 = vpop.xlane.xlu0 %4107 }
0x1c2a   : > { %5890 = vpow2.f32 %v4116_v14  ;;  %v4118_v45 = vmul.f32 1.442695, %v4113_v10  ;;  %v4114_v57 = vsub.f32 %v4094_v2, %v4108_v15 }
0x1c2b   : > { %v4111_v11 = vpop.xlane.xlu1 %4110 }
0x1c2c   : > { %5892 = vpow2.f32 %v4118_v45  ;;  %v4120_v18 = vmul.f32 1.442695, %v4114_v57  ;;  %v4115_v26 = vsub.f32 %v4097_v5, %v4111_v11 }
0x1c2e   : > { %5894 = vpow2.f32 %v4120_v18  ;;  %v4122_v35 = vmul.f32 1.442695, %v4115_v26 }
0x1c30   : > { %5896 = vpow2.f32 %v4122_v35 }
0x1c34   : > { %v5891_v34 = vpop.eup %5890 }
0x1c35   : > { %v4124_v31 = vsel %vm772_vm0, %v5891_v34, 0.0 }
0x1c36   : > { %v5893_v32 = vpop.eup %5892  ;;  %4125 = vadd.xlane.f32.xlu0 %v4124_v31 }
0x1c37   : > { %v4127_v24 = vsel %vm772_vm0, %v5893_v32, 0.0 }
0x1c38   : > { %v5895_v38 = vpop.eup %5894  ;;  %4128 = vadd.xlane.f32.xlu1 %v4127_v24 }
0x1c39   : > { %v4130_v19 = vsel %vm772_vm0, %v5895_v38, 0.0 }
0x1c3a   : > { %v5897_v21 = vpop.eup %5896  ;;  %4131 = vadd.xlane.f32.xlu0 %v4130_v19 }
0x1c3b   : > { %v4133_v22 = vsel %vm772_vm0, %v5897_v21, 0.0 }
0x1c3c   : > { %4134 = vadd.xlane.f32.xlu1 %v4133_v22 }
0x1c4d   : > { %5676 = vrot.lane.b32.xlu1 %v5675_v50, %s7114_s5 }
0x1c50   : > { %5671 = vrot.lane.b32.xlu0 %v5670_v17, %s7114_s5 }
0x1c51   : > { %5681 = vrot.lane.b32.xlu1 %v5680_v28, %s7115_s7 }
0x1c55   : > { %5686 = vrot.lane.b32.xlu1 %v5685_v25, %s7115_s7  ;;  %v5751_v25 = vld [vmem:[%s7055_s15 + $0x8] sm:$0xff]   ;;  %s4731_s7 = sshll.u32 %s723_s23, 5 }
0x1c56   : > { %s725_s2 = scalar_lea.vmem [#allocation2], %s4731_s7  ;;  %s7120_s7 = sld [smem:[#allocation23_spill]] }
0x1c5c   : > { %s6994_s3 = scalar_lea.hbm %s7120_s7, %s5034_s24 }
0x1cc3   : > { %v4126_v39 = vpop.xlane.xlu0 %4125 }
0x1cc4   : > { %5898 = vrcp.f32 %v4126_v39 }
0x1cc5   : > { %v4129_v40 = vpop.xlane.xlu1 %4128 }
0x1cc6   : > { %5900 = vrcp.f32 %v4129_v40 }
0x1cc7   : > { %v4132_v12 = vpop.xlane.xlu0 %4131 }
0x1cc8   : > { %5902 = vrcp.f32 %v4132_v12 }
0x1cc9   : > { %v4135_v54 = vpop.xlane.xlu1 %4134 }
0x1cca   : > { %5904 = vrcp.f32 %v4135_v54 }
0x1ccb   : > { %v5672_v60 = vpop.permute.xlu0 %5671 }
0x1ccc   : > { %v5674_v63 = vunpack.i.h.bf16 %v5672_v60  ;;  %v5673_v0 = vunpack.i.l.bf16 %v5672_v60 }
0x1ccd   : > { %v5677_v53 = vpop.permute.xlu1 %5676 }
0x1cce   : > { %v5899_v56 = vpop.eup %5898  ;;  %v5679_v1 = vunpack.i.h.bf16 %v5677_v53  ;;  %v5678_v2 = vunpack.i.l.bf16 %v5677_v53  ;;  %v4250_v7 = vsel %vm1082_vm1, %v6691_v23, %v5674_v63  ;;  %v4249_v8 = vsel %vm1082_vm1, %v6687_v36, %v5673_v0  ;;  %v5752_v0 = vld [vmem:[%s7059_s19] sm:$0xff]  }
0x1ccf   : > { %v4140_v16 = vmul.f32 %v5899_v56, %v5891_v34  ;;  %5553 = vmatprep.subr.bf16.mxu0 %v5752_v0 }
0x1cd0   : > { %v5901_v50 = vpop.eup %5900  ;;  %v4252_v43 = vsel %vm1082_vm1, %v6689_v20, %v5679_v1  ;;  %v4251_v9 = vsel %vm1082_vm1, %v6685_v33, %v5678_v2  ;;  %5554 = vmatpush3.bf16.msra.mxu0 %v5752_v0  ;;  %v5753_v1 = vld [vmem:[%s7059_s19 + $0x8] sm:$0xff]   ;;  %v5754_v2 = vld [vmem:[%s7061_s21] sm:$0xff]  }
0x1cd1   : > { %v4141_v17 = vmul.f32 %v5901_v50, %v5893_v32  ;;  %v5682_v59 = vpop.permute.xlu1 %5681  ;;  %v5007_v32 = vld [vmem:[%s7056_s16] ss:$0 sm:$0xff]  ;;  %5555 = vmatprep.subr.bf16.mxu0 %v5753_v1 }
0x1cd2   : > { %v5903_v41 = vpop.eup %5902  ;;  %v5684_v5 = vunpack.i.h.bf16 %v5682_v59  ;;  %v5683_v6 = vunpack.i.l.bf16 %v5682_v59 }
0x1cd3   : > { %v4144_v47 = vpack.c.bf16 %v4141_v17, %v4140_v16  ;;  %v4142_v28 = vmul.f32 %v5903_v41, %v5895_v38 }
0x1cd4   : > { %v5905_v62 = vpop.eup %5904  ;;  %v4253_v23 = vsel %vm2467_vm2, %v4249_v8, %v5683_v6  ;;  %v4254_v36 = vsel %vm2467_vm2, %v4250_v7, %v5684_v5  ;;  %5556 = vmatpush3.bf16.msra.mxu0 %v5753_v1  ;;  %v5757_v5 = vld [vmem:[%s7061_s21 + $0x18] sm:$0xff]   ;;  %v5758_v6 = vld [vmem:[%s7061_s21 + $0x20] sm:$0xff]   ;;  %v5759_v7 = vld [vmem:[%s7061_s21 + $0x28] sm:$0xff]  }
0x1cd5   : > { %v4143_v42 = vmul.f32 %v5905_v62, %v5897_v21  ;;  %5541 = vmatprep.mubr.msk.bf16.mxu1 %vm772_vm0, %v4144_v47  ;;  %v5687_v61 = vpop.permute.xlu1 %5686 }
0x1cd6   : > { %v5689_v3 = vunpack.i.h.bf16 %v5687_v61  ;;  %v5688_v4 = vunpack.i.l.bf16 %v5687_v61 }
0x1cd7   : > { %v4145_v55 = vpack.c.bf16 %v4143_v42, %v4142_v28 }
0x1cd8   : > { %v4255_v45 = vsel %vm2467_vm2, %v4251_v9, %v5688_v4  ;;  %v4256_v57 = vsel %vm2467_vm2, %v4252_v43, %v5689_v3  ;;  %v5755_v3 = vld [vmem:[%s7061_s21 + $0x8] sm:$0xff]   ;;  %v5756_v4 = vld [vmem:[%s7061_s21 + $0x10] sm:$0xff]  }
0x1cd9   : > { %5542 = vmatmul.mubr.msk.bf16.vlgmr.msra.gmra.mrb[72].mxu1 %vm772_vm0, %v4145_v55 }
0x1cda   : > { %5546 = vmatpush3.bf16.msra.mxu1 %v5750_v58 }
0x1cdb   : > { %5547 = vmatprep.subr.bf16.mxu1 %v5751_v25 }
0x1cde   : > { %5548 = vmatpush3.bf16.msra.mxu1 %v5751_v25 }
0x1cdf   : > { %5561 = vmatprep.subr.bf16.mxu1 %v5754_v2 }
0x1dac   : > { %v5543_v44 = vpop.f32.mrb[72].mxu1 }
0x1dad   : > { %v4186_v46 = vpop.f32.mrb[73].mxu1 }
0x1dae   : > { %v5544_v48 = vpop.f32.mrb[74].mxu1 }
0x1daf   : > { %v5695_v49 = vpack.i.bf16 %v5544_v48, %v5543_v44  ;;  %v4189_v51 = vpop.f32.mrb[75].mxu1 }
0x1db0   : > { %v5690_v52 = vpack.i.bf16 %v4189_v51, %v4186_v46 }
0x1db1   : > { %5696 = vrot.lane.b32.xlu1 %v5695_v49, %s7116_s28 }
0x1db2   : > { %5691 = vrot.lane.b32.xlu0 %v5690_v52, %s7116_s28  ;;  %s4647_s28 = sshll.u32 %s725_s2, 4  ;;  %s6987_s28 = int_to_ptr.vmem [resolvable:$true] %s4647_s28 }
0x1db3   : > { %s5918_s4 = scalar_lea.vmem %s6987_s28, 512 }
0x1db4   : > { %p5919_p11 = scmp.ne.s32.totalorder %s6987_s28, %s5918_s4 }
0x1db6   : > { %p5920_p12 = pnand %p5919_p11, %p6145_p5 }
0x1db8   : > { %p5921_p13 = pneg %p5920_p12 }
0x1e23   : > { %v5697_v13 = vpop.permute.xlu1 %5696 }
0x1e24   : > { %v5699_v14 = vunpack.i.h.bf16 %v5697_v13  ;;  %v5698_v10 = vunpack.i.l.bf16 %v5697_v13  ;;  %v5692_v15 = vpop.permute.xlu0 %5691 }
0x1e25   : > { %v5694_v11 = vunpack.i.h.bf16 %v5692_v15  ;;  %v5693_v18 = vunpack.i.l.bf16 %v5692_v15 }
0x1e26   : > { %v4260_v26 = vsel %vm2472_vm3, %v4256_v57, %v5699_v14  ;;  %v4259_v20 = vsel %vm2472_vm3, %v4255_v45, %v5698_v10 }
0x1e27   : > { %v4262_v35 = vpack.c.bf16 %v4260_v26, %v4259_v20  ;;  %v4257_v33 = vsel %vm2472_vm3, %v4253_v23, %v5693_v18  ;;  %v4258_v34 = vsel %vm2472_vm3, %v4254_v36, %v5694_v11  ;;  %v5012_v26 = vld [vmem:[%s7057_s17] ss:$0 sm:$0xff] }
0x1e28   : > { %v4261_v31 = vpack.c.bf16 %v4258_v34, %v4257_v33 }
0x1e2a   : > { %5549 = vmatprep.mubr.msk.bf16.mxu1 %vm772_vm0, %v4261_v31 }
0x1e2b   : > { %5550 = vmatmul.mubr.msk.bf16.vlgmr.msra.gmra.mrb[76].mxu1 %vm772_vm0, %v4262_v35 }
0x1e2c   : > { %5562 = vmatpush3.bf16.msra.mxu1 %v5754_v2 }
0x1e2d   : > { %5563 = vmatprep.subr.bf16.mxu1 %v5755_v3 }
0x1e30   : > { %5564 = vmatpush3.bf16.msra.mxu1 %v5755_v3 }
0x1e31   : > { %5565 = vmatprep.subr.bf16.mxu1 %v5756_v4 }
0x1e34   : > { %5566 = vmatpush3.bf16.msra.mxu1 %v5756_v4 }
0x1e35   : > { %5567 = vmatprep.subr.bf16.mxu1 %v5757_v5 }
0x1e38   : > { %5568 = vmatpush3.bf16.msra.mxu1 %v5757_v5 }
0x1e39   : > { %5569 = vmatprep.subr.bf16.mxu1 %v5758_v6 }
0x1e3c   : > { %5570 = vmatpush3.bf16.msra.mxu1 %v5758_v6 }
0x1e3d   : > { %5571 = vmatprep.subr.bf16.mxu1 %v5759_v7 }
0x1e40   : > { %5572 = vmatpush3.bf16.msra.mxu1 %v5759_v7 }
0x1efe   : > { %v5551_v24 = vpop.f32.mrb[76].mxu1 }
0x1eff   : > { %v4326_v38 = vpop.f32.mrb[77].mxu1  ;;  %v4335_v19 = vadd.f32 %v5551_v24, %v5007_v32 }
0x1f00   : > { %v4327_v21 = vadd.f32 %v5007_v32, %v4326_v38  ;;  %v5552_v22 = vpop.f32.mrb[78].mxu1 }
0x1f01   : > { %v4329_v39 = vpop.f32.mrb[79].mxu1  ;;  %v6903_v54 = vadd.f32 %v4335_v19, %v6528_v29  ;;  %v4338_v56 = vadd.f32 %v5552_v22, %v5007_v32 }
0x1f02   : > { %v6900_v40 = vadd.f32 %v4327_v21, %v6525_v27  ;;  %v4330_v12 = vadd.f32 %v5007_v32, %v4329_v39  ;;  %v5013_v32 = vld [vmem:[%s7058_s18] ss:$0 sm:$0xff] }
0x1f03   : > { %v6913_v41 = vadd.f32 %v4338_v56, %v6538_v37  ;;  %v4351_v27 = vsel %vm772_vm0, %v6903_v54, 0.0 }
0x1f04   : > { %v6906_v50 = vadd.f32 %v4330_v12, %v6531_v30  ;;  %v4345_v16 = vsel %vm772_vm0, %v6900_v40, 0.0 }
0x1f05   : > { %4346 = vadd.xlane.f32.xlu0 %v4345_v16  ;;  %v4354_v29 = vsel %vm772_vm0, %v6913_v41, 0.0 }
0x1f06   : > { %v4348_v17 = vsel %vm772_vm0, %v6906_v50, 0.0 }
0x1f07   : > { %4349 = vadd.xlane.f32.xlu1 %v4348_v17 }
0x1f09   : > { %4352 = vadd.xlane.f32.xlu0 %v4351_v27 }
0x1f0d   : > { %4355 = vadd.xlane.f32.xlu0 %v4354_v29 }
0x1f92   : > { %v4347_v30 = vpop.xlane.xlu0 %4346 }
0x1f93   : > { %v4357_v47 = vmul.f32 0.03125, %v4347_v30  ;;  %v5760_v30 = vld [vmem:[%s7061_s21 + $0x30] sm:$0xff]  }
0x1f94   : > { %v4350_v62 = vpop.xlane.xlu1 %4349  ;;  %5573 = vmatprep.subr.bf16.mxu1 %v5760_v30 }
0x1f95   : > { %v6920_v28 = vsub.f32 %v6900_v40, %v4357_v47  ;;  %v4358_v42 = vmul.f32 0.03125, %v4350_v62  ;;  %5574 = vmatpush3.bf16.msra.mxu1 %v5760_v30  ;;  %v5761_v47 = vld [vmem:[%s7061_s21 + $0x38] sm:$0xff]   ;;  %v5014_v62 = vld [vmem:[%s7060_s20] ss:$0 sm:$0xff] }
0x1f96   : > { %v4353_v55 = vpop.xlane.xlu0 %4352  ;;  %5575 = vmatprep.subr.bf16.mxu1 %v5761_v47 }
0x1f97   : > { %v4362_v58 = vsub.f32 %v6906_v50, %v4358_v42  ;;  %v4359_v37 = vmul.f32 0.03125, %v4353_v55  ;;  %v4365_v25 = vmul.f32 %v6920_v28, %v6920_v28 }
0x1f99   : > { %v6926_v44 = vsub.f32 %v6903_v54, %v4359_v37  ;;  %v4369_v46 = vsel %vm772_vm0, %v4365_v25, 0.0  ;;  %v4366_v48 = vmul.f32 %v4362_v58, %v4362_v58  ;;  %5576 = vmatpush3.bf16.msra.mxu1 %v5761_v47 }
0x1f9a   : > { %4370 = vadd.xlane.f32.xlu0 %v4369_v46  ;;  %v4356_v49 = vpop.xlane.xlu0 %4355 }
0x1f9b   : > { %v4360_v51 = vmul.f32 0.03125, %v4356_v49  ;;  %v4372_v52 = vsel %vm772_vm0, %v4366_v48, 0.0  ;;  %v4367_v53 = vmul.f32 %v6926_v44, %v6926_v44 }
0x1f9c   : > { %4373 = vadd.xlane.f32.xlu1 %v4372_v52 }
0x1f9d   : > { %v4364_v59 = vsub.f32 %v6913_v41, %v4360_v51  ;;  %v4375_v60 = vsel %vm772_vm0, %v4367_v53, 0.0 }
0x1f9e   : > { %4376 = vadd.xlane.f32.xlu0 %v4375_v60  ;;  %v5019_v60 = vld [vmem:[%s7118_s25] ss:$0 sm:$0xff]  ;;  %s5985_s25 = smov [#allocation2]  }
0x1f9f   : > { %v4368_v61 = vmul.f32 %v4364_v59, %v4364_v59  ;;  %s5922_s1 = sshll.u32 %s5985_s25, 4  ;;  %s5923_s1 = int_to_ptr.vmem [resolvable:$false] %s5922_s1 }
0x1fa0   : > { %s5924_s8 = scalar_lea.vmem %s5923_s1, 1024  ;;  %p5925_p0 = scmp.lt.s32.totalorder %s6987_s28, %s5923_s1 }
0x1fa1   : > { %v4378_v63 = vsel %vm772_vm0, %v4368_v61, 0.0  ;;  %p5926_p1 = scmp.lt.s32.totalorder %s5924_s8, %s5918_s4 }
0x1fa2   : > { %4379 = vadd.xlane.f32.xlu1 %v4378_v63 }
0x1fa3   : > { %p5927_p2 = por %p5926_p1, %p5925_p0 }
0x1fa5   : > { %p5928_p3 = pnand %p5927_p2, %p5921_p13 }
0x2027   : > { %v4371_v8 = vpop.xlane.xlu0 %4370 }
0x2028   : > { %v4381_v13 = vmul.f32 0.03125, %v4371_v8 }
0x2029   : > { %v4374_v43 = vpop.xlane.xlu1 %4373 }
0x202a   : > { %v4385_v9 = vadd.f32 1e-05, %v4381_v13  ;;  %v4382_v14 = vmul.f32 0.03125, %v4374_v43 }
0x202b   : > { %v4377_v10 = vpop.xlane.xlu0 %4376 }
0x202c   : > { %5906 = vrsqrt.f32 %v4385_v9  ;;  %v4386_v15 = vadd.f32 1e-05, %v4382_v14  ;;  %v4383_v45 = vmul.f32 0.03125, %v4377_v10 }
0x202e   : > { %5908 = vrsqrt.f32 %v4386_v15  ;;  %v4387_v57 = vadd.f32 1e-05, %v4383_v45 }
0x202f   : > { %v4380_v11 = vpop.xlane.xlu1 %4379 }
0x2030   : > { %5910 = vrsqrt.f32 %v4387_v57  ;;  %v4384_v18 = vmul.f32 0.03125, %v4380_v11 }
0x2032   : > { %v4388_v23 = vadd.f32 1e-05, %v4384_v18 }
0x2034   : > { %5912 = vrsqrt.f32 %v4388_v23 }
0x2036   : > { %v5907_v36 = vpop.eup %5906 }
0x2037   : > { %v4393_v20 = vmul.f32 %v5907_v36, %v6920_v28 }
0x2038   : > { %v5909_v35 = vpop.eup %5908 }
0x2039   : > { %v4394_v33 = vmul.f32 %v5909_v35, %v4362_v58  ;;  %v4404_v34 = vmul.f32 %v5012_v26, %v4393_v20 }
0x203a   : > { %v5911_v31 = vpop.eup %5910 }
0x203b   : > { %v4395_v24 = vmul.f32 %v5911_v31, %v6926_v44  ;;  %v4405_v38 = vmul.f32 %v5012_v26, %v4394_v33  ;;  %v4415_v19 = vadd.f32 %v5013_v32, %v4404_v34 }
0x203d   : > { %v4416_v21 = vadd.f32 %v5013_v32, %v4405_v38  ;;  %v4406_v39 = vmul.f32 %v5012_v26, %v4395_v24 }
0x203e   : > { %v5913_v22 = vpop.eup %5912 }
0x203f   : > { %v4396_v12 = vmul.f32 %v5913_v22, %v4364_v59  ;;  %v4419_v56 = vpack.c.bf16 %v4416_v21, %v4415_v19  ;;  %v4417_v17 = vadd.f32 %v5013_v32, %v4406_v39 }
0x2041   : > { %v4407_v16 = vmul.f32 %v5012_v26, %v4396_v12  ;;  %5557 = vmatprep.mubr.msk.bf16.mxu0 %vm772_vm0, %v4419_v56 }
0x2043   : > { %v4418_v27 = vadd.f32 %v5013_v32, %v4407_v16 }
0x2045   : > { %v4420_v29 = vpack.c.bf16 %v4418_v27, %v4417_v17 }
0x2047   : > { %5558 = vmatmul.mubr.msk.bf16.vlgmr.msra.gmra.mrb[88].mxu0 %vm772_vm0, %v4420_v29 }
0x211a   : > { %v5559_v28 = vpop.f32.mrb[88].mxu0 }
0x211b   : > { %v4493_v42 = vadd.f32 %v5559_v28, %v5014_v62  ;;  %v4484_v55 = vpop.f32.mrb[89].mxu0 }
0x211c   : > { %v4485_v58 = vadd.f32 %v5014_v62, %v4484_v55  ;;  %v5560_v37 = vpop.f32.mrb[90].mxu0 }
0x211d   : > { %v4496_v25 = vadd.f32 %v5560_v37, %v5014_v62  ;;  %v4487_v44 = vpop.f32.mrb[91].mxu0  ;;  %v4501_v48 = vmax.f32 %v4493_v42, 0.0 }
0x211e   : > { %v4488_v46 = vadd.f32 %v5014_v62, %v4487_v44  ;;  %v4499_v51 = vmax.f32 %v4485_v58, 0.0 }
0x211f   : > { %v4502_v49 = vmax.f32 %v4496_v25, 0.0 }
0x2120   : > { %v4500_v52 = vmax.f32 %v4488_v46, 0.0 }
0x2121   : > { %v4504_v53 = vpack.c.bf16 %v4502_v49, %v4501_v48 }
0x2122   : > { %v4503_v59 = vpack.c.bf16 %v4500_v52, %v4499_v51 }
0x2124   : > { %5577 = vmatprep.mubr.bf16.mxu1 %v4503_v59 }
0x2125   : > { %5578 = vmatmul.mubr.bf16.vlgmr.msra.gmra.mrb[80].mxu1 %v4504_v53 }
0x21f8   : > { %v5579_v61 = vpop.f32.mrb[80].mxu1 }
0x21f9   : > { %v4619_v63 = vadd.f32 %v5579_v61, %v5019_v60  ;;  %v4610_v0 = vpop.f32.mrb[81].mxu1 }
0x21fa   : > { %v4611_v1 = vadd.f32 %v5019_v60, %v4610_v0  ;;  %v5580_v2 = vpop.f32.mrb[82].mxu1 }
0x21fb   : > { %v4627_v3 = vadd.f32 %v4619_v63, %v6903_v54  ;;  %v4622_v4 = vadd.f32 %v5580_v2, %v5019_v60  ;;  %v4613_v5 = vpop.f32.mrb[83].mxu1 }
0x21fc   : > { %v4625_v6 = vadd.f32 %v4611_v1, %v6900_v40  ;;  %v4614_v7 = vadd.f32 %v5019_v60, %v4613_v5 }
0x21fd   : > { %4631 = vst.msk [vmem:[%s725_s2 + $0x10] sm:$0xff] %vm772_vm0, %v4627_v3  ;;  %v4628_v8 = vadd.f32 %v4622_v4, %v6913_v41 }
0x21fe   : > { %4629 = vst.msk [vmem:[%s725_s2] sm:$0xff] %vm772_vm0, %v4625_v6  ;;  %v4626_v54 = vadd.f32 %v4614_v7, %v6906_v50 }
0x21ff   : > { %4632 = vst.msk [vmem:[%s725_s2 + $0x18] sm:$0xff] %vm772_vm0, %v4628_v8 }
0x2200   : > { %4630 = vst.msk [vmem:[%s725_s2 + $0x8] sm:$0xff] %vm772_vm0, %v4626_v54 }
0x2201   : > { %5931 = shalt.err (!%p5928_p3)
}
0x2202   : > { %s5932_s23 = scalar_lea.hbm %s6994_s3, 512  ;;  %s5936_s26 = scalar_lea.hbm %s7120_s7, 1024 }
0x2203   : > { %p5933_p4 = scmp.ne.s32.totalorder %s6994_s3, %s5932_s23  ;;  %p5937_p9 = scmp.lt.u32.totalorder %s6994_s3, %s7120_s7 }
0x2204   : > { %p5938_p10 = scmp.lt.u32.totalorder %s5936_s26, %s5932_s23  ;;  %p5940_p12 = scmp.lt.u32.totalorder %s5932_s23, %s6994_s3 }
0x2205   : > { %p5934_p7 = pnand %p5933_p4, %p6145_p5 }
0x2206   : > { %p5939_p11 = por %p5938_p10, %p5937_p9 }
0x2207   : > { %p5935_p8 = pneg %p5934_p7 }
0x2208   : > { %p5941_p13 = por %p5940_p12, %p5939_p11 }
0x220a   : > { %p5942_p0 = pnand %p5941_p13, %p5935_p8 }
0x220c   : > { %5945 = shalt.err (!%p5942_p0)
}
0x220d   : > { %s5986_s8 = smov 128  }
0x220e   : > { %5597 = dma.vmem_to_hbm [thread:$0]  (%p6145_p5), %s6987_s28, 512, %s6994_s3, %s6998_s29, %s5986_s8, %s5986_s8, %s7114_s5  }
0x220f PF: > { %s7121_s4 = sld [smem:[#allocation7_spill]]  ;;  %s7122_s25 = sld [smem:[#allocation5_spill]] }
0x2215   : > { %p5603_p1 = scmp.ge.s32.totalorder %s7121_s4, 2  ;;  %s4662_s24 = sand.u32 1, %s7122_s25  }
0x2216   : > { %s4663_s23 = scalar_lea.sflag [#allocation3], %s4662_s24 }
0x2217   : > { %p5600_p2 = pnand %p5603_p1, %p6149_p6 }
0x2219   : > { %5963 = dma.done.wait (!%p5600_p2), %s4663_s23, 512  }
0x221a   : > { %5965 = vsyncadd (!%p5600_p2), %s4663_s23, 4294966784  ;;  %s7124_s25 = sld [smem:[#allocation9_spill]]  ;;  %s7125_s26 = sld [smem:[#allocation6_spill]] }
0x221b   : > { %s7126_s24 = sld [smem:[#allocation10_spill]]  ;;  %s7127_s4 = smov %s5972_s30 }
0x2220   : > { %p33_p3 = scmp.ge.s32.totalorder %s7124_s25, 4   ;;  %s7128_s30 = smov %s7125_s26 }
0x2222   :  { %35 = sbr.rel (!%p33_p3) target bundleno = 15 (0xf), region = 197 }
0x2229   :  { %4668 = vsyncpa [#allocation3], 1 }
0x222a   :  { %4670 = vsyncpa [#allocation3 + $0x1], 1 }

</bundles_post_ra>
